<compile_context>
chip_gen: v7x
topology: tpu7x:2x2x1
jax: 0.10.0
libtpu: 0.0.40
codegen_flags: <defaults>
</compile_context>

<pallas_src>
import numpy as np
import jax
import jax.numpy as jnp
from jax.experimental import pallas as pl
from jax.experimental.pallas import tpu as pltpu

KERNELS = (2, 2, 3, 3)
BIL_OUT = 128          # nn.Bilinear output features
BN_EPS = 1e-5
PAD_N = 128            # lane-dense width for narrow layers / outputs


def _round_up(v, m):
    return -(-v // m) * m


# ----------------------------------------------------------------------------
# Pallas kernel + wrapper
# ----------------------------------------------------------------------------
def aebidnn_forward(x, kp, unit):
    B, I = x.shape

    # ---- batch tiling: pad B to a multiple of the tile (>= 8 sublanes) ------
    Bp = _round_up(max(B, 8), 8)
    TB = 128 if Bp >= 128 else Bp    # 128 fills the v5e MXU M dim; use 256 on
                                     # v6e/v7x for very large batches.
    Bp = _round_up(Bp, TB)
    if Bp != B:
        x = jnp.pad(x, ((0, Bp - B), (0, 0)))
    nb = Bp // TB

    def kernel(x_ref, w1, b1, w2, b2, w3, b3,
               w4, b4, w5, b5, w6, b6,
               bw, bb, w7, b7, w8, b8,
               xr_out, code_out, logit_out):
        xv = x_ref[...]                                         # (TB, I) f32

        def aff(v, w_ref, b_ref):
            return jnp.dot(v, w_ref[...],
                           preferred_element_type=jnp.float32) + b_ref[...]

        relu = lambda v: jnp.maximum(v, 0.0)

        # ---- encoder (conv bank + layer 1 pre-folded into w1/b1) ----
        h = relu(aff(xv, w1, b1))                               # (TB, 128)
        h = relu(aff(h, w2, b2))                                # (TB, 64)
        code = relu(aff(h, w3, b3))                             # (TB, 128) pad

        # ---- decoder ----
        h = relu(aff(code, w4, b4))                             # (TB, 64)
        h = relu(aff(h, w5, b5))                                # (TB, 128)
        x_rec = jax.nn.sigmoid(aff(h, w6, b6))                  # (TB, I)

        # ---- BiNN: Bilinear(I, I, 128) as a single K=I*I MXU matmul ----
        # outer[:, i*I + j] = x[:, i] * x_rec[:, j]  (flattened outer product;
        # built by lane concat to avoid an unsupported minor-dim reshape).
        outer = jnp.concatenate(
            [xv[:, i:i + 1] * x_rec for i in range(I)], axis=-1)  # (TB, I*I)
        bil = jnp.dot(outer.astype(jnp.bfloat16), bw[...],
                      preferred_element_type=jnp.float32) + bb[...]

        h = relu(aff(bil, w7, b7))                              # (TB, 64)
        logit = jax.nn.sigmoid(aff(h, w8, b8))                  # (TB, 128) pad

        # TODO(synk): x_rec output stays at natural width I (<128 lanes); it is
        # consumed inside the kernel so padding it would add extra slicing.
        xr_out[...] = x_rec
        code_out[...] = code
        logit_out[...] = logit

    weights = (kp["w1"], kp["b1"], kp["w2"], kp["b2"], kp["w3"], kp["b3"],
               kp["w4"], kp["b4"], kp["w5"], kp["b5"], kp["w6"], kp["b6"],
               kp["bw"], kp["bb"], kp["w7"], kp["b7"], kp["w8"], kp["b8"])

    x_spec = pl.BlockSpec((TB, I), lambda b: (b, 0))
    # Constant index_map -> weights are copied to VMEM once and stay resident.
    w_specs = [pl.BlockSpec(w.shape, lambda b: (0, 0)) for w in weights]

    out_shape = (jax.ShapeDtypeStruct((Bp, I), jnp.float32),
                 jax.ShapeDtypeStruct((Bp, PAD_N), jnp.float32),
                 jax.ShapeDtypeStruct((Bp, PAD_N), jnp.float32))
    out_specs = (pl.BlockSpec((TB, I), lambda b: (b, 0)),
                 pl.BlockSpec((TB, PAD_N), lambda b: (b, 0)),
                 pl.BlockSpec((TB, PAD_N), lambda b: (b, 0)))

    x_rec, code_pad, logit_pad = pl.pallas_call(
        kernel,
        grid=(nb,),
        in_specs=[x_spec] + w_specs,
        out_specs=out_specs,
        out_shape=out_shape,
        compiler_params=pltpu.CompilerParams(
            dimension_semantics=("parallel",),
            vmem_limit_bytes=32 << 20),
    )(x, *weights)

    return x_rec[:B], code_pad[:B, :unit], logit_pad[:B, :1]


# ----------------------------------------------------------------------------
# Deterministic parameter construction (BatchNorm folded into Linear, eval mode)
# ----------------------------------------------------------------------------
def init_params(key, in_dim, unit=8):
    dim = (1 + len(KERNELS)) * in_dim - int(np.sum(KERNELS)) + len(KERNELS)
    keys = iter(jax.random.split(key, 64))
    nxt = lambda: next(keys)

    def linear(din, dout):
        s = 1.0 / np.sqrt(din)
        w = jax.random.uniform(nxt(), (din, dout), jnp.float32, -s, s)
        b = jax.random.uniform(nxt(), (dout,), jnp.float32, -s, s)
        return w, b

    def linear_bn(din, dout):
        # get_network(din, dout) = Linear + BatchNorm1d(eval) + ReLU + Dropout(id)
        w, b = linear(din, dout)
        gamma = 1.0 + 0.1 * jax.random.normal(nxt(), (dout,), jnp.float32)
        beta = 0.1 * jax.random.normal(nxt(), (dout,), jnp.float32)
        mean = 0.1 * jax.random.normal(nxt(), (dout,), jnp.float32)
        var = 1.0 + 0.1 * jnp.abs(jax.random.normal(nxt(), (dout,), jnp.float32))
        s = gamma / jnp.sqrt(var + BN_EPS)
        return w * s[None, :], ((b - mean) * s + beta).reshape(1, dout)

    p = {"in_dim": in_dim, "unit": unit}
    # Conv1d(1, 1, k) weights/biases, flattened
    p["conv_w"] = 0.5 * jax.random.normal(nxt(), (int(np.sum(KERNELS)),), jnp.float32)
    p["conv_b"] = 0.1 * jax.random.normal(nxt(), (len(KERNELS),), jnp.float32)

    p["enc1_w"], p["enc1_b"] = linear_bn(dim, 128)
    p["enc2_w"], p["enc2_b"] = linear_bn(128, 64)
    p["enc3_w"], p["enc3_b"] = linear_bn(64, unit)
    p["dec1_w"], p["dec1_b"] = linear_bn(unit, 64)
    p["dec2_w"], p["dec2_b"] = linear_bn(64, 128)
    w, b = linear(128, in_dim)
    p["dec3_w"], p["dec3_b"] = w, b.reshape(1, in_dim)

    # Bilinear weight, transposed: Wt[i, j, o] = W_torch[o, i, j].
    # Stored pre-quantized to bf16 values so kernel and reference share weights.
    wt = 0.1 * jax.random.normal(nxt(), (in_dim, in_dim, BIL_OUT), jnp.float32)
    p["bil_wt"] = wt.astype(jnp.bfloat16).astype(jnp.float32)
    p["bil_b"] = 0.1 * jax.random.normal(nxt(), (1, BIL_OUT), jnp.float32)

    p["nn1_w"], p["nn1_b"] = linear_bn(BIL_OUT, 64)
    w, b = linear(64, 1)
    p["nn2_w"], p["nn2_b"] = w, b.reshape(1, 1)
    return p


# ----------------------------------------------------------------------------
# Wrapper-side folding / padding into kernel-ready layout (zero runtime cost)
# ----------------------------------------------------------------------------
def prepare_kernel_params(p):
    I = p["in_dim"]

    # --- fold the linear Conv1d bank into encoder layer 1 -------------------
    seg = [I] + [I - k + 1 for k in KERNELS]
    offs = np.cumsum([0] + seg)
    E = [p["enc1_w"][offs[i]:offs[i + 1], :] for i in range(len(seg))]
    conv_w = np.asarray(p["conv_w"])
    conv_b = np.asarray(p["conv_b"])
    w_eff, b_eff = E[0], p["enc1_b"]
    off = 0
    for ci, k in enumerate(KERNELS):
        L = I - k + 1
        C = np.zeros((I, L), np.float32)          # banded conv matrix
        for j in range(L):
            for t in range(k):
                C[j + t, j] = conv_w[off + t]
        w_eff = w_eff + jnp.dot(jnp.asarray(C), E[ci + 1], precision="highest")
        b_eff = b_eff + conv_b[ci] * jnp.sum(E[ci + 1], axis=0, keepdims=True)
        off += k

    def pad_cols(w, b, n=PAD_N):                  # zero-pad output features
        return (jnp.pad(w, ((0, 0), (0, n - w.shape[1]))),
                jnp.pad(b, ((0, 0), (0, n - b.shape[1]))))

    def pad_rows(w, n=PAD_N):                     # zero-pad input features
        return jnp.pad(w, ((0, n - w.shape[0]), (0, 0)))

    kp = {"w1": w_eff, "b1": b_eff,
          "w2": p["enc2_w"], "b2": p["enc2_b"]}
    kp["w3"], kp["b3"] = pad_cols(p["enc3_w"], p["enc3_b"])     # unit -> 128
    kp["w4"], kp["b4"] = pad_rows(p["dec1_w"]), p["dec1_b"]     # unit -> 128
    kp["w5"], kp["b5"] = p["dec2_w"], p["dec2_b"]
    kp["w6"], kp["b6"] = p["dec3_w"], p["dec3_b"]
    # Flattened bilinear weight (bf16) matching outer[:, i*I + j].
    kp["bw"] = p["bil_wt"].astype(jnp.bfloat16).reshape(I * I, BIL_OUT)
    kp["bb"] = p["bil_b"]
    kp["w7"], kp["b7"] = p["nn1_w"], p["nn1_b"]
    kp["w8"], kp["b8"] = pad_cols(p["nn2_w"], p["nn2_b"])       # 1 -> 128
    return kp


# ----------------------------------------------------------------------------
# Pure-JAX reference (original unfolded/unpadded math) for verification
# ----------------------------------------------------------------------------
def reference(x, p):
    I = x.shape[1]
    feats = [x]
    off = 0
    for ci, k in enumerate(KERNELS):
        L = I - k + 1
        acc = sum(x[:, t:t + L] * p["conv_w"][off + t] for t in range(k))
        feats.append(acc + p["conv_b"][ci])
        off += k
    feat = jnp.concatenate(feats, axis=-1)

    relu = lambda v: jnp.maximum(v, 0.0)
    aff = lambda v, w, b: jnp.dot(v, w, precision="highest") + b

    h = relu(aff(feat, p["enc1_w"], p["enc1_b"]))
    h = relu(aff(h, p["enc2_w"], p["enc2_b"]))
    code = relu(aff(h, p["enc3_w"], p["enc3_b"]))
    h = relu(aff(code, p["dec1_w"], p["dec1_b"]))
    h = relu(aff(h, p["dec2_w"], p["dec2_b"]))
    x_rec = jax.nn.sigmoid(aff(h, p["dec3_w"], p["dec3_b"]))
    bil = jnp.einsum("bi,ijo,bj->bo", x, p["bil_wt"], x_rec,
                     precision="highest") + p["bil_b"]
    h = relu(aff(bil, p["nn1_w"], p["nn1_b"]))
    logit = jax.nn.sigmoid(aff(h, p["nn2_w"], p["nn2_b"]))
    return x_rec, code, logit


if __name__ == "__main__":
    B, in_dim, unit = 200, 16, 8        # B=200 exercises batch padding + grid=2
    key = jax.random.PRNGKey(0)
    kx, kw = jax.random.split(key)
    x = jax.random.uniform(kx, (B, in_dim), jnp.float32)

    params = init_params(kw, in_dim, unit)
    kparams = prepare_kernel_params(params)

    x_rec, code, logit = jax.block_until_ready(aebidnn_forward(x, kparams, unit))

    assert x_rec.shape == (B, in_dim)
    assert code.shape == (B, unit)
    assert logit.shape == (B, 1)

    xr_ref, code_ref, logit_ref = reference(x, params)
    np.testing.assert_allclose(np.asarray(x_rec), np.asarray(xr_ref),
                               rtol=2e-2, atol=2e-2)
    np.testing.assert_allclose(np.asarray(code), np.asarray(code_ref),
                               rtol=2e-2, atol=2e-2)
    np.testing.assert_allclose(np.asarray(logit), np.asarray(logit_ref),
                               rtol=2e-2, atol=2e-2)
    print("KERNEL_OK")
</pallas_src>

<mosaic_0001>
module attributes {stable_mosaic.version = 11 : i64} {
  func.func @kernel(%arg0: i32, %arg1: memref<128x16xf32, #tpu.memory_space<vmem>>, %arg2: memref<16x128xf32, #tpu.memory_space<vmem>>, %arg3: memref<1x128xf32, #tpu.memory_space<vmem>>, %arg4: memref<128x64xf32, #tpu.memory_space<vmem>>, %arg5: memref<1x64xf32, #tpu.memory_space<vmem>>, %arg6: memref<64x128xf32, #tpu.memory_space<vmem>>, %arg7: memref<1x128xf32, #tpu.memory_space<vmem>>, %arg8: memref<128x64xf32, #tpu.memory_space<vmem>>, %arg9: memref<1x64xf32, #tpu.memory_space<vmem>>, %arg10: memref<64x128xf32, #tpu.memory_space<vmem>>, %arg11: memref<1x128xf32, #tpu.memory_space<vmem>>, %arg12: memref<128x16xf32, #tpu.memory_space<vmem>>, %arg13: memref<1x16xf32, #tpu.memory_space<vmem>>, %arg14: memref<256x128xbf16, #tpu.memory_space<vmem>>, %arg15: memref<1x128xf32, #tpu.memory_space<vmem>>, %arg16: memref<128x64xf32, #tpu.memory_space<vmem>>, %arg17: memref<1x64xf32, #tpu.memory_space<vmem>>, %arg18: memref<64x128xf32, #tpu.memory_space<vmem>>, %arg19: memref<1x128xf32, #tpu.memory_space<vmem>>, %arg20: memref<128x16xf32, #tpu.memory_space<vmem>>, %arg21: memref<128x128xf32, #tpu.memory_space<vmem>>, %arg22: memref<128x128xf32, #tpu.memory_space<vmem>>) attributes {dimension_semantics = [#tpu.dimension_semantics<parallel>], iteration_bounds = array<i64: 2>, scalar_prefetch = 0 : i64, scratch_operands = 0 : i64, tpu.core_type = #tpu.core_type<tc>, window_params = [{transform_indices = @transform_0, window_bounds = array<i64: 128, 16>}, {pipeline_mode = #tpu.pipeline_mode<synchronous>, transform_indices = @transform_1, window_bounds = array<i64: 16, 128>}, {pipeline_mode = #tpu.pipeline_mode<synchronous>, transform_indices = @transform_2, window_bounds = array<i64: 1, 128>}, {pipeline_mode = #tpu.pipeline_mode<synchronous>, transform_indices = @transform_3, window_bounds = array<i64: 128, 64>}, {pipeline_mode = #tpu.pipeline_mode<synchronous>, transform_indices = @transform_4, window_bounds = array<i64: 1, 64>}, {pipeline_mode = #tpu.pipeline_mode<synchronous>, transform_indices = @transform_5, window_bounds = array<i64: 64, 128>}, {pipeline_mode = #tpu.pipeline_mode<synchronous>, transform_indices = @transform_6, window_bounds = array<i64: 1, 128>}, {pipeline_mode = #tpu.pipeline_mode<synchronous>, transform_indices = @transform_7, window_bounds = array<i64: 128, 64>}, {pipeline_mode = #tpu.pipeline_mode<synchronous>, transform_indices = @transform_8, window_bounds = array<i64: 1, 64>}, {pipeline_mode = #tpu.pipeline_mode<synchronous>, transform_indices = @transform_9, window_bounds = array<i64: 64, 128>}, {pipeline_mode = #tpu.pipeline_mode<synchronous>, transform_indices = @transform_10, window_bounds = array<i64: 1, 128>}, {pipeline_mode = #tpu.pipeline_mode<synchronous>, transform_indices = @transform_11, window_bounds = array<i64: 128, 16>}, {pipeline_mode = #tpu.pipeline_mode<synchronous>, transform_indices = @transform_12, window_bounds = array<i64: 1, 16>}, {pipeline_mode = #tpu.pipeline_mode<synchronous>, transform_indices = @transform_13, window_bounds = array<i64: 256, 128>}, {pipeline_mode = #tpu.pipeline_mode<synchronous>, transform_indices = @transform_14, window_bounds = array<i64: 1, 128>}, {pipeline_mode = #tpu.pipeline_mode<synchronous>, transform_indices = @transform_15, window_bounds = array<i64: 128, 64>}, {pipeline_mode = #tpu.pipeline_mode<synchronous>, transform_indices = @transform_16, window_bounds = array<i64: 1, 64>}, {pipeline_mode = #tpu.pipeline_mode<synchronous>, transform_indices = @transform_17, window_bounds = array<i64: 64, 128>}, {pipeline_mode = #tpu.pipeline_mode<synchronous>, transform_indices = @transform_18, window_bounds = array<i64: 1, 128>}, {transform_indices = @transform_19, window_bounds = array<i64: 128, 16>}, {transform_indices = @transform_20, window_bounds = array<i64: 128, 128>}, {transform_indices = @transform_21, window_bounds = array<i64: 128, 128>}]} {
    %c0 = arith.constant 0 : index
    %c0_0 = arith.constant 0 : index
    %0 = vector.load %arg1[%c0, %c0_0] : memref<128x16xf32, #tpu.memory_space<vmem>>, vector<128x16xf32>
    %c0_1 = arith.constant 0 : index
    %c0_2 = arith.constant 0 : index
    %1 = vector.load %arg2[%c0_1, %c0_2] : memref<16x128xf32, #tpu.memory_space<vmem>>, vector<16x128xf32>
    %cst = arith.constant dense<0.000000e+00> : vector<128x128xf32>
    %2 = tpu.matmul %0, %1, %cst {dimension_numbers = #tpu.dot_dimension_numbers<[1], [0], [0], [1], [0, 0, 1, 1], [], []>} : vector<128x16xf32>, vector<16x128xf32>, vector<128x128xf32> -> vector<128x128xf32>
    %c0_3 = arith.constant 0 : index
    %c0_4 = arith.constant 0 : index
    %3 = vector.load %arg3[%c0_3, %c0_4] : memref<1x128xf32, #tpu.memory_space<vmem>>, vector<1x128xf32>
    %4 = vector.broadcast %3 : vector<1x128xf32> to vector<128x128xf32>
    %5 = arith.addf %2, %4 : vector<128x128xf32>
    %cst_5 = arith.constant 0.000000e+00 : f32
    %6 = vector.broadcast %cst_5 : f32 to vector<128x128xf32>
    %7 = arith.maximumf %5, %6 : vector<128x128xf32>
    %c0_6 = arith.constant 0 : index
    %c0_7 = arith.constant 0 : index
    %8 = vector.load %arg4[%c0_6, %c0_7] : memref<128x64xf32, #tpu.memory_space<vmem>>, vector<128x64xf32>
    %cst_8 = arith.constant dense<0.000000e+00> : vector<128x64xf32>
    %9 = tpu.matmul %7, %8, %cst_8 {dimension_numbers = #tpu.dot_dimension_numbers<[1], [0], [0], [1], [0, 0, 1, 1], [], []>} : vector<128x128xf32>, vector<128x64xf32>, vector<128x64xf32> -> vector<128x64xf32>
    %c0_9 = arith.constant 0 : index
    %c0_10 = arith.constant 0 : index
    %10 = vector.load %arg5[%c0_9, %c0_10] : memref<1x64xf32, #tpu.memory_space<vmem>>, vector<1x64xf32>
    %11 = vector.broadcast %10 : vector<1x64xf32> to vector<128x64xf32>
    %12 = arith.addf %9, %11 : vector<128x64xf32>
    %cst_11 = arith.constant 0.000000e+00 : f32
    %13 = vector.broadcast %cst_11 : f32 to vector<128x64xf32>
    %14 = arith.maximumf %12, %13 : vector<128x64xf32>
    %c0_12 = arith.constant 0 : index
    %c0_13 = arith.constant 0 : index
    %15 = vector.load %arg6[%c0_12, %c0_13] : memref<64x128xf32, #tpu.memory_space<vmem>>, vector<64x128xf32>
    %cst_14 = arith.constant dense<0.000000e+00> : vector<128x128xf32>
    %16 = tpu.matmul %14, %15, %cst_14 {dimension_numbers = #tpu.dot_dimension_numbers<[1], [0], [0], [1], [0, 0, 1, 1], [], []>} : vector<128x64xf32>, vector<64x128xf32>, vector<128x128xf32> -> vector<128x128xf32>
    %c0_15 = arith.constant 0 : index
    %c0_16 = arith.constant 0 : index
    %17 = vector.load %arg7[%c0_15, %c0_16] : memref<1x128xf32, #tpu.memory_space<vmem>>, vector<1x128xf32>
    %18 = vector.broadcast %17 : vector<1x128xf32> to vector<128x128xf32>
    %19 = arith.addf %16, %18 : vector<128x128xf32>
    %cst_17 = arith.constant 0.000000e+00 : f32
    %20 = vector.broadcast %cst_17 : f32 to vector<128x128xf32>
    %21 = arith.maximumf %19, %20 : vector<128x128xf32>
    %c0_18 = arith.constant 0 : index
    %c0_19 = arith.constant 0 : index
    %22 = vector.load %arg8[%c0_18, %c0_19] : memref<128x64xf32, #tpu.memory_space<vmem>>, vector<128x64xf32>
    %cst_20 = arith.constant dense<0.000000e+00> : vector<128x64xf32>
    %23 = tpu.matmul %21, %22, %cst_20 {dimension_numbers = #tpu.dot_dimension_numbers<[1], [0], [0], [1], [0, 0, 1, 1], [], []>} : vector<128x128xf32>, vector<128x64xf32>, vector<128x64xf32> -> vector<128x64xf32>
    %c0_21 = arith.constant 0 : index
    %c0_22 = arith.constant 0 : index
    %24 = vector.load %arg9[%c0_21, %c0_22] : memref<1x64xf32, #tpu.memory_space<vmem>>, vector<1x64xf32>
    %25 = vector.broadcast %24 : vector<1x64xf32> to vector<128x64xf32>
    %26 = arith.addf %23, %25 : vector<128x64xf32>
    %cst_23 = arith.constant 0.000000e+00 : f32
    %27 = vector.broadcast %cst_23 : f32 to vector<128x64xf32>
    %28 = arith.maximumf %26, %27 : vector<128x64xf32>
    %c0_24 = arith.constant 0 : index
    %c0_25 = arith.constant 0 : index
    %29 = vector.load %arg10[%c0_24, %c0_25] : memref<64x128xf32, #tpu.memory_space<vmem>>, vector<64x128xf32>
    %cst_26 = arith.constant dense<0.000000e+00> : vector<128x128xf32>
    %30 = tpu.matmul %28, %29, %cst_26 {dimension_numbers = #tpu.dot_dimension_numbers<[1], [0], [0], [1], [0, 0, 1, 1], [], []>} : vector<128x64xf32>, vector<64x128xf32>, vector<128x128xf32> -> vector<128x128xf32>
    %c0_27 = arith.constant 0 : index
    %c0_28 = arith.constant 0 : index
    %31 = vector.load %arg11[%c0_27, %c0_28] : memref<1x128xf32, #tpu.memory_space<vmem>>, vector<1x128xf32>
    %32 = vector.broadcast %31 : vector<1x128xf32> to vector<128x128xf32>
    %33 = arith.addf %30, %32 : vector<128x128xf32>
    %cst_29 = arith.constant 0.000000e+00 : f32
    %34 = vector.broadcast %cst_29 : f32 to vector<128x128xf32>
    %35 = arith.maximumf %33, %34 : vector<128x128xf32>
    %c0_30 = arith.constant 0 : index
    %c0_31 = arith.constant 0 : index
    %36 = vector.load %arg12[%c0_30, %c0_31] : memref<128x16xf32, #tpu.memory_space<vmem>>, vector<128x16xf32>
    %cst_32 = arith.constant dense<0.000000e+00> : vector<128x16xf32>
    %37 = tpu.matmul %35, %36, %cst_32 {dimension_numbers = #tpu.dot_dimension_numbers<[1], [0], [0], [1], [0, 0, 1, 1], [], []>} : vector<128x128xf32>, vector<128x16xf32>, vector<128x16xf32> -> vector<128x16xf32>
    %c0_33 = arith.constant 0 : index
    %c0_34 = arith.constant 0 : index
    %38 = vector.load %arg13[%c0_33, %c0_34] : memref<1x16xf32, #tpu.memory_space<vmem>>, vector<1x16xf32>
    %39 = vector.broadcast %38 : vector<1x16xf32> to vector<128x16xf32>
    %40 = arith.addf %37, %39 : vector<128x16xf32>
    %41 = arith.negf %40 : vector<128x16xf32>
    %42 = math.exp %41 : vector<128x16xf32>
    %cst_35 = arith.constant 1.000000e+00 : f32
    %43 = vector.broadcast %cst_35 : f32 to vector<128x16xf32>
    %44 = arith.addf %43, %42 : vector<128x16xf32>
    %45 = arith.divf %43, %44 : vector<128x16xf32>
    %46 = vector.extract_strided_slice %0 {offsets = [0, 0], sizes = [128, 1], strides = [1, 1]} : vector<128x16xf32> to vector<128x1xf32>
    %47 = vector.broadcast %46 : vector<128x1xf32> to vector<128x16xf32>
    %48 = arith.mulf %47, %45 : vector<128x16xf32>
    %49 = vector.extract_strided_slice %0 {offsets = [0, 1], sizes = [128, 1], strides = [1, 1]} : vector<128x16xf32> to vector<128x1xf32>
    %50 = vector.broadcast %49 : vector<128x1xf32> to vector<128x16xf32>
    %51 = arith.mulf %50, %45 : vector<128x16xf32>
    %52 = vector.extract_strided_slice %0 {offsets = [0, 2], sizes = [128, 1], strides = [1, 1]} : vector<128x16xf32> to vector<128x1xf32>
    %53 = vector.broadcast %52 : vector<128x1xf32> to vector<128x16xf32>
    %54 = arith.mulf %53, %45 : vector<128x16xf32>
    %55 = vector.extract_strided_slice %0 {offsets = [0, 3], sizes = [128, 1], strides = [1, 1]} : vector<128x16xf32> to vector<128x1xf32>
    %56 = vector.broadcast %55 : vector<128x1xf32> to vector<128x16xf32>
    %57 = arith.mulf %56, %45 : vector<128x16xf32>
    %58 = vector.extract_strided_slice %0 {offsets = [0, 4], sizes = [128, 1], strides = [1, 1]} : vector<128x16xf32> to vector<128x1xf32>
    %59 = vector.broadcast %58 : vector<128x1xf32> to vector<128x16xf32>
    %60 = arith.mulf %59, %45 : vector<128x16xf32>
    %61 = vector.extract_strided_slice %0 {offsets = [0, 5], sizes = [128, 1], strides = [1, 1]} : vector<128x16xf32> to vector<128x1xf32>
    %62 = vector.broadcast %61 : vector<128x1xf32> to vector<128x16xf32>
    %63 = arith.mulf %62, %45 : vector<128x16xf32>
    %64 = vector.extract_strided_slice %0 {offsets = [0, 6], sizes = [128, 1], strides = [1, 1]} : vector<128x16xf32> to vector<128x1xf32>
    %65 = vector.broadcast %64 : vector<128x1xf32> to vector<128x16xf32>
    %66 = arith.mulf %65, %45 : vector<128x16xf32>
    %67 = vector.extract_strided_slice %0 {offsets = [0, 7], sizes = [128, 1], strides = [1, 1]} : vector<128x16xf32> to vector<128x1xf32>
    %68 = vector.broadcast %67 : vector<128x1xf32> to vector<128x16xf32>
    %69 = arith.mulf %68, %45 : vector<128x16xf32>
    %70 = vector.extract_strided_slice %0 {offsets = [0, 8], sizes = [128, 1], strides = [1, 1]} : vector<128x16xf32> to vector<128x1xf32>
    %71 = vector.broadcast %70 : vector<128x1xf32> to vector<128x16xf32>
    %72 = arith.mulf %71, %45 : vector<128x16xf32>
    %73 = vector.extract_strided_slice %0 {offsets = [0, 9], sizes = [128, 1], strides = [1, 1]} : vector<128x16xf32> to vector<128x1xf32>
    %74 = vector.broadcast %73 : vector<128x1xf32> to vector<128x16xf32>
    %75 = arith.mulf %74, %45 : vector<128x16xf32>
    %76 = vector.extract_strided_slice %0 {offsets = [0, 10], sizes = [128, 1], strides = [1, 1]} : vector<128x16xf32> to vector<128x1xf32>
    %77 = vector.broadcast %76 : vector<128x1xf32> to vector<128x16xf32>
    %78 = arith.mulf %77, %45 : vector<128x16xf32>
    %79 = vector.extract_strided_slice %0 {offsets = [0, 11], sizes = [128, 1], strides = [1, 1]} : vector<128x16xf32> to vector<128x1xf32>
    %80 = vector.broadcast %79 : vector<128x1xf32> to vector<128x16xf32>
    %81 = arith.mulf %80, %45 : vector<128x16xf32>
    %82 = vector.extract_strided_slice %0 {offsets = [0, 12], sizes = [128, 1], strides = [1, 1]} : vector<128x16xf32> to vector<128x1xf32>
    %83 = vector.broadcast %82 : vector<128x1xf32> to vector<128x16xf32>
    %84 = arith.mulf %83, %45 : vector<128x16xf32>
    %85 = vector.extract_strided_slice %0 {offsets = [0, 13], sizes = [128, 1], strides = [1, 1]} : vector<128x16xf32> to vector<128x1xf32>
    %86 = vector.broadcast %85 : vector<128x1xf32> to vector<128x16xf32>
    %87 = arith.mulf %86, %45 : vector<128x16xf32>
    %88 = vector.extract_strided_slice %0 {offsets = [0, 14], sizes = [128, 1], strides = [1, 1]} : vector<128x16xf32> to vector<128x1xf32>
    %89 = vector.broadcast %88 : vector<128x1xf32> to vector<128x16xf32>
    %90 = arith.mulf %89, %45 : vector<128x16xf32>
    %91 = vector.extract_strided_slice %0 {offsets = [0, 15], sizes = [128, 1], strides = [1, 1]} : vector<128x16xf32> to vector<128x1xf32>
    %92 = vector.broadcast %91 : vector<128x1xf32> to vector<128x16xf32>
    %93 = arith.mulf %92, %45 : vector<128x16xf32>
    %94 = tpu.concatenate %48, %51, %54, %57, %60, %63, %66, %69, %72, %75, %78, %81, %84, %87, %90, %93 in 1 : vector<128x16xf32>, vector<128x16xf32>, vector<128x16xf32>, vector<128x16xf32>, vector<128x16xf32>, vector<128x16xf32>, vector<128x16xf32>, vector<128x16xf32>, vector<128x16xf32>, vector<128x16xf32>, vector<128x16xf32>, vector<128x16xf32>, vector<128x16xf32>, vector<128x16xf32>, vector<128x16xf32>, vector<128x16xf32> -> vector<128x256xf32>
    %95 = arith.truncf %94 : vector<128x256xf32> to vector<128x256xbf16>
    %c0_36 = arith.constant 0 : index
    %c0_37 = arith.constant 0 : index
    %96 = vector.load %arg14[%c0_36, %c0_37] : memref<256x128xbf16, #tpu.memory_space<vmem>>, vector<256x128xbf16>
    %cst_38 = arith.constant dense<0.000000e+00> : vector<128x128xf32>
    %97 = tpu.matmul %95, %96, %cst_38 {dimension_numbers = #tpu.dot_dimension_numbers<[1], [0], [0], [1], [0, 0, 1, 1], [], []>} : vector<128x256xbf16>, vector<256x128xbf16>, vector<128x128xf32> -> vector<128x128xf32>
    %c0_39 = arith.constant 0 : index
    %c0_40 = arith.constant 0 : index
    %98 = vector.load %arg15[%c0_39, %c0_40] : memref<1x128xf32, #tpu.memory_space<vmem>>, vector<1x128xf32>
    %99 = vector.broadcast %98 : vector<1x128xf32> to vector<128x128xf32>
    %100 = arith.addf %97, %99 : vector<128x128xf32>
    %c0_41 = arith.constant 0 : index
    %c0_42 = arith.constant 0 : index
    %101 = vector.load %arg16[%c0_41, %c0_42] : memref<128x64xf32, #tpu.memory_space<vmem>>, vector<128x64xf32>
    %cst_43 = arith.constant dense<0.000000e+00> : vector<128x64xf32>
    %102 = tpu.matmul %100, %101, %cst_43 {dimension_numbers = #tpu.dot_dimension_numbers<[1], [0], [0], [1], [0, 0, 1, 1], [], []>} : vector<128x128xf32>, vector<128x64xf32>, vector<128x64xf32> -> vector<128x64xf32>
    %c0_44 = arith.constant 0 : index
    %c0_45 = arith.constant 0 : index
    %103 = vector.load %arg17[%c0_44, %c0_45] : memref<1x64xf32, #tpu.memory_space<vmem>>, vector<1x64xf32>
    %104 = vector.broadcast %103 : vector<1x64xf32> to vector<128x64xf32>
    %105 = arith.addf %102, %104 : vector<128x64xf32>
    %cst_46 = arith.constant 0.000000e+00 : f32
    %106 = vector.broadcast %cst_46 : f32 to vector<128x64xf32>
    %107 = arith.maximumf %105, %106 : vector<128x64xf32>
    %c0_47 = arith.constant 0 : index
    %c0_48 = arith.constant 0 : index
    %108 = vector.load %arg18[%c0_47, %c0_48] : memref<64x128xf32, #tpu.memory_space<vmem>>, vector<64x128xf32>
    %cst_49 = arith.constant dense<0.000000e+00> : vector<128x128xf32>
    %109 = tpu.matmul %107, %108, %cst_49 {dimension_numbers = #tpu.dot_dimension_numbers<[1], [0], [0], [1], [0, 0, 1, 1], [], []>} : vector<128x64xf32>, vector<64x128xf32>, vector<128x128xf32> -> vector<128x128xf32>
    %c0_50 = arith.constant 0 : index
    %c0_51 = arith.constant 0 : index
    %110 = vector.load %arg19[%c0_50, %c0_51] : memref<1x128xf32, #tpu.memory_space<vmem>>, vector<1x128xf32>
    %111 = vector.broadcast %110 : vector<1x128xf32> to vector<128x128xf32>
    %112 = arith.addf %109, %111 : vector<128x128xf32>
    %113 = arith.negf %112 : vector<128x128xf32>
    %114 = math.exp %113 : vector<128x128xf32>
    %cst_52 = arith.constant 1.000000e+00 : f32
    %115 = vector.broadcast %cst_52 : f32 to vector<128x128xf32>
    %116 = arith.addf %115, %114 : vector<128x128xf32>
    %117 = arith.divf %115, %116 : vector<128x128xf32>
    %c0_53 = arith.constant 0 : index
    %c0_54 = arith.constant 0 : index
    %118 = vector.load %arg20[%c0_53, %c0_54] : memref<128x16xf32, #tpu.memory_space<vmem>>, vector<128x16xf32>
    tpu.vector_store %arg20[%c0_53, %c0_54], %45 {strides = array<i32>} : memref<128x16xf32, #tpu.memory_space<vmem>>, vector<128x16xf32>,
    %c0_55 = arith.constant 0 : index
    %c0_56 = arith.constant 0 : index
    %119 = vector.load %arg21[%c0_55, %c0_56] : memref<128x128xf32, #tpu.memory_space<vmem>>, vector<128x128xf32>
    tpu.vector_store %arg21[%c0_55, %c0_56], %21 {strides = array<i32>} : memref<128x128xf32, #tpu.memory_space<vmem>>, vector<128x128xf32>,
    %c0_57 = arith.constant 0 : index
    %c0_58 = arith.constant 0 : index
    %120 = vector.load %arg22[%c0_57, %c0_58] : memref<128x128xf32, #tpu.memory_space<vmem>>, vector<128x128xf32>
    tpu.vector_store %arg22[%c0_57, %c0_58], %117 {strides = array<i32>} : memref<128x128xf32, #tpu.memory_space<vmem>>, vector<128x128xf32>,
    return
  }
  func.func @transform_0(%arg0: i32) -> (i32, i32) {
    %c0_i32 = arith.constant 0 : i32
    %c0_i32_0 = arith.constant 0 : i32
    return %arg0, %c0_i32 : i32, i32
  }
  func.func @transform_1(%arg0: i32) -> (i32, i32) {
    %c0_i32 = arith.constant 0 : i32
    %c0_i32_0 = arith.constant 0 : i32
    %c0_i32_1 = arith.constant 0 : i32
    return %c0_i32, %c0_i32_0 : i32, i32
  }
  func.func @transform_2(%arg0: i32) -> (i32, i32) {
    %c0_i32 = arith.constant 0 : i32
    %c0_i32_0 = arith.constant 0 : i32
    %c0_i32_1 = arith.constant 0 : i32
    return %c0_i32, %c0_i32_0 : i32, i32
  }
  func.func @transform_3(%arg0: i32) -> (i32, i32) {
    %c0_i32 = arith.constant 0 : i32
    %c0_i32_0 = arith.constant 0 : i32
    %c0_i32_1 = arith.constant 0 : i32
    return %c0_i32, %c0_i32_0 : i32, i32
  }
  func.func @transform_4(%arg0: i32) -> (i32, i32) {
    %c0_i32 = arith.constant 0 : i32
    %c0_i32_0 = arith.constant 0 : i32
    %c0_i32_1 = arith.constant 0 : i32
    return %c0_i32, %c0_i32_0 : i32, i32
  }
  func.func @transform_5(%arg0: i32) -> (i32, i32) {
    %c0_i32 = arith.constant 0 : i32
    %c0_i32_0 = arith.constant 0 : i32
    %c0_i32_1 = arith.constant 0 : i32
    return %c0_i32, %c0_i32_0 : i32, i32
  }
  func.func @transform_6(%arg0: i32) -> (i32, i32) {
    %c0_i32 = arith.constant 0 : i32
    %c0_i32_0 = arith.constant 0 : i32
    %c0_i32_1 = arith.constant 0 : i32
    return %c0_i32, %c0_i32_0 : i32, i32
  }
  func.func @transform_7(%arg0: i32) -> (i32, i32) {
    %c0_i32 = arith.constant 0 : i32
    %c0_i32_0 = arith.constant 0 : i32
    %c0_i32_1 = arith.constant 0 : i32
    return %c0_i32, %c0_i32_0 : i32, i32
  }
  func.func @transform_8(%arg0: i32) -> (i32, i32) {
    %c0_i32 = arith.constant 0 : i32
    %c0_i32_0 = arith.constant 0 : i32
    %c0_i32_1 = arith.constant 0 : i32
    return %c0_i32, %c0_i32_0 : i32, i32
  }
  func.func @transform_9(%arg0: i32) -> (i32, i32) {
    %c0_i32 = arith.constant 0 : i32
    %c0_i32_0 = arith.constant 0 : i32
    %c0_i32_1 = arith.constant 0 : i32
    return %c0_i32, %c0_i32_0 : i32, i32
  }
  func.func @transform_10(%arg0: i32) -> (i32, i32) {
    %c0_i32 = arith.constant 0 : i32
    %c0_i32_0 = arith.constant 0 : i32
    %c0_i32_1 = arith.constant 0 : i32
    return %c0_i32, %c0_i32_0 : i32, i32
  }
  func.func @transform_11(%arg0: i32) -> (i32, i32) {
    %c0_i32 = arith.constant 0 : i32
    %c0_i32_0 = arith.constant 0 : i32
    %c0_i32_1 = arith.constant 0 : i32
    return %c0_i32, %c0_i32_0 : i32, i32
  }
  func.func @transform_12(%arg0: i32) -> (i32, i32) {
    %c0_i32 = arith.constant 0 : i32
    %c0_i32_0 = arith.constant 0 : i32
    %c0_i32_1 = arith.constant 0 : i32
    return %c0_i32, %c0_i32_0 : i32, i32
  }
  func.func @transform_13(%arg0: i32) -> (i32, i32) {
    %c0_i32 = arith.constant 0 : i32
    %c0_i32_0 = arith.constant 0 : i32
    %c0_i32_1 = arith.constant 0 : i32
    return %c0_i32, %c0_i32_0 : i32, i32
  }
  func.func @transform_14(%arg0: i32) -> (i32, i32) {
    %c0_i32 = arith.constant 0 : i32
    %c0_i32_0 = arith.constant 0 : i32
    %c0_i32_1 = arith.constant 0 : i32
    return %c0_i32, %c0_i32_0 : i32, i32
  }
  func.func @transform_15(%arg0: i32) -> (i32, i32) {
    %c0_i32 = arith.constant 0 : i32
    %c0_i32_0 = arith.constant 0 : i32
    %c0_i32_1 = arith.constant 0 : i32
    return %c0_i32, %c0_i32_0 : i32, i32
  }
  func.func @transform_16(%arg0: i32) -> (i32, i32) {
    %c0_i32 = arith.constant 0 : i32
    %c0_i32_0 = arith.constant 0 : i32
    %c0_i32_1 = arith.constant 0 : i32
    return %c0_i32, %c0_i32_0 : i32, i32
  }
  func.func @transform_17(%arg0: i32) -> (i32, i32) {
    %c0_i32 = arith.constant 0 : i32
    %c0_i32_0 = arith.constant 0 : i32
    %c0_i32_1 = arith.constant 0 : i32
    return %c0_i32, %c0_i32_0 : i32, i32
  }
  func.func @transform_18(%arg0: i32) -> (i32, i32) {
    %c0_i32 = arith.constant 0 : i32
    %c0_i32_0 = arith.constant 0 : i32
    %c0_i32_1 = arith.constant 0 : i32
    return %c0_i32, %c0_i32_0 : i32, i32
  }
  func.func @transform_19(%arg0: i32) -> (i32, i32) {
    %c0_i32 = arith.constant 0 : i32
    %c0_i32_0 = arith.constant 0 : i32
    return %arg0, %c0_i32 : i32, i32
  }
  func.func @transform_20(%arg0: i32) -> (i32, i32) {
    %c0_i32 = arith.constant 0 : i32
    %c0_i32_0 = arith.constant 0 : i32
    return %arg0, %c0_i32 : i32, i32
  }
  func.func @transform_21(%arg0: i32) -> (i32, i32) {
    %c0_i32 = arith.constant 0 : i32
    %c0_i32_0 = arith.constant 0 : i32
    return %arg0, %c0_i32 : i32, i32
  }
}

</mosaic_0001>

<bundles_post_ra>
// kernel: tpu_custom_call.1
= control target key start
LH: loop header
LB: loop body
LE: loop exit
PB: predicated region body
PF: predicated region fallthrough
CT: control target
= control target key end

     0   :  { %s10329_s0 = inlined_call_operand.vmem [shape: f32[256,16], index: 0, kind: input, shape index: {}]   ;;  %s10330_s1 = inlined_call_operand.vmem [shape: f32[16,128], index: 1, kind: input, shape index: {}]   ;;  %s10331_s2 = inlined_call_operand.vmem [shape: f32[1,128], index: 2, kind: input, shape index: {}]   ;;  %s10332_s3 = inlined_call_operand.vmem [shape: f32[128,64], index: 3, kind: input, shape index: {}]   ;;  %s10333_s4 = inlined_call_operand.vmem [shape: f32[1,64], index: 4, kind: input, shape index: {}]   ;;  %s10334_s5 = inlined_call_operand.vmem [shape: f32[64,128], index: 5, kind: input, shape index: {}]   ;;  %s10335_s6 = inlined_call_operand.vmem [shape: f32[1,128], index: 6, kind: input, shape index: {}]   ;;  %s10336_s7 = inlined_call_operand.vmem [shape: f32[128,64], index: 7, kind: input, shape index: {}]   ;;  %s10337_s8 = inlined_call_operand.vmem [shape: f32[1,64], index: 8, kind: input, shape index: {}]   ;;  %s10338_s9 = inlined_call_operand.vmem [shape: f32[64,128], index: 9, kind: input, shape index: {}]   ;;  %s10339_s10 = inlined_call_operand.vmem [shape: f32[1,128], index: 10, kind: input, shape index: {}]   ;;  %s10340_s11 = inlined_call_operand.vmem [shape: f32[128,16], index: 11, kind: input, shape index: {}]   ;;  %s10341_s12 = inlined_call_operand.vmem [shape: f32[1,16], index: 12, kind: input, shape index: {}]   ;;  %s10342_s13 = inlined_call_operand.vmem [shape: bf16[256,128], index: 13, kind: input, shape index: {}]   ;;  %s10343_s14 = inlined_call_operand.vmem [shape: f32[1,128], index: 14, kind: input, shape index: {}]   ;;  %s10344_s15 = inlined_call_operand.vmem [shape: f32[128,64], index: 15, kind: input, shape index: {}]   ;;  %s10345_s16 = inlined_call_operand.vmem [shape: f32[1,64], index: 16, kind: input, shape index: {}]   ;;  %s10346_s17 = inlined_call_operand.vmem [shape: f32[64,128], index: 17, kind: input, shape index: {}]   ;;  %s10347_s18 = inlined_call_operand.vmem [shape: f32[1,128], index: 18, kind: input, shape index: {}]   ;;  %s10348_s19 = inlined_call_operand.vmem [shape: f32[256,16], index: 19, kind: output, shape index: {0}]   ;;  %s10349_s20 = inlined_call_operand.hbm [shape: f32[256,128], index: 20, kind: output, shape index: {1}]   ;;  %s10350_s21 = inlined_call_operand.hbm [shape: f32[256,128], index: 21, kind: output, shape index: {2}]  }
   0x1   :  { %10396 = sst [smem:[#allocation205_spill]] %s10329_s0 }
   0x2   :  { %10397 = sst [smem:[#allocation206_spill]] %s10330_s1 }
   0x3   :  { %10398 = sst [smem:[#allocation207_spill]] %s10331_s2 }
   0x4   :  { %10399 = sst [smem:[#allocation208_spill]] %s10332_s3 }
   0x5   :  { %10400 = sst [smem:[#allocation209_spill]] %s10333_s4 }
   0x6   :  { %10401 = sst [smem:[#allocation210_spill]] %s10334_s5 }
   0x7   :  { %10402 = sst [smem:[#allocation211_spill]] %s10335_s6 }
   0x8   :  { %10403 = sst [smem:[#allocation212_spill]] %s10349_s20 }
   0x9   :  { %10404 = sst [smem:[#allocation213_spill]] %s10350_s21 }
   0xa   :  { %27 = vsyncpa [#allocation3], 0 }
   0xb   :  { %29 = vsyncpa [#allocation3 + $0x1], 0 }
   0xc   :  { %30 = vsyncpa [#allocation5], 0 }
   0xd   :  { %32 = vsyncpa [#allocation5 + $0x1], 0  ;;  %s7444_s2 = smov 0   ;;  %s7446_s25 = smov 0  }
   0xe   :  { %s7448_s26 = smov 0   ;;  %s7450_s27 = smov 0  }
   0xf LB: > { %10405 = sst [smem:[#allocation8_spill]] %s7293_s2  ;;  %s7465_s3 = sadd.s32 4294967295, %s7305_s27   ;;  %s7305_s27 = sphi %s7450_s27, %s10843_s27   ;;  %s7301_s26 = sphi %s7448_s26, %s10845_s26   ;;  %s7297_s25 = sphi %s7446_s25, %s10847_s25   ;;  %s7293_s2 = sphi %s7444_s2, %s10846_s2  }
  0x10   : > { %10406 = sst [smem:[#allocation9_spill]] %s7301_s26  ;;  %s5352_s28 = sadd.s32 4294967294, %s7305_s27  }
  0x11   : > { %10407 = sst [smem:[#allocation10_spill]] %s7305_s27  ;;  %s7469_s29 = sadd.s32 1, %s7305_s27  }
  0x12   : > { %10408 = sst [smem:[#allocation11_spill]] %s7469_s29  ;;  %s475_s0 = sadd.s32 1, %s7301_s26 }
  0x13   : > { %s472_s4 = ssub.s32 %s7305_s27, %s7469_s29  ;;  %p485_p0 = scmp.ne.s32.totalorder %s7301_s26, %s7297_s25 }
  0x14   : > { %p473_p1 = scmp.eq.s32.totalorder %s472_s4, 0  ;;  %p486_p2 = scmp.eq.s32.totalorder %s7465_s3, 1 }
  0x15   : > { %p491_p3 = scmp.ne.s32.totalorder %s7297_s25, %s7293_s2  ;;  %p492_p4 = scmp.eq.s32.totalorder %s5352_s28, 1 }
  0x16   : > { %s7480_s30 = scalar_select %p473_p1, %s7301_s26, %s475_s0  }
  0x17   : > { %p7482_p5 = por %p486_p2, %p485_p0  ;;  %p7486_p6 = por %p492_p4, %p491_p3 }
  0x18   : > { %10409 = sst [smem:[#allocation12_spill]] %s7480_s30  ;;  %p5355_p7 = scmp.ge.s32.totalorder %s7305_s27, 1 }
  0x19   : > { %s10410_s5 = scalar_select %p7482_p5, 1, 0 }
  0x1a   : > { %s10412_s22 = scalar_select %p7486_p6, 1, 0 }
  0x1b   : > { %10411 = sst [smem:[#allocation13_spill]] %s10410_s5  ;;  %p599_p8 = scmp.lt.s32.totalorder %s7305_s27, 3 }
  0x1c   : > { %10413 = sst [smem:[#allocation14_spill]] %s10412_s22 }
  0x1d   : > { %p600_p9 = pnand %p5355_p7, %p599_p8 }
  0x1f   : > { %603 = sbr.rel (%p600_p9) target bundleno = 2422 (0x976), region = 96 }
  0x26   : > { %s10414_s24 = sld [smem:[#allocation206_spill]]  ;;  %s5358_s4 = sshll.u32 %s7465_s3, 4  ;;  %vm709_vm0 = vcmask 130048   ;;  %vm1118_vm1 = vcmask 523264   ;;  %vm4192_vm2 = vcmask 261120   ;;  %vm4209_vm3 = vcmask 392192  }
  0x27   : > { %s10415_s29 = sld [smem:[#allocation208_spill]]  ;;  %p670_p10 = scmp.lt.s32.totalorder %s5358_s4, 31  ;;  %vm4242_vm4 = vcmask 654336   ;;  %vm4259_vm5 = vcmask 785408   ;;  %vm4276_vm6 = vcmask 916480  }
  0x28   : > { %s10416_s30 = sld [smem:[#allocation205_spill]]  ;;  %s10417_s2 = sld [smem:[#allocation210_spill]] }
  0x29   : > { %s10849_s4 = smov (!%p670_p10, %s5358_s4), 31  ;;  %s10419_s0 = sld [smem:[#allocation207_spill]] }
  0x2a   : > { %s10362_s21 = sshll.u32 %s10849_s4, 3  ;;  %s10420_s27 = sld [smem:[#allocation209_spill]] }
  0x2b   : > { %s10430_s6 = sld [smem:[#allocation211_spill]]  ;;  %s10613_s1 = sshll.u32 %s10849_s4, 3 }
  0x2c   : > { %v700_v0 = vld [vmem:[%s10414_s24] sm:$0xff]  ;;  %v701_v1 = vld [vmem:[%s10414_s24 + $0x8] sm:$0xff]  ;;  %s8760_s20 = scalar_lea.vmem %s10348_s19, %s10613_s1  ;;  %s7324_s4 = smov 32  }
  0x2d   : > { %v919_v2 = vld [vmem:[%s10415_s29] sm:$0xff]  ;;  %v6147_v3 = vpack.c.bf16 %v701_v1, %v700_v0  ;;  %v920_v4 = vld [vmem:[%s10415_s29 + $0x8] sm:$0xff]  ;;  %v921_v5 = vld [vmem:[%s10415_s29 + $0x10] sm:$0xff]  ;;  %s7325_s5 = smov 48   ;;  %s7326_s26 = smov 64  }
  0x2e   : > { %v922_v6 = vld [vmem:[%s10415_s29 + $0x18] sm:$0xff]  ;;  %v6151_v7 = vpack.c.bf16 %v920_v4, %v919_v2  ;;  %v923_v9 = vld [vmem:[%s10415_s29 + $0x20] sm:$0xff]  ;;  %v924_v10 = vld [vmem:[%s10415_s29 + $0x28] sm:$0xff]  ;;  %s7531_s24 = scalar_lea.vmem %s10416_s30, %s10362_s21  ;;  %s10418_s22 = smov %s10417_s2 }
  0x2f   : > { %v6155_v8 = vpack.c.bf16 %v922_v6, %v921_v5  ;;  %6148 = vmatprep.subr.bf16.mxu0 %v6147_v3  ;;  %v925_v11 = vld [vmem:[%s10415_s29 + $0x30] sm:$0xff]  ;;  %v926_v12 = vld [vmem:[%s10415_s29 + $0x38] sm:$0xff]  ;;  %v6159_v13 = vpack.c.bf16 %v924_v10, %v923_v9  ;;  %v7534_v14 = vld [vmem:[%s7531_s24] sm:$0xff]  ;;  %s7323_s30 = smov 16   ;;  %s7327_s1 = smov 80  }
  0x30   : > { %6150 = vmatpush3.bf16.msra.mxu0 %v6147_v3  ;;  %6152 = vmatprep.subr.bf16.mxu1 %v6151_v7  ;;  %v7537_v15 = vld [vmem:[%s7531_s24 + $0x8] sm:$0xff]  ;;  %v7540_v16 = vld [vmem:[%s7531_s24 + $0x10] sm:$0xff]  ;;  %v7549_v17 = vld [vmem:[%s7531_s24 + $0x18] sm:$0xff]  ;;  %v6163_v18 = vpack.c.bf16 %v926_v12, %v925_v11  ;;  %s7329_s21 = smov 112  }
  0x31   : > { %6154 = vmatpush3.bf16.msra.mxu1 %v6151_v7  ;;  %5779 = vmatprep.mubr.msk.f32.mxu0 %vm709_vm0, %v7534_v14  ;;  %v7552_v19 = vld [vmem:[%s7531_s24 + $0x20] sm:$0xff]  ;;  %v928_v21 = vld [vmem:[%s10415_s29 + $0x48] sm:$0xff]  ;;  %v7566_v23 = vld [vmem:[%s7531_s24 + $0x30] sm:$0xff] }
  0x32   : > { %6156 = vmatprep.subr.bf16.mxu1 %v6155_v8  ;;  %v927_v20 = vld [vmem:[%s10415_s29 + $0x40] sm:$0xff]  ;;  %v7561_v22 = vld [vmem:[%s7531_s24 + $0x28] sm:$0xff]  ;;  %v929_v24 = vld [vmem:[%s10415_s29 + $0x50] sm:$0xff] }
  0x33   : > { %5780 = vmatmul.mubr.msk.f32.vlgmr.msra.gmra.mrb[0].mxu0 %vm709_vm0, %v7537_v15  ;;  %v930_v25 = vld [vmem:[%s10415_s29 + $0x58] sm:$0xff]  ;;  %v6167_v26 = vpack.c.bf16 %v928_v21, %v927_v20  ;;  %v7582_v28 = vld [vmem:[%s7531_s24 + $0x40] sm:$0xff]  ;;  %v932_v30 = vld [vmem:[%s10415_s29 + $0x68] sm:$0xff] }
  0x34   : > { %5782 = vmatprep.mubr.msk.f32.mxu0 %vm709_vm0, %v7540_v16  ;;  %v7577_v27 = vld [vmem:[%s7531_s24 + $0x38] sm:$0xff]  ;;  %v931_v29 = vld [vmem:[%s10415_s29 + $0x60] sm:$0xff]  ;;  %v6171_v31 = vpack.c.bf16 %v930_v25, %v929_v24  ;;  %v7597_v32 = vld [vmem:[%s7531_s24 + $0x48] sm:$0xff] }
  0x35   : > { %6158 = vmatpush3.bf16.msra.mxu1 %v6155_v8  ;;  %v6175_v33 = vpack.c.bf16 %v932_v30, %v931_v29  ;;  %v7600_v34 = vld [vmem:[%s7531_s24 + $0x50] sm:$0xff]  ;;  %v7607_v35 = vld [vmem:[%s7531_s24 + $0x58] sm:$0xff]  ;;  %v7610_v36 = vld [vmem:[%s7531_s24 + $0x60] sm:$0xff] }
  0x36   : > { %6160 = vmatprep.subr.bf16.mxu1 %v6159_v13  ;;  %v7617_v37 = vld [vmem:[%s7531_s24 + $0x68] sm:$0xff]  ;;  %v7620_v38 = vld [vmem:[%s7531_s24 + $0x70] sm:$0xff]  ;;  %v7627_v39 = vld [vmem:[%s7531_s24 + $0x78] sm:$0xff] }
  0x37   : > { %5783 = vmatmul.mubr.msk.f32.gmra.mrb[2].mxu0 %vm709_vm0, %v7549_v17  ;;  %v933_v40 = vld [vmem:[%s10415_s29 + $0x70] sm:$0xff]  ;;  %v934_v41 = vld [vmem:[%s10415_s29 + $0x78] sm:$0xff]  ;;  %v1103_v43 = vld [vmem:[%s10417_s2] sm:$0xff]  ;;  %s7869_s2 = sand.u32 1, %s7297_s25  }
  0x38   : > { %5785 = vmatprep.mubr.msk.f32.mxu0 %vm709_vm0, %v7552_v19  ;;  %v6179_v42 = vpack.c.bf16 %v934_v41, %v933_v40  ;;  %v1104_v44 = vld [vmem:[%s10418_s22 + $0x8] sm:$0xff]  ;;  %v1105_v45 = vld [vmem:[%s10418_s22 + $0x10] sm:$0xff]  ;;  %v1106_v47 = vld [vmem:[%s10418_s22 + $0x18] sm:$0xff] }
  0x39   : > { %6162 = vmatpush3.bf16.msra.mxu1 %v6159_v13  ;;  %v6183_v46 = vpack.c.bf16 %v1104_v44, %v1103_v43  ;;  %v6187_v48 = vpack.c.bf16 %v1106_v47, %v1105_v45  ;;  %v1107_v49 = vld [vmem:[%s10418_s22 + $0x20] sm:$0xff]  ;;  %v1108_v50 = vld [vmem:[%s10418_s22 + $0x28] sm:$0xff]  ;;  %v1109_v52 = vld [vmem:[%s10418_s22 + $0x30] sm:$0xff] }
  0x3a   : > { %6164 = vmatprep.subr.bf16.mxu1 %v6163_v18  ;;  %v6191_v51 = vpack.c.bf16 %v1108_v50, %v1107_v49  ;;  %v1110_v53 = vld [vmem:[%s10418_s22 + $0x38] sm:$0xff]  ;;  %v5362_v55 = vld [vmem:[%s10419_s0] ss:$0 sm:$0xff]  ;;  %s5356_s0 = sshll.u32 %s7869_s2, 7 }
  0x3b   : > { %5786 = vmatmul.mubr.msk.f32.gmra.mrb[4].mxu0 %vm709_vm0, %v7561_v22  ;;  %6184 = vmatprep.subr.bf16.mxu0 %v6183_v46  ;;  %v6195_v54 = vpack.c.bf16 %v1110_v53, %v1109_v52  ;;  %s7887_s23 = scalar_lea.vmem [#allocation2], %s5356_s0 }
  0x3c   : > { %5788 = vmatprep.mubr.msk.f32.mxu0 %vm709_vm0, %v7566_v23  ;;  %6186 = vmatpush3.bf16.msra.mxu0 %v6183_v46 }
  0x3d   : > { %6166 = vmatpush3.bf16.msra.mxu1 %v6163_v18  ;;  %6188 = vmatprep.subr.bf16.mxu0 %v6187_v48 }
  0x3e   : > { %6168 = vmatprep.subr.bf16.mxu1 %v6167_v26 }
  0x3f   : > { %5789 = vmatmul.mubr.msk.f32.gmra.mrb[6].mxu0 %vm709_vm0, %v7577_v27 }
  0x40   : > { %5791 = vmatprep.mubr.msk.f32.mxu0 %vm709_vm0, %v7582_v28  ;;  %6190 = vmatpush3.bf16.msra.mxu0 %v6187_v48 }
  0x41   : > { %6170 = vmatpush3.bf16.msra.mxu1 %v6167_v26  ;;  %6192 = vmatprep.subr.bf16.mxu0 %v6191_v51 }
  0x42   : > { %6172 = vmatprep.subr.bf16.mxu1 %v6171_v31 }
  0x43   : > { %5792 = vmatmul.mubr.msk.f32.gmra.mrb[8].mxu0 %vm709_vm0, %v7597_v32 }
  0x44   : > { %5794 = vmatprep.mubr.msk.f32.mxu0 %vm709_vm0, %v7600_v34  ;;  %6194 = vmatpush3.bf16.msra.mxu0 %v6191_v51 }
  0x45   : > { %6174 = vmatpush3.bf16.msra.mxu1 %v6171_v31  ;;  %6196 = vmatprep.subr.bf16.mxu0 %v6195_v54 }
  0x46   : > { %6176 = vmatprep.subr.bf16.mxu1 %v6175_v33 }
  0x47   : > { %5795 = vmatmul.mubr.msk.f32.gmra.mrb[10].mxu0 %vm709_vm0, %v7607_v35 }
  0x48   : > { %5797 = vmatprep.mubr.msk.f32.mxu0 %vm709_vm0, %v7610_v36  ;;  %6198 = vmatpush3.bf16.msra.mxu0 %v6195_v54 }
  0x49   : > { %6178 = vmatpush3.bf16.msra.mxu1 %v6175_v33 }
  0x4a   : > { %6180 = vmatprep.subr.bf16.mxu1 %v6179_v42 }
  0x4b   : > { %5798 = vmatmul.mubr.msk.f32.gmra.mrb[12].mxu0 %vm709_vm0, %v7617_v37 }
  0x4c   : > { %5800 = vmatprep.mubr.msk.f32.mxu0 %vm709_vm0, %v7620_v38 }
  0x4d   : > { %6182 = vmatpush3.bf16.msra.mxu1 %v6179_v42 }
  0x4f   : > { %5801 = vmatmul.mubr.msk.f32.gmra.mrb[14].mxu0 %vm709_vm0, %v7627_v39 }
 0x106   : > { %v5781_v56 = vpop.f32.mrb[0].mxu0 }
 0x107   : > { %v830_v57 = vadd.f32 %v5781_v56, %v5362_v55  ;;  %v824_v58 = vpop.f32.mrb[1].mxu0 }
 0x108   : > { %v825_v59 = vadd.f32 %v5362_v55, %v824_v58  ;;  %v1329_v58 = vld [vmem:[%s10336_s7 + $0x8] sm:$0xff] }
 0x109   : > { %v904_v62 = vmax.f32 %v830_v57, 0.0  ;;  %v1328_v57 = vld [vmem:[%s10336_s7] sm:$0xff] }
 0x10a   : > { %v5784_v60 = vpop.f32.mrb[2].mxu0  ;;  %v903_v61 = vmax.f32 %v825_v59, 0.0  ;;  %v1330_v59 = vld [vmem:[%s10336_s7 + $0x10] sm:$0xff] }
 0x10b   : > { %v840_v63 = vadd.f32 %v5784_v60, %v5362_v55  ;;  %v834_v0 = vpop.f32.mrb[3].mxu0  ;;  %v7307_v60 = vmov 0  }
 0x10c   : > { %v835_v1 = vadd.f32 %v5362_v55, %v834_v0  ;;  %5835 = vmatprep.mubr.f32.mxu1 %v903_v61  ;;  %6413 = vset.pattern.permute.xlu1 %v7307_v60  ;;  %v1331_v61 = vld [vmem:[%s10336_s7 + $0x18] sm:$0xff]  ;;  %v1333_v0 = vld [vmem:[%s10336_s7 + $0x28] sm:$0xff] }
 0x10d   : > { %v906_v2 = vmax.f32 %v840_v63, 0.0  ;;  %5836 = vmatmul.mubr.f32.vlgmr.msra.gmra.mrb[0].mxu1 %v904_v62  ;;  %6412 = vset.pattern.permute.xlu0 %v7307_v60  ;;  %v6203_v62 = vpack.c.bf16 %v1331_v61, %v1330_v59  ;;  %v1332_v63 = vld [vmem:[%s10336_s7 + $0x20] sm:$0xff] }
 0x10e   : > { %v905_v3 = vmax.f32 %v835_v1, 0.0  ;;  %v5787_v4 = vpop.f32.mrb[4].mxu0  ;;  %2009 = vperm.xlu1 %6413, %v7540_v16   ;;  %2001 = vperm.xlu0 %6412, %v7534_v14   ;;  %v6207_v1 = vpack.c.bf16 %v1333_v0, %v1332_v63 }
 0x10f   : > { %v850_v5 = vadd.f32 %v5787_v4, %v5362_v55  ;;  %v844_v6 = vpop.f32.mrb[5].mxu0 }
 0x110   : > { %v845_v7 = vadd.f32 %v5362_v55, %v844_v6  ;;  %5838 = vmatprep.mubr.f32.mxu1 %v905_v3  ;;  %v1335_v3 = vld [vmem:[%s10336_s7 + $0x38] sm:$0xff]  ;;  %v1337_v6 = vld [vmem:[%s10336_s7 + $0x48] sm:$0xff] }
 0x111   : > { %v908_v8 = vmax.f32 %v850_v5, 0.0  ;;  %5839 = vmatmul.mubr.f32.gmra.mrb[2].mxu1 %v906_v2  ;;  %v1334_v2 = vld [vmem:[%s10336_s7 + $0x30] sm:$0xff]  ;;  %v1336_v5 = vld [vmem:[%s10336_s7 + $0x40] sm:$0xff] }
 0x112   : > { %v907_v9 = vmax.f32 %v845_v7, 0.0  ;;  %v5790_v10 = vpop.f32.mrb[6].mxu0  ;;  %2013 = vperm.xlu1 %6413, %v7549_v17   ;;  %2005 = vperm.xlu0 %6412, %v7537_v15   ;;  %v6211_v4 = vpack.c.bf16 %v1335_v3, %v1334_v2  ;;  %v6215_v7 = vpack.c.bf16 %v1337_v6, %v1336_v5 }
 0x113   : > { %v860_v11 = vadd.f32 %v5790_v10, %v5362_v55  ;;  %v854_v12 = vpop.f32.mrb[7].mxu0 }
 0x114   : > { %v855_v13 = vadd.f32 %v5362_v55, %v854_v12  ;;  %5841 = vmatprep.mubr.f32.mxu1 %v907_v9  ;;  %v1339_v9 = vld [vmem:[%s10336_s7 + $0x58] sm:$0xff]  ;;  %v1341_v12 = vld [vmem:[%s10336_s7 + $0x68] sm:$0xff] }
 0x115   : > { %v910_v18 = vmax.f32 %v860_v11, 0.0  ;;  %5842 = vmatmul.mubr.f32.gmra.mrb[4].mxu1 %v908_v8  ;;  %v1338_v8 = vld [vmem:[%s10336_s7 + $0x50] sm:$0xff]  ;;  %v1340_v11 = vld [vmem:[%s10336_s7 + $0x60] sm:$0xff] }
 0x116   : > { %v909_v20 = vmax.f32 %v855_v13, 0.0  ;;  %v5793_v21 = vpop.f32.mrb[8].mxu0  ;;  %2021 = vperm.xlu1 %6413, %v7561_v22   ;;  %2017 = vperm.xlu0 %6412, %v7552_v19   ;;  %v6219_v10 = vpack.c.bf16 %v1339_v9, %v1338_v8  ;;  %v6223_v13 = vpack.c.bf16 %v1341_v12, %v1340_v11 }
 0x117   : > { %v870_v24 = vadd.f32 %v5793_v21, %v5362_v55  ;;  %v864_v25 = vpop.f32.mrb[9].mxu0 }
 0x118   : > { %v865_v26 = vadd.f32 %v5362_v55, %v864_v25  ;;  %5844 = vmatprep.mubr.f32.mxu1 %v909_v20  ;;  %v5379_v20 = vld [vmem:[%s10420_s27] ss:$0 sm:$0xff] }
 0x119   : > { %v912_v29 = vmax.f32 %v870_v24, 0.0  ;;  %5845 = vmatmul.mubr.f32.gmra.mrb[6].mxu1 %v910_v18  ;;  %v7308_v18 = vmov 1  }
 0x11a   : > { %v911_v30 = vmax.f32 %v865_v26, 0.0  ;;  %v5796_v31 = vpop.f32.mrb[10].mxu0  ;;  %2029 = vperm.xlu1 %6413, %v7577_v27   ;;  %2025 = vperm.xlu0 %6412, %v7566_v23  }
 0x11b   : > { %v880_v33 = vadd.f32 %v5796_v31, %v5362_v55  ;;  %v874_v40 = vpop.f32.mrb[11].mxu0 }
 0x11c   : > { %v875_v41 = vadd.f32 %v5362_v55, %v874_v40  ;;  %5847 = vmatprep.mubr.f32.mxu1 %v911_v30 }
 0x11d   : > { %v914_v42 = vmax.f32 %v880_v33, 0.0  ;;  %5848 = vmatmul.mubr.f32.gmra.mrb[8].mxu1 %v912_v29 }
 0x11e   : > { %v913_v43 = vmax.f32 %v875_v41, 0.0  ;;  %v5799_v44 = vpop.f32.mrb[12].mxu0  ;;  %2037 = vperm.xlu1 %6413, %v7597_v32   ;;  %2033 = vperm.xlu0 %6412, %v7582_v28  }
 0x11f   : > { %v890_v45 = vadd.f32 %v5799_v44, %v5362_v55  ;;  %v884_v46 = vpop.f32.mrb[13].mxu0 }
 0x120   : > { %v885_v47 = vadd.f32 %v5362_v55, %v884_v46  ;;  %5850 = vmatprep.mubr.f32.mxu1 %v913_v43 }
 0x121   : > { %v916_v48 = vmax.f32 %v890_v45, 0.0  ;;  %5851 = vmatmul.mubr.f32.gmra.mrb[10].mxu1 %v914_v42 }
 0x122   : > { %v915_v49 = vmax.f32 %v885_v47, 0.0  ;;  %v5802_v50 = vpop.f32.mrb[14].mxu0  ;;  %2045 = vperm.xlu1 %6413, %v7607_v35   ;;  %2041 = vperm.xlu0 %6412, %v7600_v34  }
 0x123   : > { %v900_v51 = vadd.f32 %v5802_v50, %v5362_v55  ;;  %v894_v52 = vpop.f32.mrb[15].mxu0 }
 0x124   : > { %v895_v53 = vadd.f32 %v5362_v55, %v894_v52  ;;  %5853 = vmatprep.mubr.f32.mxu1 %v915_v49  ;;  %v6199_v55 = vpack.c.bf16 %v1329_v58, %v1328_v57 }
 0x125   : > { %v918_v54 = vmax.f32 %v900_v51, 0.0  ;;  %5854 = vmatmul.mubr.f32.gmra.mrb[12].mxu1 %v916_v48 }
 0x126   : > { %v917_v56 = vmax.f32 %v895_v53, 0.0  ;;  %6200 = vmatprep.subr.bf16.mxu1 %v6199_v55  ;;  %2053 = vperm.xlu1 %6413, %v7617_v37  }
 0x127   : > { %6202 = vmatpush3.bf16.msra.mxu1 %v6199_v55  ;;  %2049 = vperm.xlu0 %6412, %v7610_v36  }
 0x128   : > { %5856 = vmatprep.mubr.f32.mxu1 %v917_v56  ;;  %6204 = vmatprep.subr.bf16.mxu1 %v6203_v62 }
 0x129   : > { %5857 = vmatmul.mubr.f32.gmra.mrb[14].mxu1 %v918_v54 }
 0x12a   : > { %2061 = vperm.xlu1 %6413, %v7627_v39  }
 0x12b   : > { %6206 = vmatpush3.bf16.msra.mxu1 %v6203_v62  ;;  %2057 = vperm.xlu0 %6412, %v7620_v38  }
 0x12c   : > { %6208 = vmatprep.subr.bf16.mxu1 %v6207_v1 }
 0x12e   : > { %6415 = vset.pattern.permute.xlu1 %v7308_v18 }
 0x12f   : > { %6210 = vmatpush3.bf16.msra.mxu1 %v6207_v1  ;;  %6414 = vset.pattern.permute.xlu0 %v7308_v18 }
 0x130   : > { %6212 = vmatprep.subr.bf16.mxu1 %v6211_v4  ;;  %2085 = vperm.xlu1 %6415, %v7537_v15  }
 0x131   : > { %2081 = vperm.xlu0 %6414, %v7534_v14  }
 0x133   : > { %6214 = vmatpush3.bf16.msra.mxu1 %v6211_v4 }
 0x134   : > { %6216 = vmatprep.subr.bf16.mxu1 %v6215_v7  ;;  %2089 = vperm.xlu1 %6415, %v7540_v16  }
 0x135   : > { %2093 = vperm.xlu0 %6414, %v7549_v17  }
 0x137   : > { %6218 = vmatpush3.bf16.msra.mxu1 %v6215_v7 }
 0x138   : > { %6220 = vmatprep.subr.bf16.mxu1 %v6219_v10  ;;  %2097 = vperm.xlu1 %6415, %v7552_v19  }
 0x139   : > { %2101 = vperm.xlu0 %6414, %v7561_v22  }
 0x13b   : > { %6222 = vmatpush3.bf16.msra.mxu1 %v6219_v10 }
 0x13c   : > { %6224 = vmatprep.subr.bf16.mxu1 %v6223_v13  ;;  %2105 = vperm.xlu1 %6415, %v7566_v23  }
 0x13d   : > { %2109 = vperm.xlu0 %6414, %v7577_v27  }
 0x13f   : > { %6226 = vmatpush3.bf16.msra.mxu1 %v6223_v13 }
 0x140   : > { %2113 = vperm.xlu1 %6415, %v7582_v28  }
 0x141   : > { %2117 = vperm.xlu0 %6414, %v7597_v32  }
 0x144   : > { %2121 = vperm.xlu1 %6415, %v7600_v34  }
 0x145   : > { %2125 = vperm.xlu0 %6414, %v7607_v35  }
 0x148   : > { %2129 = vperm.xlu1 %6415, %v7610_v36  }
 0x149   : > { %2133 = vperm.xlu0 %6414, %v7617_v37  }
 0x14c   : > { %2137 = vperm.xlu1 %6415, %v7620_v38  }
 0x14d   : > { %2141 = vperm.xlu0 %6414, %v7627_v39  }
 0x1e0   : > { %v5837_v21 = vpop.f32.mrb[0].mxu1 }
 0x1e1   : > { %v1014_v24 = vadd.f32 %v5837_v21, %v5379_v20  ;;  %v1008_v25 = vpop.f32.mrb[1].mxu1 }
 0x1e2   : > { %v1009_v26 = vadd.f32 %v5379_v20, %v1008_v25  ;;  %v1343_v25 = vld [vmem:[%s10336_s7 + $0x78] sm:$0xff] }
 0x1e3   : > { %v1088_v31 = vmax.f32 %v1014_v24, 0.0  ;;  %v1342_v24 = vld [vmem:[%s10336_s7 + $0x70] sm:$0xff] }
 0x1e4   : > { %v1087_v29 = vmax.f32 %v1009_v26, 0.0  ;;  %v5840_v30 = vpop.f32.mrb[2].mxu1  ;;  %v7309_v26 = vmov 2  }
 0x1e5   : > { %v1024_v33 = vadd.f32 %v5840_v30, %v5379_v20  ;;  %v1018_v40 = vpop.f32.mrb[3].mxu1  ;;  %6416 = vset.pattern.permute.xlu1 %v7309_v26  ;;  %6417 = vset.pattern.permute.xlu0 %v7309_v26  ;;  %v7792_v30 = vpop.permute.xlu1 %2009 }
 0x1e6   : > { %v1019_v41 = vadd.f32 %v5379_v20, %v1018_v40  ;;  %5875 = vmatprep.mubr.msk.f32.mxu0 %vm1118_vm1, %v1087_v29  ;;  %2161 = vperm.xlu1 %6416, %v7534_v14   ;;  %v7310_v29 = vmov 3   ;;  %10421 = vst [vmem:[#allocation15_spill] sm:$0xff] %v7792_v30  ;;  %v8201_v30 = vld [vmem:[%s7531_s24 + $0x60] sm:$0xff] }
 0x1e7   : > { %v1090_v42 = vmax.f32 %v1024_v33, 0.0  ;;  %5876 = vmatmul.mubr.msk.f32.vlgmr.msra.gmra.mrb[16].mxu0 %vm1118_vm1, %v1088_v31  ;;  %2165 = vperm.xlu0 %6417, %v7537_v15   ;;  %v1512_v31 = vld [vmem:[%s10338_s9] sm:$0xff]  ;;  %v1513_v33 = vld [vmem:[%s10338_s9 + $0x8] sm:$0xff] }
 0x1e8   : > { %v1089_v43 = vmax.f32 %v1019_v41, 0.0  ;;  %v5843_v44 = vpop.f32.mrb[4].mxu1  ;;  %v6231_v40 = vpack.c.bf16 %v1513_v33, %v1512_v31 }
 0x1e9   : > { %v1034_v45 = vadd.f32 %v5843_v44, %v5379_v20  ;;  %v1028_v46 = vpop.f32.mrb[5].mxu1  ;;  %v7803_v41 = vpop.permute.xlu1 %2013  ;;  %v1515_v44 = vld [vmem:[%s10338_s9 + $0x18] sm:$0xff] }
 0x1ea   : > { %v1029_v47 = vadd.f32 %v5379_v20, %v1028_v46  ;;  %5878 = vmatprep.mubr.msk.f32.mxu0 %vm1118_vm1, %v1089_v43  ;;  %2169 = vperm.xlu1 %6416, %v7540_v16   ;;  %10422 = vst [vmem:[#allocation16_spill] sm:$0xff] %v7803_v41  ;;  %v1514_v43 = vld [vmem:[%s10338_s9 + $0x10] sm:$0xff] }
 0x1eb   : > { %v1092_v48 = vmax.f32 %v1034_v45, 0.0  ;;  %5879 = vmatmul.mubr.msk.f32.gmra.mrb[18].mxu0 %vm1118_vm1, %v1090_v42  ;;  %2177 = vperm.xlu0 %6417, %v7552_v19   ;;  %v7311_v42 = vmov 4   ;;  %v6235_v45 = vpack.c.bf16 %v1515_v44, %v1514_v43 }
 0x1ec   : > { %v1091_v49 = vmax.f32 %v1029_v47, 0.0  ;;  %v5846_v50 = vpop.f32.mrb[6].mxu1  ;;  %6232 = vmatprep.subr.bf16.mxu0 %v6231_v40  ;;  %v1516_v47 = vld [vmem:[%s10338_s9 + $0x20] sm:$0xff] }
 0x1ed   : > { %v1044_v51 = vadd.f32 %v5846_v50, %v5379_v20  ;;  %v1038_v52 = vpop.f32.mrb[7].mxu1  ;;  %6234 = vmatpush3.bf16.msra.mxu0 %v6231_v40  ;;  %v7813_v46 = vpop.permute.xlu1 %2021 }
 0x1ee   : > { %v1039_v53 = vadd.f32 %v5379_v20, %v1038_v52  ;;  %5881 = vmatprep.mubr.msk.f32.mxu0 %vm1118_vm1, %v1091_v49  ;;  %2173 = vperm.xlu1 %6416, %v7549_v17   ;;  %10423 = vst [vmem:[#allocation17_spill] sm:$0xff] %v7813_v46  ;;  %v1518_v52 = vld [vmem:[%s10338_s9 + $0x30] sm:$0xff]  ;;  %v1745_v46 = vld [vmem:[%s10340_s11 + $0x48] sm:$0xff] }
 0x1ef   : > { %v1094_v54 = vmax.f32 %v1044_v51, 0.0  ;;  %5882 = vmatmul.mubr.msk.f32.gmra.mrb[20].mxu0 %vm1118_vm1, %v1092_v48  ;;  %2185 = vperm.xlu0 %6417, %v7566_v23   ;;  %v1517_v48 = vld [vmem:[%s10338_s9 + $0x28] sm:$0xff] }
 0x1f0   : > { %v1093_v56 = vmax.f32 %v1039_v53, 0.0  ;;  %v5849_v57 = vpop.f32.mrb[8].mxu1  ;;  %6236 = vmatprep.subr.bf16.mxu0 %v6235_v45  ;;  %v6239_v50 = vpack.c.bf16 %v1517_v48, %v1516_v47  ;;  %v1519_v53 = vld [vmem:[%s10338_s9 + $0x38] sm:$0xff] }
 0x1f1   : > { %v1054_v58 = vadd.f32 %v5849_v57, %v5379_v20  ;;  %v1048_v59 = vpop.f32.mrb[9].mxu1  ;;  %6238 = vmatpush3.bf16.msra.mxu0 %v6235_v45  ;;  %v7825_v49 = vpop.permute.xlu1 %2029 }
 0x1f2   : > { %v1049_v60 = vadd.f32 %v5379_v20, %v1048_v59  ;;  %5884 = vmatprep.mubr.msk.f32.mxu0 %vm1118_vm1, %v1093_v56  ;;  %2181 = vperm.xlu1 %6416, %v7561_v22   ;;  %10424 = vst [vmem:[#allocation18_spill] sm:$0xff] %v7825_v49  ;;  %v8121_v49 = vld [vmem:[%s7531_s24 + $0x68] sm:$0xff] }
 0x1f3   : > { %v1096_v55 = vmax.f32 %v1054_v58, 0.0  ;;  %5885 = vmatmul.mubr.msk.f32.gmra.mrb[22].mxu0 %vm1118_vm1, %v1094_v54  ;;  %2193 = vperm.xlu0 %6417, %v7582_v28   ;;  %v6243_v54 = vpack.c.bf16 %v1519_v53, %v1518_v52  ;;  %v7312_v58 = vmov 5  }
 0x1f4   : > { %v1095_v61 = vmax.f32 %v1049_v60, 0.0  ;;  %v5852_v62 = vpop.f32.mrb[10].mxu1  ;;  %6240 = vmatprep.subr.bf16.mxu0 %v6239_v50 }
 0x1f5   : > { %v1064_v63 = vadd.f32 %v5852_v62, %v5379_v20  ;;  %v1058_v0 = vpop.f32.mrb[11].mxu1  ;;  %6242 = vmatpush3.bf16.msra.mxu0 %v6239_v50  ;;  %v7829_v51 = vpop.permute.xlu1 %2037  ;;  %v7875_v62 = vld [vmem:[%s10430_s6] ss:$0 sm:$0xff] }
 0x1f6   : > { %v1059_v1 = vadd.f32 %v5379_v20, %v1058_v0  ;;  %5887 = vmatprep.mubr.msk.f32.mxu0 %vm1118_vm1, %v1095_v61  ;;  %2189 = vperm.xlu1 %6416, %v7577_v27   ;;  %10425 = vst [vmem:[#allocation19_spill] sm:$0xff] %v7829_v51 }
 0x1f7   : > { %v1098_v2 = vmax.f32 %v1064_v63, 0.0  ;;  %5888 = vmatmul.mubr.msk.f32.gmra.mrb[24].mxu0 %vm1118_vm1, %v1096_v55  ;;  %2201 = vperm.xlu0 %6417, %v7600_v34  }
 0x1f8   : > { %v1097_v3 = vmax.f32 %v1059_v1, 0.0  ;;  %v5855_v4 = vpop.f32.mrb[12].mxu1  ;;  %6244 = vmatprep.subr.bf16.mxu0 %v6243_v54 }
 0x1f9   : > { %v1074_v5 = vadd.f32 %v5855_v4, %v5379_v20  ;;  %v1068_v6 = vpop.f32.mrb[13].mxu1  ;;  %v7841_v56 = vpop.permute.xlu1 %2045  ;;  %6246 = vmatpush3.bf16.msra.mxu0 %v6243_v54 }
 0x1fa   : > { %v1069_v7 = vadd.f32 %v5379_v20, %v1068_v6  ;;  %5890 = vmatprep.mubr.msk.f32.mxu0 %vm1118_vm1, %v1097_v3  ;;  %2197 = vperm.xlu1 %6416, %v7597_v32   ;;  %10426 = vst [vmem:[#allocation20_spill] sm:$0xff] %v7841_v56 }
 0x1fb   : > { %v1100_v8 = vmax.f32 %v1074_v5, 0.0  ;;  %5891 = vmatmul.mubr.msk.f32.gmra.mrb[26].mxu0 %vm1118_vm1, %v1098_v2  ;;  %2209 = vperm.xlu0 %6417, %v7610_v36   ;;  %v7313_v5 = vmov 6  }
 0x1fc   : > { %v1099_v9 = vmax.f32 %v1069_v7, 0.0  ;;  %v5858_v10 = vpop.f32.mrb[14].mxu1 }
 0x1fd   : > { %v1084_v11 = vadd.f32 %v5858_v10, %v5379_v20  ;;  %v1078_v12 = vpop.f32.mrb[15].mxu1  ;;  %v7845_v57 = vpop.permute.xlu1 %2053 }
 0x1fe   : > { %v1079_v13 = vadd.f32 %v5379_v20, %v1078_v12  ;;  %5893 = vmatprep.mubr.msk.f32.mxu0 %vm1118_vm1, %v1099_v9  ;;  %v6227_v20 = vpack.c.bf16 %v1343_v25, %v1342_v24  ;;  %2205 = vperm.xlu1 %6416, %v7607_v35   ;;  %10427 = vst [vmem:[#allocation21_spill] sm:$0xff] %v7845_v57  ;;  %v1738_v57 = vld [vmem:[%s10340_s11 + $0x10] sm:$0xff] }
 0x1ff   : > { %v1102_v18 = vmax.f32 %v1084_v11, 0.0  ;;  %5894 = vmatmul.mubr.msk.f32.gmra.mrb[28].mxu0 %vm1118_vm1, %v1100_v8  ;;  %2217 = vperm.xlu0 %6417, %v7620_v38  }
 0x200   : > { %v1101_v21 = vmax.f32 %v1079_v13, 0.0  ;;  %6228 = vmatprep.subr.bf16.mxu1 %v6227_v20 }
 0x201   : > { %6230 = vmatpush3.bf16.msra.mxu1 %v6227_v20  ;;  %v7851_v59 = vpop.permute.xlu1 %2061 }
 0x202   : > { %5896 = vmatprep.mubr.msk.f32.mxu0 %vm1118_vm1, %v1101_v21  ;;  %2213 = vperm.xlu1 %6416, %v7617_v37   ;;  %10428 = vst [vmem:[#allocation22_spill] sm:$0xff] %v7851_v59 }
 0x203   : > { %5897 = vmatmul.mubr.msk.f32.gmra.mrb[30].mxu0 %vm1118_vm1, %v1102_v18  ;;  %6418 = vset.pattern.permute.xlu0 %v7310_v29 }
 0x204   : > { %2241 = vperm.xlu0 %6418, %v7534_v14  }
 0x205   : > { %v7855_v60 = vpop.permute.xlu1 %2085 }
 0x206   : > { %2221 = vperm.xlu1 %6416, %v7627_v39  }
 0x208   : > { %2253 = vperm.xlu0 %6418, %v7549_v17  }
 0x209   : > { %v7860_v55 = vpop.permute.xlu1 %2089 }
 0x20a   : > { %6419 = vset.pattern.permute.xlu1 %v7310_v29 }
 0x20b   : > { %2245 = vperm.xlu1 %6419, %v7537_v15  }
 0x20c   : > { %2261 = vperm.xlu0 %6418, %v7561_v22  }
 0x20d   : > { %v7865_v61 = vpop.permute.xlu1 %2097 }
 0x20e   : > { %10429 = vst [vmem:[#allocation23_spill] sm:$0xff] %v7865_v61 }
 0x20f   : > { %2249 = vperm.xlu1 %6419, %v7540_v16  }
 0x210   : > { %2269 = vperm.xlu0 %6418, %v7577_v27  }
 0x211   : > { %v7879_v0 = vpop.permute.xlu1 %2105 }
 0x212   : > { %10431 = vst [vmem:[#allocation24_spill] sm:$0xff] %v7879_v0 }
 0x213   : > { %2257 = vperm.xlu1 %6419, %v7552_v19  }
 0x214   : > { %2277 = vperm.xlu0 %6418, %v7597_v32  }
 0x215   : > { %v7894_v11 = vpop.permute.xlu1 %2113 }
 0x216   : > { %10432 = vst [vmem:[#allocation25_spill] sm:$0xff] %v7894_v11 }
 0x217   : > { %2265 = vperm.xlu1 %6419, %v7566_v23  }
 0x218   : > { %2285 = vperm.xlu0 %6418, %v7607_v35  }
 0x219   : > { %v7902_v29 = vpop.permute.xlu1 %2121 }
 0x21a   : > { %10433 = vst [vmem:[#allocation26_spill] sm:$0xff] %v7902_v29  ;;  %v10489_v29 = vmov 15  }
 0x21b   : > { %2273 = vperm.xlu1 %6419, %v7582_v28  }
 0x21c   : > { %2293 = vperm.xlu0 %6418, %v7617_v37  }
 0x21d   : > { %v7915_v47 = vpop.permute.xlu1 %2129 }
 0x21e   : > { %10434 = vst [vmem:[#allocation27_spill] sm:$0xff] %v7915_v47 }
 0x21f   : > { %2281 = vperm.xlu1 %6419, %v7600_v34  }
 0x220   : > { %2301 = vperm.xlu0 %6418, %v7627_v39  }
 0x223   : > { %2289 = vperm.xlu1 %6419, %v7610_v36  }
 0x224   : > { %6421 = vset.pattern.permute.xlu0 %v7311_v42 }
 0x225   : > { %2325 = vperm.xlu0 %6421, %v7537_v15  }
 0x227   : > { %2297 = vperm.xlu1 %6419, %v7620_v38  }
 0x229   : > { %2337 = vperm.xlu0 %6421, %v7552_v19  }
 0x22b   : > { %6420 = vset.pattern.permute.xlu1 %v7311_v42 }
 0x22c   : > { %2321 = vperm.xlu1 %6420, %v7534_v14  }
 0x22d   : > { %2345 = vperm.xlu0 %6421, %v7566_v23  }
 0x230   : > { %2329 = vperm.xlu1 %6420, %v7540_v16  }
 0x231   : > { %2353 = vperm.xlu0 %6421, %v7582_v28  }
 0x234   : > { %2333 = vperm.xlu1 %6420, %v7549_v17  }
 0x235   : > { %2361 = vperm.xlu0 %6421, %v7600_v34  }
 0x238   : > { %2341 = vperm.xlu1 %6420, %v7561_v22  }
 0x239   : > { %2369 = vperm.xlu0 %6421, %v7610_v36  }
 0x23c   : > { %2349 = vperm.xlu1 %6420, %v7577_v27  }
 0x23d   : > { %2377 = vperm.xlu0 %6421, %v7620_v38  }
 0x240   : > { %2357 = vperm.xlu1 %6420, %v7597_v32  }
 0x241   : > { %6422 = vset.pattern.permute.xlu0 %v7312_v58 }
 0x242   : > { %2401 = vperm.xlu0 %6422, %v7534_v14  }
 0x244   : > { %2365 = vperm.xlu1 %6420, %v7607_v35  }
 0x246   : > { %2413 = vperm.xlu0 %6422, %v7549_v17  }
 0x248   : > { %2373 = vperm.xlu1 %6420, %v7617_v37  }
 0x24a   : > { %2421 = vperm.xlu0 %6422, %v7561_v22  }
 0x24c   : > { %2381 = vperm.xlu1 %6420, %v7627_v39  }
 0x24e   : > { %2429 = vperm.xlu0 %6422, %v7577_v27  }
 0x250   : > { %6423 = vset.pattern.permute.xlu1 %v7312_v58 }
 0x251   : > { %2405 = vperm.xlu1 %6423, %v7537_v15  }
 0x252   : > { %2437 = vperm.xlu0 %6422, %v7597_v32  }
 0x255   : > { %2409 = vperm.xlu1 %6423, %v7540_v16  }
 0x256   : > { %2445 = vperm.xlu0 %6422, %v7607_v35  }
 0x259   : > { %2417 = vperm.xlu1 %6423, %v7552_v19  }
 0x25a   : > { %2453 = vperm.xlu0 %6422, %v7617_v37  }
 0x25d   : > { %2425 = vperm.xlu1 %6423, %v7566_v23  }
 0x25e   : > { %2461 = vperm.xlu0 %6422, %v7627_v39  }
 0x261   : > { %2433 = vperm.xlu1 %6423, %v7582_v28  }
 0x262   : > { %6425 = vset.pattern.permute.xlu0 %v7313_v5 }
 0x263   : > { %2485 = vperm.xlu0 %6425, %v7537_v15  }
 0x265   : > { %2441 = vperm.xlu1 %6423, %v7600_v34  }
 0x267   : > { %2497 = vperm.xlu0 %6425, %v7552_v19  }
 0x269   : > { %2449 = vperm.xlu1 %6423, %v7610_v36  }
 0x26b   : > { %2505 = vperm.xlu0 %6425, %v7566_v23  }
 0x26d   : > { %2457 = vperm.xlu1 %6423, %v7620_v38  }
 0x271   : > { %6424 = vset.pattern.permute.xlu1 %v7313_v5 }
 0x272   : > { %2481 = vperm.xlu1 %6424, %v7534_v14  }
 0x276   : > { %2489 = vperm.xlu1 %6424, %v7540_v16  }
 0x27a   : > { %2493 = vperm.xlu1 %6424, %v7549_v17  }
 0x27e   : > { %2501 = vperm.xlu1 %6424, %v7561_v22  }
 0x282   : > { %2509 = vperm.xlu1 %6424, %v7577_v27  }
 0x286   : > { %2517 = vperm.xlu1 %6424, %v7597_v32  }
 0x28a   : > { %2525 = vperm.xlu1 %6424, %v7607_v35  }
 0x28e   : > { %2533 = vperm.xlu1 %6424, %v7617_v37  }
 0x292   : > { %2541 = vperm.xlu1 %6424, %v7627_v39  }
 0x2ba   : > { %v5877_v63 = vpop.f32.mrb[16].mxu0 }
 0x2bb   : > { %v1239_v1 = vadd.f32 %v5877_v63, %v7875_v62  ;;  %v1233_v2 = vpop.f32.mrb[17].mxu0 }
 0x2bc   : > { %v1234_v3 = vadd.f32 %v7875_v62, %v1233_v2 }
 0x2bd   : > { %v1313_v4 = vmax.f32 %v1239_v1, 0.0  ;;  %v7922_v1 = vpop.permute.xlu1 %2137 }
 0x2be   : > { %v1312_v6 = vmax.f32 %v1234_v3, 0.0  ;;  %v5880_v7 = vpop.f32.mrb[18].mxu0  ;;  %10435 = vst [vmem:[#allocation28_spill] sm:$0xff] %v7922_v1 }
 0x2bf   : > { %5158 = vst [vmem:[%s7887_s23 + $0x8] sm:$0xff] %v1313_v4  ;;  %v1249_v8 = vadd.f32 %v5880_v7, %v7875_v62  ;;  %v1243_v9 = vpop.f32.mrb[19].mxu0 }
 0x2c0   : > { %5157 = vst [vmem:[%s7887_s23] sm:$0xff] %v1312_v6  ;;  %v1244_v10 = vadd.f32 %v7875_v62, %v1243_v9  ;;  %5931 = vmatprep.mubr.f32.mxu1 %v1312_v6 }
 0x2c1   : > { %v1315_v15 = vmax.f32 %v1249_v8, 0.0  ;;  %5932 = vmatmul.mubr.f32.vlgmr.msra.gmra.mrb[16].mxu1 %v1313_v4 }
 0x2c2   : > { %v1314_v12 = vmax.f32 %v1244_v10, 0.0  ;;  %v5883_v13 = vpop.f32.mrb[20].mxu0  ;;  %v7934_v10 = vpop.permute.xlu1 %2161 }
 0x2c3   : > { %5160 = vst [vmem:[%s7887_s23 + $0x18] sm:$0xff] %v1315_v15  ;;  %v1259_v18 = vadd.f32 %v5883_v13, %v7875_v62  ;;  %v1253_v21 = vpop.f32.mrb[21].mxu0  ;;  %v7314_v13 = vmov 7  }
 0x2c4   : > { %5159 = vst [vmem:[%s7887_s23 + $0x10] sm:$0xff] %v1314_v12  ;;  %v1254_v24 = vadd.f32 %v7875_v62, %v1253_v21  ;;  %5934 = vmatprep.mubr.f32.mxu1 %v1314_v12  ;;  %6427 = vset.pattern.permute.xlu1 %v7314_v13 }
 0x2c5   : > { %v1317_v25 = vmax.f32 %v1259_v18, 0.0  ;;  %5935 = vmatmul.mubr.f32.gmra.mrb[18].mxu1 %v1315_v15  ;;  %v7950_v18 = vld [vmem:[%s7531_s24 + $0x8] sm:$0xff] }
 0x2c6   : > { %v1316_v26 = vmax.f32 %v1254_v24, 0.0  ;;  %v5886_v20 = vpop.f32.mrb[22].mxu0  ;;  %v7939_v12 = vpop.permute.xlu1 %2169  ;;  %2565 = vperm.xlu1 %6427, %v7950_v18   ;;  %v7956_v24 = vld [vmem:[%s7531_s24 + $0x10] sm:$0xff] }
 0x2c7   : > { %5162 = vst [vmem:[%s7887_s23 + $0x28] sm:$0xff] %v1317_v25  ;;  %v1269_v19 = vadd.f32 %v5886_v20, %v7875_v62  ;;  %v1263_v31 = vpop.f32.mrb[23].mxu0  ;;  %v7966_v20 = vld [vmem:[%s7531_s24 + $0x30] sm:$0xff] }
 0x2c8   : > { %5161 = vst [vmem:[%s7887_s23 + $0x20] sm:$0xff] %v1316_v26  ;;  %v1264_v33 = vadd.f32 %v7875_v62, %v1263_v31  ;;  %5937 = vmatprep.mubr.f32.mxu1 %v1316_v26 }
 0x2c9   : > { %v1319_v40 = vmax.f32 %v1269_v19, 0.0  ;;  %5938 = vmatmul.mubr.f32.gmra.mrb[20].mxu1 %v1317_v25  ;;  %v7960_v25 = vld [vmem:[%s7531_s24 + $0x20] sm:$0xff] }
 0x2ca   : > { %v1318_v42 = vmax.f32 %v1264_v33, 0.0  ;;  %v5889_v43 = vpop.f32.mrb[24].mxu0  ;;  %v7943_v27 = vpop.permute.xlu1 %2173  ;;  %2569 = vperm.xlu1 %6427, %v7956_v24  }
 0x2cb   : > { %5164 = vst [vmem:[%s7887_s23 + $0x38] sm:$0xff] %v1319_v40  ;;  %v1279_v23 = vadd.f32 %v5889_v43, %v7875_v62  ;;  %v1273_v44 = vpop.f32.mrb[25].mxu0  ;;  %v7983_v43 = vld [vmem:[%s7531_s24] sm:$0xff] }
 0x2cc   : > { %5163 = vst [vmem:[%s7887_s23 + $0x30] sm:$0xff] %v1318_v42  ;;  %v1274_v45 = vadd.f32 %v7875_v62, %v1273_v44  ;;  %5940 = vmatprep.mubr.f32.mxu1 %v1318_v42  ;;  %v10374_v42 = vmov 8  }
 0x2cd   : > { %v1321_v48 = vmax.f32 %v1279_v23, 0.0  ;;  %5941 = vmatmul.mubr.f32.gmra.mrb[22].mxu1 %v1319_v40  ;;  %v7990_v23 = vld [vmem:[%s7531_s24 + $0x18] sm:$0xff] }
 0x2ce   : > { %v1320_v14 = vmax.f32 %v1274_v45, 0.0  ;;  %v5892_v50 = vpop.f32.mrb[26].mxu0  ;;  %2577 = vperm.xlu1 %6427, %v7960_v25   ;;  %v7996_v45 = vld [vmem:[%s7531_s24 + $0x28] sm:$0xff] }
 0x2cf   : > { %5166 = vst [vmem:[%s7887_s23 + $0x48] sm:$0xff] %v1321_v48  ;;  %v1289_v52 = vadd.f32 %v5892_v50, %v7875_v62  ;;  %v1283_v53 = vpop.f32.mrb[27].mxu0 }
 0x2d0   : > { %5165 = vst [vmem:[%s7887_s23 + $0x40] sm:$0xff] %v1320_v14  ;;  %v1284_v54 = vadd.f32 %v7875_v62, %v1283_v53  ;;  %5943 = vmatprep.mubr.f32.mxu1 %v1320_v14  ;;  %v8002_v14 = vld [vmem:[%s7531_s24 + $0x38] sm:$0xff] }
 0x2d1   : > { %v1323_v58 = vmax.f32 %v1289_v52, 0.0  ;;  %5944 = vmatmul.mubr.f32.gmra.mrb[24].mxu1 %v1321_v48 }
 0x2d2   : > { %v1322_v16 = vmax.f32 %v1284_v54, 0.0  ;;  %v5895_v63 = vpop.f32.mrb[28].mxu0  ;;  %2585 = vperm.xlu1 %6427, %v7966_v20  }
 0x2d3   : > { %5168 = vst [vmem:[%s7887_s23 + $0x58] sm:$0xff] %v1323_v58  ;;  %v1299_v2 = vadd.f32 %v5895_v63, %v7875_v62  ;;  %v1293_v3 = vpop.f32.mrb[29].mxu0  ;;  %v8027_v63 = vld [vmem:[%s7531_s24 + $0x40] sm:$0xff] }
 0x2d4   : > { %5167 = vst [vmem:[%s7887_s23 + $0x50] sm:$0xff] %v1322_v16  ;;  %v1294_v4 = vadd.f32 %v7875_v62, %v1293_v3  ;;  %5946 = vmatprep.mubr.f32.mxu1 %v1322_v16  ;;  %v10366_v16 = vmov 9  }
 0x2d5   : > { %v1325_v17 = vmax.f32 %v1299_v2, 0.0  ;;  %5947 = vmatmul.mubr.f32.gmra.mrb[26].mxu1 %v1323_v58 }
 0x2d6   : > { %v1324_v5 = vmax.f32 %v1294_v4, 0.0  ;;  %v5898_v6 = vpop.f32.mrb[30].mxu0  ;;  %2593 = vperm.xlu1 %6427, %v7582_v28  }
 0x2d7   : > { %5170 = vst [vmem:[%s7887_s23 + $0x68] sm:$0xff] %v1325_v17  ;;  %v1309_v7 = vadd.f32 %v5898_v6, %v7875_v62  ;;  %v1303_v8 = vpop.f32.mrb[31].mxu0 }
 0x2d8   : > { %5169 = vst [vmem:[%s7887_s23 + $0x60] sm:$0xff] %v1324_v5  ;;  %v1304_v9 = vadd.f32 %v7875_v62, %v1303_v8  ;;  %5949 = vmatprep.mubr.f32.mxu1 %v1324_v5  ;;  %v7946_v62 = vpop.permute.xlu1 %2181 }
 0x2d9   : > { %v1327_v15 = vmax.f32 %v1309_v7, 0.0  ;;  %5950 = vmatmul.mubr.f32.gmra.mrb[28].mxu1 %v1325_v17  ;;  %10436 = vst [vmem:[#allocation29_spill] sm:$0xff] %v7946_v62  ;;  %v10372_v17 = vmov 10   ;;  %v10370_v7 = vmov 11  }
 0x2da   : > { %v1326_v22 = vmax.f32 %v1304_v9, 0.0  ;;  %2601 = vperm.xlu1 %6427, %v7600_v34   ;;  %v10368_v9 = vmov 12  }
 0x2db   : > { %5172 = vst [vmem:[%s7887_s23 + $0x78] sm:$0xff] %v1327_v15 }
 0x2dc   : > { %5171 = vst [vmem:[%s7887_s23 + $0x70] sm:$0xff] %v1326_v22  ;;  %5952 = vmatprep.mubr.f32.mxu1 %v1326_v22  ;;  %v7953_v21 = vpop.permute.xlu1 %2189 }
 0x2dd   : > { %5953 = vmatmul.mubr.f32.gmra.mrb[30].mxu1 %v1327_v15  ;;  %10437 = vst [vmem:[#allocation30_spill] sm:$0xff] %v7953_v21 }
 0x2de   : > { %2609 = vperm.xlu1 %6427, %v7610_v36  }
 0x2e0   : > { %v7963_v26 = vpop.permute.xlu1 %2197 }
 0x2e1   : > { %10438 = vst [vmem:[#allocation31_spill] sm:$0xff] %v7963_v26 }
 0x2e2   : > { %2617 = vperm.xlu1 %6427, %v7620_v38  }
 0x2e4   : > { %v7969_v19 = vpop.permute.xlu1 %2205 }
 0x2e5   : > { %10439 = vst [vmem:[#allocation32_spill] sm:$0xff] %v7969_v19  ;;  %v8210_v19 = vld [vmem:[%s7531_s24 + $0x70] sm:$0xff] }
 0x2e6   : > { %6428 = vset.pattern.permute.xlu1 %v10374_v42  ;;  %v10375_v42 = vmov 13  }
 0x2e7   : > { %2641 = vperm.xlu1 %6428, %v7983_v43  }
 0x2e8   : > { %v7973_v31 = vpop.permute.xlu1 %2213 }
 0x2e9   : > { %10440 = vst [vmem:[#allocation33_spill] sm:$0xff] %v7973_v31  ;;  %v10471_v31 = vmov 10  }
 0x2eb   : > { %2649 = vperm.xlu1 %6428, %v7956_v24  }
 0x2ec   : > { %v7976_v33 = vpop.permute.xlu1 %2221 }
 0x2ed   : > { %10441 = vst [vmem:[#allocation34_spill] sm:$0xff] %v7976_v33  ;;  %v1744_v33 = vld [vmem:[%s10340_s11 + $0x40] sm:$0xff] }
 0x2ef   : > { %2653 = vperm.xlu1 %6428, %v7990_v23  }
 0x2f0   : > { %v7979_v40 = vpop.permute.xlu1 %2245 }
 0x2f3   : > { %2661 = vperm.xlu1 %6428, %v7996_v45  }
 0x2f4   : > { %v7987_v28 = vpop.permute.xlu1 %2249 }
 0x2f7   : > { %2669 = vperm.xlu1 %6428, %v8002_v14  }
 0x2f8   : > { %v7993_v44 = vpop.permute.xlu1 %2257 }
 0x2f9   : > { %10442 = vst [vmem:[#allocation35_spill] sm:$0xff] %v7993_v44 }
 0x2fb   : > { %2677 = vperm.xlu1 %6428, %v7597_v32  }
 0x2fc   : > { %v7999_v48 = vpop.permute.xlu1 %2265 }
 0x2fd   : > { %10443 = vst [vmem:[#allocation36_spill] sm:$0xff] %v7999_v48 }
 0x2ff   : > { %2685 = vperm.xlu1 %6428, %v7607_v35   ;;  %v8024_v35 = vpop.permute.xlu0 %2001  ;;  %2513 = vperm.xlu0 %6425, %v8027_v63  }
 0x300   : > { %v8005_v50 = vpop.permute.xlu1 %2273  ;;  %10448 = vst [vmem:[#allocation41_spill] sm:$0xff] %v8024_v35 }
 0x301   : > { %10444 = vst [vmem:[#allocation37_spill] sm:$0xff] %v8005_v50 }
 0x303   : > { %2693 = vperm.xlu1 %6428, %v7617_v37  }
 0x304   : > { %v8008_v52 = vpop.permute.xlu1 %2281 }
 0x305   : > { %10445 = vst [vmem:[#allocation38_spill] sm:$0xff] %v8008_v52  ;;  %v10485_v52 = vmov 14  }
 0x307   : > { %2701 = vperm.xlu1 %6428, %v7627_v39   ;;  %v8033_v39 = vpop.permute.xlu0 %2005  ;;  %2521 = vperm.xlu0 %6425, %v7600_v34  }
 0x308   : > { %v8011_v53 = vpop.permute.xlu1 %2289  ;;  %10449 = vst [vmem:[#allocation42_spill] sm:$0xff] %v8033_v39 }
 0x309   : > { %10446 = vst [vmem:[#allocation39_spill] sm:$0xff] %v8011_v53  ;;  %v10470_v53 = vmov 8  }
 0x30b   : > { %6431 = vset.pattern.permute.xlu1 %v10366_v16  ;;  %v8039_v3 = vpop.permute.xlu0 %2017  ;;  %2529 = vperm.xlu0 %6425, %v7610_v36   ;;  %v1737_v16 = vld [vmem:[%s10340_s11 + $0x8] sm:$0xff] }
 0x30c   : > { %v8014_v54 = vpop.permute.xlu1 %2297  ;;  %2725 = vperm.xlu1 %6431, %v7950_v18   ;;  %10451 = vst [vmem:[#allocation44_spill] sm:$0xff] %v8039_v3 }
 0x30d   : > { %10447 = vst [vmem:[#allocation40_spill] sm:$0xff] %v8014_v54  ;;  %v8136_v54 = vld [vmem:[%s7531_s24 + $0x78] sm:$0xff] }
 0x30f   : > { %v8045_v5 = vpop.permute.xlu0 %2025  ;;  %2537 = vperm.xlu0 %6425, %v7620_v38  }
 0x310   : > { %v8017_v58 = vpop.permute.xlu1 %2321  ;;  %2729 = vperm.xlu1 %6431, %v7956_v24   ;;  %10453 = vst [vmem:[#allocation46_spill] sm:$0xff] %v8045_v5  ;;  %v1742_v5 = vld [vmem:[%s10340_s11 + $0x30] sm:$0xff] }
 0x313   : > { %v8051_v6 = vpop.permute.xlu0 %2033  ;;  %6426 = vset.pattern.permute.xlu0 %v7314_v13  ;;  %v1736_v13 = vld [vmem:[%s10340_s11] sm:$0xff] }
 0x314   : > { %v8021_v32 = vpop.permute.xlu1 %2329  ;;  %2737 = vperm.xlu1 %6431, %v7960_v25   ;;  %10455 = vst [vmem:[#allocation48_spill] sm:$0xff] %v8051_v6  ;;  %2561 = vperm.xlu0 %6426, %v7983_v43  }
 0x317   : > { %v8059_v8 = vpop.permute.xlu0 %2041 }
 0x318   : > { %v8030_v37 = vpop.permute.xlu1 %2333  ;;  %2745 = vperm.xlu1 %6431, %v7966_v20   ;;  %10457 = vst [vmem:[#allocation50_spill] sm:$0xff] %v8059_v8  ;;  %2573 = vperm.xlu0 %6426, %v7990_v23   ;;  %v8106_v8 = vld [vmem:[%s7531_s24 + $0x58] sm:$0xff] }
 0x31b   : > { %v8066_v15 = vpop.permute.xlu0 %2049 }
 0x31c   : > { %v8036_v2 = vpop.permute.xlu1 %2341  ;;  %6432 = vset.pattern.permute.xlu1 %v10372_v17  ;;  %10459 = vst [vmem:[#allocation52_spill] sm:$0xff] %v8066_v15  ;;  %2581 = vperm.xlu0 %6426, %v7996_v45  }
 0x31d   : > { %10450 = vst [vmem:[#allocation43_spill] sm:$0xff] %v8036_v2  ;;  %2805 = vperm.xlu1 %6432, %v7950_v18  }
 0x320   : > { %v8042_v4 = vpop.permute.xlu1 %2349 }
 0x321   : > { %10452 = vst [vmem:[#allocation45_spill] sm:$0xff] %v8042_v4  ;;  %6433 = vset.pattern.permute.xlu1 %v10370_v7  ;;  %v6247_v7 = vpack.c.bf16 %v1737_v16, %v1736_v13  ;;  %v1739_v16 = vld [vmem:[%s10340_s11 + $0x18] sm:$0xff] }
 0x322   : > { %2881 = vperm.xlu1 %6433, %v7983_v43  }
 0x323   : > { %6248 = vmatprep.subr.bf16.mxu1 %v6247_v7 }
 0x324   : > { %v8049_v34 = vpop.permute.xlu1 %2357  ;;  %6250 = vmatpush3.bf16.msra.mxu1 %v6247_v7  ;;  %v6251_v7 = vpack.c.bf16 %v1739_v16, %v1738_v57  ;;  %v1740_v57 = vld [vmem:[%s10340_s11 + $0x20] sm:$0xff]  ;;  %v1741_v16 = vld [vmem:[%s10340_s11 + $0x28] sm:$0xff] }
 0x325   : > { %10454 = vst [vmem:[#allocation47_spill] sm:$0xff] %v8049_v34 }
 0x326   : > { %6434 = vset.pattern.permute.xlu1 %v10368_v9  ;;  %v8078_v9 = vpop.permute.xlu0 %2057  ;;  %2589 = vperm.xlu0 %6426, %v8002_v14  }
 0x327   : > { %2961 = vperm.xlu1 %6434, %v7983_v43   ;;  %10461 = vst [vmem:[#allocation54_spill] sm:$0xff] %v8078_v9  ;;  %v8096_v9 = vld [vmem:[%s7531_s24 + $0x48] sm:$0xff]  ;;  %6252 = vmatprep.subr.bf16.mxu1 %v6251_v7 }
 0x328   : > { %v8055_v36 = vpop.permute.xlu1 %2365  ;;  %6254 = vmatpush3.bf16.msra.mxu1 %v6251_v7  ;;  %v10379_v7 = vmov 15  }
 0x329   : > { %10456 = vst [vmem:[#allocation49_spill] sm:$0xff] %v8055_v36 }
 0x32a   : > { %v8085_v59 = vpop.permute.xlu0 %2081  ;;  %2597 = vperm.xlu0 %6426, %v8096_v9  }
 0x32b   : > { %2965 = vperm.xlu1 %6434, %v7950_v18  }
 0x32c   : > { %v8061_v38 = vpop.permute.xlu1 %2373 }
 0x32d   : > { %10458 = vst [vmem:[#allocation51_spill] sm:$0xff] %v8061_v38 }
 0x32e   : > { %v8100_v15 = vpop.permute.xlu0 %2093  ;;  %2605 = vperm.xlu0 %6426, %v8106_v8  }
 0x32f   : > { %6435 = vset.pattern.permute.xlu1 %v10375_v42  ;;  %v10377_v42 = vmov 14  }
 0x330   : > { %v8068_v22 = vpop.permute.xlu1 %2381  ;;  %3045 = vperm.xlu1 %6435, %v7950_v18  }
 0x331   : > { %10460 = vst [vmem:[#allocation53_spill] sm:$0xff] %v8068_v22 }
 0x332   : > { %v8115_v51 = vpop.permute.xlu0 %2101  ;;  %2613 = vperm.xlu0 %6426, %v8121_v49  }
 0x333   : > { %10464 = vst [vmem:[#allocation57_spill] sm:$0xff] %v8115_v51 }
 0x334   : > { %v8080_v17 = vpop.permute.xlu1 %2405  ;;  %6436 = vset.pattern.permute.xlu1 %v10377_v42  ;;  %v6255_v42 = vpack.c.bf16 %v1741_v16, %v1740_v57  ;;  %v1743_v57 = vld [vmem:[%s10340_s11 + $0x38] sm:$0xff] }
 0x335   : > { %3121 = vperm.xlu1 %6436, %v7983_v43   ;;  %v6259_v16 = vpack.c.bf16 %v1743_v57, %v1742_v5  ;;  %v1746_v5 = vld [vmem:[%s10340_s11 + $0x50] sm:$0xff]  ;;  %v1747_v57 = vld [vmem:[%s10340_s11 + $0x58] sm:$0xff] }
 0x336   : > { %6256 = vmatprep.subr.bf16.mxu1 %v6255_v42  ;;  %v8131_v22 = vpop.permute.xlu0 %2109  ;;  %2621 = vperm.xlu0 %6426, %v8136_v54   ;;  %v6267_v1 = vpack.c.bf16 %v1747_v57, %v1746_v5  ;;  %v10474_v57 = vmov 11  }
 0x337   : > { %6258 = vmatpush3.bf16.msra.mxu1 %v6255_v42  ;;  %10466 = vst [vmem:[#allocation59_spill] sm:$0xff] %v8131_v22  ;;  %v6263_v42 = vpack.c.bf16 %v1745_v46, %v1744_v33  ;;  %v1748_v46 = vld [vmem:[%s10340_s11 + $0x60] sm:$0xff]  ;;  %v1749_v33 = vld [vmem:[%s10340_s11 + $0x68] sm:$0xff] }
 0x338   : > { %v8093_v13 = vpop.permute.xlu1 %2409  ;;  %6260 = vmatprep.subr.bf16.mxu1 %v6259_v16  ;;  %v6271_v5 = vpack.c.bf16 %v1749_v33, %v1748_v46  ;;  %v10477_v46 = vmov 12  }
 0x339   : > { %10462 = vst [vmem:[#allocation55_spill] sm:$0xff] %v8093_v13  ;;  %6437 = vset.pattern.permute.xlu1 %v10379_v7 }
 0x33a   : > { %3201 = vperm.xlu1 %6437, %v7983_v43   ;;  %v8152_v3 = vpop.permute.xlu0 %2117  ;;  %6429 = vset.pattern.permute.xlu0 %v10470_v53 }
 0x33b   : > { %6262 = vmatpush3.bf16.msra.mxu1 %v6259_v16  ;;  %10468 = vst [vmem:[#allocation61_spill] sm:$0xff] %v8152_v3  ;;  %2645 = vperm.xlu0 %6429, %v7950_v18  }
 0x33c   : > { %v8103_v56 = vpop.permute.xlu1 %2417  ;;  %6264 = vmatprep.subr.bf16.mxu1 %v6263_v42 }
 0x33d   : > { %10463 = vst [vmem:[#allocation56_spill] sm:$0xff] %v8103_v56 }
 0x33e   : > { %3205 = vperm.xlu1 %6437, %v7950_v18   ;;  %v8166_v16 = vpop.permute.xlu0 %2125 }
 0x33f   : > { %6266 = vmatpush3.bf16.msra.mxu1 %v6263_v42  ;;  %10472 = vst [vmem:[#allocation63_spill] sm:$0xff] %v8166_v16  ;;  %2657 = vperm.xlu0 %6429, %v7960_v25   ;;  %v10488_v16 = vmov 9  }
 0x340   : > { %v8118_v6 = vpop.permute.xlu1 %2425  ;;  %6268 = vmatprep.subr.bf16.mxu1 %v6267_v1 }
 0x341   : > { %10465 = vst [vmem:[#allocation58_spill] sm:$0xff] %v8118_v6 }
 0x342   : > { %6438 = vset.pattern.permute.xlu1 %v10471_v31  ;;  %v8173_v42 = vpop.permute.xlu0 %2133 }
 0x343   : > { %2813 = vperm.xlu1 %6438, %v7990_v23   ;;  %6270 = vmatpush3.bf16.msra.mxu1 %v6267_v1  ;;  %10475 = vst [vmem:[#allocation65_spill] sm:$0xff] %v8173_v42  ;;  %v8191_v42 = vld [vmem:[%s7531_s24 + $0x50] sm:$0xff]  ;;  %s7328_s24 = smov 96  }
 0x344   : > { %v8133_v7 = vpop.permute.xlu1 %2433  ;;  %6272 = vmatprep.subr.bf16.mxu1 %v6271_v5  ;;  %2665 = vperm.xlu0 %6429, %v7966_v20  }
 0x345   : > { %10467 = vst [vmem:[#allocation60_spill] sm:$0xff] %v8133_v7 }
 0x346   : > { %v8179_v33 = vpop.permute.xlu0 %2141 }
 0x347   : > { %6439 = vset.pattern.permute.xlu1 %v10474_v57  ;;  %6274 = vmatpush3.bf16.msra.mxu1 %v6271_v5  ;;  %10478 = vst [vmem:[#allocation67_spill] sm:$0xff] %v8179_v33  ;;  %v10481_v33 = vmov 13  }
 0x348   : > { %v8154_v38 = vpop.permute.xlu1 %2441  ;;  %2889 = vperm.xlu1 %6439, %v7956_v24   ;;  %2673 = vperm.xlu0 %6429, %v8027_v63  }
 0x349   : > { %10469 = vst [vmem:[#allocation62_spill] sm:$0xff] %v8154_v38 }
 0x34a   : > { %v8185_v1 = vpop.permute.xlu0 %2165 }
 0x34c   : > { %v8168_v53 = vpop.permute.xlu1 %2449  ;;  %6440 = vset.pattern.permute.xlu1 %v10477_v46  ;;  %2681 = vperm.xlu0 %6429, %v8191_v42  }
 0x34d   : > { %10473 = vst [vmem:[#allocation64_spill] sm:$0xff] %v8168_v53  ;;  %2969 = vperm.xlu1 %6440, %v7956_v24  }
 0x34e   : > { %v8194_v5 = vpop.permute.xlu0 %2177 }
 0x34f   : > { %10480 = vst [vmem:[#allocation69_spill] sm:$0xff] %v8194_v5 }
 0x350   : > { %v8175_v47 = vpop.permute.xlu1 %2457  ;;  %2689 = vperm.xlu0 %6429, %v8201_v30  }
 0x351   : > { %10476 = vst [vmem:[#allocation66_spill] sm:$0xff] %v8175_v47  ;;  %2973 = vperm.xlu1 %6440, %v7990_v23  }
 0x352   : > { %v8204_v38 = vpop.permute.xlu0 %2185 }
 0x353   : > { %10483 = vst [vmem:[#allocation71_spill] sm:$0xff] %v8204_v38 }
 0x354   : > { %v8182_v53 = vpop.permute.xlu1 %2481  ;;  %2697 = vperm.xlu0 %6429, %v8210_v19  }
 0x355   : > { %6441 = vset.pattern.permute.xlu1 %v10481_v33 }
 0x356   : > { %3053 = vperm.xlu1 %6441, %v7990_v23   ;;  %v8214_v35 = vpop.permute.xlu0 %2193 }
 0x357   : > { %10486 = vst [vmem:[#allocation73_spill] sm:$0xff] %v8214_v35 }
 0x358   : > { %v8188_v47 = vpop.permute.xlu1 %2489  ;;  %6430 = vset.pattern.permute.xlu0 %v10488_v16 }
 0x359   : > { %10479 = vst [vmem:[#allocation68_spill] sm:$0xff] %v8188_v47  ;;  %2721 = vperm.xlu0 %6430, %v7983_v43  }
 0x35a   : > { %6442 = vset.pattern.permute.xlu1 %v10485_v52  ;;  %v8222_v7 = vpop.permute.xlu0 %2201 }
 0x35b   : > { %3129 = vperm.xlu1 %6442, %v7956_v24   ;;  %10490 = vst [vmem:[#allocation75_spill] sm:$0xff] %v8222_v7  ;;  %v8242_v7 = vld [vmem:[%s10337_s8] ss:$0 sm:$0xff] }
 0x35c   : > { %v8197_v41 = vpop.permute.xlu1 %2493 }
 0x35d   : > { %10482 = vst [vmem:[#allocation70_spill] sm:$0xff] %v8197_v41  ;;  %2733 = vperm.xlu0 %6430, %v7990_v23  }
 0x35e   : > { %v8228_v50 = vpop.permute.xlu0 %2209 }
 0x35f   : > { %6443 = vset.pattern.permute.xlu1 %v10489_v29  ;;  %10492 = vst [vmem:[#allocation77_spill] sm:$0xff] %v8228_v50 }
 0x360   : > { %v8206_v36 = vpop.permute.xlu1 %2501  ;;  %3209 = vperm.xlu1 %6443, %v7956_v24  }
 0x361   : > { %10484 = vst [vmem:[#allocation72_spill] sm:$0xff] %v8206_v36  ;;  %2741 = vperm.xlu0 %6430, %v7996_v45  }
 0x362   : > { %v8234_v35 = vpop.permute.xlu0 %2217 }
 0x363   : > { %10494 = vst [vmem:[#allocation79_spill] sm:$0xff] %v8234_v35 }
 0x364   : > { %v8216_v39 = vpop.permute.xlu1 %2509  ;;  %3213 = vperm.xlu1 %6443, %v7990_v23  }
 0x365   : > { %10487 = vst [vmem:[#allocation74_spill] sm:$0xff] %v8216_v39  ;;  %2749 = vperm.xlu0 %6430, %v8002_v14  }
 0x366   : > { %v8245_v50 = vpop.permute.xlu0 %2241 }
 0x368   : > { %v8224_v34 = vpop.permute.xlu1 %2517  ;;  %6444 = vset.pattern.permute.xlu1 %v10471_v31 }
 0x369   : > { %10491 = vst [vmem:[#allocation76_spill] sm:$0xff] %v8224_v34  ;;  %2821 = vperm.xlu1 %6444, %v7996_v45   ;;  %2761 = vperm.xlu0 %6430, %v8191_v42  }
 0x36a   : > { %v8254_v39 = vpop.permute.xlu0 %2253 }
 0x36c   : > { %v8230_v26 = vpop.permute.xlu1 %2525 }
 0x36d   : > { %10493 = vst [vmem:[#allocation78_spill] sm:$0xff] %v8230_v26  ;;  %6445 = vset.pattern.permute.xlu1 %v10474_v57  ;;  %2773 = vperm.xlu0 %6430, %v8121_v49  }
 0x36e   : > { %2897 = vperm.xlu1 %6445, %v7960_v25  }
 0x370   : > { %v8237_v3 = vpop.permute.xlu1 %2533 }
 0x371   : > { %10495 = vst [vmem:[#allocation80_spill] sm:$0xff] %v8237_v3  ;;  %6471 = vset.pattern.permute.xlu0 %v10477_v46 }
 0x372   : > { %6446 = vset.pattern.permute.xlu1 %v10477_v46 }
 0x373   : > { %2977 = vperm.xlu1 %6446, %v7960_v25  }
 0x374   : > { %v8248_v34 = vpop.permute.xlu1 %2541 }
 0x375   : > { %10496 = vst [vmem:[#allocation81_spill] sm:$0xff] %v8248_v34  ;;  %v8264_v34 = vpop.permute.xlu0 %2261  ;;  %2989 = vperm.xlu0 %6471, %v8002_v14  }
 0x376   : > { %10497 = vst [vmem:[#allocation82_spill] sm:$0xff] %v8264_v34 }
 0x377   : > { %2981 = vperm.xlu1 %6446, %v7996_v45  }
 0x378   : > { %v8256_v48 = vpop.permute.xlu1 %2565 }
 0x37b   : > { %6447 = vset.pattern.permute.xlu1 %v10481_v33 }
 0x37c   : > { %v8268_v36 = vpop.permute.xlu1 %2569  ;;  %3061 = vperm.xlu1 %6447, %v7996_v45  }
 0x37d   : > { %10498 = vst [vmem:[#allocation83_spill] sm:$0xff] %v8268_v36 }
 0x380   : > { %6448 = vset.pattern.permute.xlu1 %v10485_v52 }
 0x381   : > { %3137 = vperm.xlu1 %6448, %v7960_v25  }
 0x385   : > { %6449 = vset.pattern.permute.xlu1 %v10489_v29 }
 0x386   : > { %3217 = vperm.xlu1 %6449, %v7960_v25  }
 0x38a   : > { %3221 = vperm.xlu1 %6449, %v7996_v45  }
 0x38e   : > { %6450 = vset.pattern.permute.xlu1 %v10471_v31 }
 0x38f   : > { %2825 = vperm.xlu1 %6450, %v7966_v20  }
 0x393   : > { %2829 = vperm.xlu1 %6450, %v8002_v14  }
 0x394   : > { %v5933_v26 = vpop.f32.mrb[16].mxu1 }
 0x395   : > { %v1423_v35 = vadd.f32 %v5933_v26, %v8242_v7  ;;  %v1417_v11 = vpop.f32.mrb[17].mxu1 }
 0x396   : > { %v1418_v3 = vadd.f32 %v8242_v7, %v1417_v11 }
 0x397   : > { %v1497_v21 = vmax.f32 %v1423_v35, 0.0  ;;  %6451 = vset.pattern.permute.xlu1 %v10474_v57 }
 0x398   : > { %v1496_v6 = vmax.f32 %v1418_v3, 0.0  ;;  %v5936_v4 = vpop.f32.mrb[18].mxu1  ;;  %2909 = vperm.xlu1 %6451, %v8002_v14  }
 0x399   : > { %v1433_v38 = vadd.f32 %v5936_v4, %v8242_v7  ;;  %v1427_v22 = vpop.f32.mrb[19].mxu1 }
 0x39a   : > { %v1428_v26 = vadd.f32 %v8242_v7, %v1427_v22  ;;  %5971 = vmatprep.mubr.msk.f32.mxu0 %vm1118_vm1, %v1496_v6 }
 0x39b   : > { %v1499_v11 = vmax.f32 %v1433_v38, 0.0  ;;  %5972 = vmatmul.mubr.msk.f32.vlgmr.msra.gmra.mrb[32].mxu0 %vm1118_vm1, %v1497_v21  ;;  %v8274_v21 = vpop.permute.xlu0 %2269  ;;  %3001 = vperm.xlu0 %6471, %v8191_v42  }
 0x39c   : > { %v1498_v3 = vmax.f32 %v1428_v26, 0.0  ;;  %v5939_v35 = vpop.f32.mrb[20].mxu1  ;;  %10499 = vst [vmem:[#allocation84_spill] sm:$0xff] %v8274_v21  ;;  %6452 = vset.pattern.permute.xlu1 %v10477_v46 }
 0x39d   : > { %v1443_v4 = vadd.f32 %v5939_v35, %v8242_v7  ;;  %v1437_v0 = vpop.f32.mrb[21].mxu1  ;;  %2985 = vperm.xlu1 %6452, %v7966_v20  }
 0x39e   : > { %v1438_v22 = vadd.f32 %v8242_v7, %v1437_v0  ;;  %5974 = vmatprep.mubr.msk.f32.mxu0 %vm1118_vm1, %v1498_v3 }
 0x39f   : > { %v1501_v6 = vmax.f32 %v1443_v4, 0.0  ;;  %5975 = vmatmul.mubr.msk.f32.gmra.mrb[34].mxu0 %vm1118_vm1, %v1499_v11  ;;  %v8284_v11 = vpop.permute.xlu1 %2577  ;;  %v8286_v4 = vpop.permute.xlu0 %2277  ;;  %3013 = vperm.xlu0 %6471, %v8121_v49  }
 0x3a0   : > { %v1500_v38 = vmax.f32 %v1438_v22, 0.0  ;;  %v5942_v26 = vpop.f32.mrb[22].mxu1  ;;  %10500 = vst [vmem:[#allocation85_spill] sm:$0xff] %v8284_v11  ;;  %10501 = vst [vmem:[#allocation86_spill] sm:$0xff] %v8286_v4 }
 0x3a1   : > { %v1453_v35 = vadd.f32 %v5942_v26, %v8242_v7  ;;  %v1447_v56 = vpop.f32.mrb[23].mxu1  ;;  %6453 = vset.pattern.permute.xlu1 %v10481_v33 }
 0x3a2   : > { %v1448_v0 = vadd.f32 %v8242_v7, %v1447_v56  ;;  %5977 = vmatprep.mubr.msk.f32.mxu0 %vm1118_vm1, %v1500_v38  ;;  %3065 = vperm.xlu1 %6453, %v7966_v20  }
 0x3a3   : > { %v1503_v3 = vmax.f32 %v1453_v35, 0.0  ;;  %5978 = vmatmul.mubr.msk.f32.gmra.mrb[36].mxu0 %vm1118_vm1, %v1501_v6  ;;  %v8294_v6 = vpop.permute.xlu0 %2285  ;;  %v8299_v2 = vpop.permute.xlu1 %2585  ;;  %6475 = vset.pattern.permute.xlu0 %v10489_v29 }
 0x3a4   : > { %v1502_v22 = vmax.f32 %v1448_v0, 0.0  ;;  %v5945_v21 = vpop.f32.mrb[24].mxu1  ;;  %10502 = vst [vmem:[#allocation87_spill] sm:$0xff] %v8294_v6  ;;  %10503 = vst [vmem:[#allocation88_spill] sm:$0xff] %v8299_v2  ;;  %3229 = vperm.xlu0 %6475, %v8002_v14  }
 0x3a5   : > { %v1463_v26 = vadd.f32 %v5945_v21, %v8242_v7  ;;  %v1457_v56 = vpop.f32.mrb[25].mxu1 }
 0x3a6   : > { %v1458_v38 = vadd.f32 %v8242_v7, %v1457_v56  ;;  %5980 = vmatprep.mubr.msk.f32.mxu0 %vm1118_vm1, %v1502_v22  ;;  %3069 = vperm.xlu1 %6453, %v8002_v14  }
 0x3a7   : > { %v1505_v35 = vmax.f32 %v1463_v26, 0.0  ;;  %5981 = vmatmul.mubr.msk.f32.gmra.mrb[38].mxu0 %vm1118_vm1, %v1503_v3  ;;  %v8304_v26 = vpop.permute.xlu0 %2293 }
 0x3a8   : > { %v1504_v11 = vmax.f32 %v1458_v38, 0.0  ;;  %v5948_v4 = vpop.f32.mrb[26].mxu1  ;;  %10504 = vst [vmem:[#allocation89_spill] sm:$0xff] %v8304_v26  ;;  %3241 = vperm.xlu0 %6475, %v8191_v42  }
 0x3a9   : > { %v1473_v21 = vadd.f32 %v5948_v4, %v8242_v7  ;;  %v1467_v0 = vpop.f32.mrb[27].mxu1 }
 0x3aa   : > { %v1468_v22 = vadd.f32 %v8242_v7, %v1467_v0  ;;  %5983 = vmatprep.mubr.msk.f32.mxu0 %vm1118_vm1, %v1504_v11  ;;  %6454 = vset.pattern.permute.xlu1 %v10485_v52 }
 0x3ab   : > { %v1507_v3 = vmax.f32 %v1473_v21, 0.0  ;;  %5984 = vmatmul.mubr.msk.f32.gmra.mrb[40].mxu0 %vm1118_vm1, %v1505_v35  ;;  %v8314_v21 = vpop.permute.xlu1 %2593  ;;  %v8316_v0 = vpop.permute.xlu0 %2301  ;;  %3149 = vperm.xlu1 %6454, %v8002_v14  }
 0x3ac   : > { %v1506_v56 = vmax.f32 %v1468_v22, 0.0  ;;  %v5951_v38 = vpop.f32.mrb[28].mxu1  ;;  %10505 = vst [vmem:[#allocation90_spill] sm:$0xff] %v8314_v21  ;;  %10506 = vst [vmem:[#allocation91_spill] sm:$0xff] %v8316_v0  ;;  %3253 = vperm.xlu0 %6475, %v8121_v49  }
 0x3ad   : > { %v1483_v4 = vadd.f32 %v5951_v38, %v8242_v7  ;;  %v1477_v6 = vpop.f32.mrb[29].mxu1 }
 0x3ae   : > { %v1478_v11 = vadd.f32 %v8242_v7, %v1477_v6  ;;  %5986 = vmatprep.mubr.msk.f32.mxu0 %vm1118_vm1, %v1506_v56 }
 0x3af   : > { %v1509_v35 = vmax.f32 %v1483_v4, 0.0  ;;  %5987 = vmatmul.mubr.msk.f32.gmra.mrb[42].mxu0 %vm1118_vm1, %v1507_v3  ;;  %v8324_v3 = vpop.permute.xlu0 %2325  ;;  %v8326_v0 = vpop.permute.xlu1 %2601  ;;  %6455 = vset.pattern.permute.xlu1 %v10489_v29 }
 0x3b0   : > { %v1508_v22 = vmax.f32 %v1478_v11, 0.0  ;;  %v5954_v26 = vpop.f32.mrb[30].mxu1  ;;  %10507 = vst [vmem:[#allocation92_spill] sm:$0xff] %v8326_v0  ;;  %6479 = vset.pattern.permute.xlu0 %v10471_v31  ;;  %3225 = vperm.xlu1 %6455, %v7966_v20  }
 0x3b1   : > { %v1493_v38 = vadd.f32 %v5954_v26, %v8242_v7  ;;  %v1487_v2 = vpop.f32.mrb[31].mxu1  ;;  %2801 = vperm.xlu0 %6479, %v7983_v43  }
 0x3b2   : > { %v1488_v6 = vadd.f32 %v8242_v7, %v1487_v2  ;;  %5989 = vmatprep.mubr.msk.f32.mxu0 %vm1118_vm1, %v1508_v22 }
 0x3b3   : > { %v1511_v56 = vmax.f32 %v1493_v38, 0.0  ;;  %5990 = vmatmul.mubr.msk.f32.gmra.mrb[44].mxu0 %vm1118_vm1, %v1509_v35  ;;  %v8333_v2 = vpop.permute.xlu0 %2337  ;;  %v8338_v7 = vpop.permute.xlu1 %2609 }
 0x3b4   : > { %v1510_v4 = vmax.f32 %v1488_v6, 0.0  ;;  %10508 = vst [vmem:[#allocation93_spill] sm:$0xff] %v8333_v2  ;;  %10509 = vst [vmem:[#allocation94_spill] sm:$0xff] %v8338_v7  ;;  %6456 = vset.pattern.permute.xlu1 %v10488_v16 }
 0x3b5   : > { %2809 = vperm.xlu0 %6479, %v7956_v24   ;;  %2753 = vperm.xlu1 %6456, %v8027_v63  }
 0x3b6   : > { %5992 = vmatprep.mubr.msk.f32.mxu0 %vm1118_vm1, %v1510_v4 }
 0x3b7   : > { %5993 = vmatmul.mubr.msk.f32.gmra.mrb[46].mxu0 %vm1118_vm1, %v1511_v56  ;;  %v8340_v26 = vpop.permute.xlu0 %2345  ;;  %v8347_v35 = vpop.permute.xlu1 %2617 }
 0x3b8   : > { %10510 = vst [vmem:[#allocation95_spill] sm:$0xff] %v8340_v26  ;;  %10512 = vst [vmem:[#allocation97_spill] sm:$0xff] %v8347_v35 }
 0x3b9   : > { %2817 = vperm.xlu0 %6479, %v7960_v25   ;;  %2757 = vperm.xlu1 %6456, %v8096_v9  }
 0x3bb   : > { %v8345_v11 = vpop.permute.xlu0 %2353  ;;  %v8355_v38 = vpop.permute.xlu1 %2641 }
 0x3bc   : > { %10511 = vst [vmem:[#allocation96_spill] sm:$0xff] %v8345_v11  ;;  %10514 = vst [vmem:[#allocation99_spill] sm:$0xff] %v8355_v38 }
 0x3bd   : > { %2833 = vperm.xlu0 %6479, %v8027_v63   ;;  %6457 = vset.pattern.permute.xlu1 %v10471_v31 }
 0x3be   : > { %2837 = vperm.xlu1 %6457, %v8096_v9  }
 0x3bf   : > { %v8351_v22 = vpop.permute.xlu0 %2361  ;;  %v8364_v4 = vpop.permute.xlu1 %2649 }
 0x3c0   : > { %10513 = vst [vmem:[#allocation98_spill] sm:$0xff] %v8351_v22  ;;  %10517 = vst [vmem:[#allocation102_spill] sm:$0xff] %v8364_v4  ;;  %v1751_v22 = vld [vmem:[%s10340_s11 + $0x78] sm:$0xff] }
 0x3c1   : > { %2845 = vperm.xlu0 %6479, %v8106_v8  }
 0x3c2   : > { %6458 = vset.pattern.permute.xlu1 %v10474_v57 }
 0x3c3   : > { %v8357_v6 = vpop.permute.xlu0 %2369  ;;  %v8373_v7 = vpop.permute.xlu1 %2653  ;;  %2913 = vperm.xlu1 %6458, %v8027_v63  }
 0x3c4   : > { %10515 = vst [vmem:[#allocation100_spill] sm:$0xff] %v8357_v6  ;;  %10518 = vst [vmem:[#allocation103_spill] sm:$0xff] %v8373_v7 }
 0x3c5   : > { %2857 = vperm.xlu0 %6479, %v8210_v19  }
 0x3c7   : > { %v8362_v56 = vpop.permute.xlu0 %2377  ;;  %v8381_v6 = vpop.permute.xlu1 %2661  ;;  %6459 = vset.pattern.permute.xlu1 %v10477_v46 }
 0x3c8   : > { %10516 = vst [vmem:[#allocation101_spill] sm:$0xff] %v8362_v56  ;;  %10520 = vst [vmem:[#allocation105_spill] sm:$0xff] %v8381_v6  ;;  %2993 = vperm.xlu1 %6459, %v8027_v63  }
 0x3c9   : > { %6481 = vset.pattern.permute.xlu0 %v10474_v57 }
 0x3ca   : > { %2885 = vperm.xlu0 %6481, %v7950_v18  }
 0x3cb   : > { %v8369_v35 = vpop.permute.xlu0 %2401  ;;  %v8388_v7 = vpop.permute.xlu1 %2669 }
 0x3cc   : > { %10522 = vst [vmem:[#allocation107_spill] sm:$0xff] %v8388_v7  ;;  %v1750_v7 = vld [vmem:[%s10340_s11 + $0x70] sm:$0xff]  ;;  %2997 = vperm.xlu1 %6459, %v8096_v9  }
 0x3cd   : > { %v6275_v38 = vpack.c.bf16 %v1751_v22, %v1750_v7 }
 0x3ce   : > { %2893 = vperm.xlu0 %6481, %v7990_v23  }
 0x3cf   : > { %v8378_v56 = vpop.permute.xlu0 %2413  ;;  %v8396_v6 = vpop.permute.xlu1 %2677  ;;  %6276 = vmatprep.subr.bf16.mxu1 %v6275_v38 }
 0x3d0   : > { %10519 = vst [vmem:[#allocation104_spill] sm:$0xff] %v8378_v56  ;;  %10524 = vst [vmem:[#allocation109_spill] sm:$0xff] %v8396_v6  ;;  %6278 = vmatpush3.bf16.msra.mxu1 %v6275_v38  ;;  %6460 = vset.pattern.permute.xlu1 %v10481_v33 }
 0x3d1   : > { %3077 = vperm.xlu1 %6460, %v8096_v9  }
 0x3d2   : > { %2901 = vperm.xlu0 %6481, %v7996_v45  }
 0x3d3   : > { %v8386_v14 = vpop.permute.xlu0 %2421  ;;  %v8401_v0 = vpop.permute.xlu1 %2685 }
 0x3d4   : > { %10521 = vst [vmem:[#allocation106_spill] sm:$0xff] %v8386_v14  ;;  %10525 = vst [vmem:[#allocation110_spill] sm:$0xff] %v8401_v0 }
 0x3d5   : > { %6461 = vset.pattern.permute.xlu1 %v10485_v52 }
 0x3d6   : > { %2905 = vperm.xlu0 %6481, %v7966_v20   ;;  %3153 = vperm.xlu1 %6461, %v8027_v63  }
 0x3d7   : > { %v8392_v4 = vpop.permute.xlu0 %2429  ;;  %v8414_v21 = vpop.permute.xlu1 %2693 }
 0x3d8   : > { %10523 = vst [vmem:[#allocation108_spill] sm:$0xff] %v8392_v4  ;;  %10527 = vst [vmem:[#allocation112_spill] sm:$0xff] %v8414_v21 }
 0x3da   : > { %2917 = vperm.xlu0 %6481, %v8096_v9   ;;  %6462 = vset.pattern.permute.xlu1 %v10489_v29 }
 0x3db   : > { %v8411_v6 = vpop.permute.xlu0 %2437  ;;  %v8420_v11 = vpop.permute.xlu1 %2701  ;;  %3233 = vperm.xlu1 %6462, %v8027_v63  }
 0x3dc   : > { %10526 = vst [vmem:[#allocation111_spill] sm:$0xff] %v8411_v6  ;;  %10529 = vst [vmem:[#allocation114_spill] sm:$0xff] %v8420_v11 }
 0x3de   : > { %2929 = vperm.xlu0 %6481, %v8201_v30  }
 0x3df   : > { %v8417_v0 = vpop.permute.xlu0 %2445  ;;  %v8428_v7 = vpop.permute.xlu1 %2725  ;;  %3237 = vperm.xlu1 %6462, %v8096_v9  }
 0x3e0   : > { %10528 = vst [vmem:[#allocation113_spill] sm:$0xff] %v8417_v0 }
 0x3e2   : > { %2941 = vperm.xlu0 %6481, %v8136_v54  }
 0x3e3   : > { %v8423_v4 = vpop.permute.xlu0 %2453  ;;  %v8435_v38 = vpop.permute.xlu1 %2729  ;;  %6463 = vset.pattern.permute.xlu1 %v10488_v16 }
 0x3e4   : > { %10530 = vst [vmem:[#allocation115_spill] sm:$0xff] %v8423_v4  ;;  %2765 = vperm.xlu1 %6463, %v8106_v8  }
 0x3e6   : > { %6484 = vset.pattern.permute.xlu0 %v10481_v33 }
 0x3e7   : > { %3041 = vperm.xlu0 %6484, %v7983_v43   ;;  %v8430_v22 = vpop.permute.xlu0 %2461  ;;  %v8446_v21 = vpop.permute.xlu1 %2737 }
 0x3e8   : > { %10531 = vst [vmem:[#allocation116_spill] sm:$0xff] %v8430_v22  ;;  %10533 = vst [vmem:[#allocation118_spill] sm:$0xff] %v8446_v21  ;;  %6464 = vset.pattern.permute.xlu1 %v10471_v31 }
 0x3e9   : > { %2841 = vperm.xlu1 %6464, %v8191_v42  }
 0x3eb   : > { %3049 = vperm.xlu0 %6484, %v7956_v24   ;;  %v8438_v11 = vpop.permute.xlu0 %2485  ;;  %v8453_v22 = vpop.permute.xlu1 %2745 }
 0x3ec   : > { %10535 = vst [vmem:[#allocation120_spill] sm:$0xff] %v8453_v22 }
 0x3ed   : > { %6465 = vset.pattern.permute.xlu1 %v10474_v57 }
 0x3ee   : > { %2921 = vperm.xlu1 %6465, %v8191_v42  }
 0x3ef   : > { %3057 = vperm.xlu0 %6484, %v7960_v25   ;;  %v8442_v43 = vpop.permute.xlu0 %2497  ;;  %v8464_v4 = vpop.permute.xlu1 %2805 }
 0x3f0   : > { %10532 = vst [vmem:[#allocation117_spill] sm:$0xff] %v8442_v43 }
 0x3f2   : > { %2925 = vperm.xlu1 %6465, %v8106_v8  }
 0x3f3   : > { %3073 = vperm.xlu0 %6484, %v8027_v63   ;;  %v8448_v24 = vpop.permute.xlu0 %2505 }
 0x3f4   : > { %10534 = vst [vmem:[#allocation119_spill] sm:$0xff] %v8448_v24 }
 0x3f6   : > { %6466 = vset.pattern.permute.xlu1 %v10477_v46 }
 0x3f7   : > { %3085 = vperm.xlu0 %6484, %v8106_v8   ;;  %v8455_v25 = vpop.permute.xlu0 %2513  ;;  %3005 = vperm.xlu1 %6466, %v8106_v8  }
 0x3f8   : > { %10536 = vst [vmem:[#allocation121_spill] sm:$0xff] %v8455_v25  ;;  %v8471_v25 = vpop.permute.xlu1 %2881 }
 0x3fb   : > { %3097 = vperm.xlu0 %6484, %v8210_v19   ;;  %v8460_v63 = vpop.permute.xlu0 %2521  ;;  %6467 = vset.pattern.permute.xlu1 %v10481_v33 }
 0x3fc   : > { %10537 = vst [vmem:[#allocation122_spill] sm:$0xff] %v8460_v63  ;;  %v8482_v63 = vpop.permute.xlu1 %2961  ;;  %3081 = vperm.xlu1 %6467, %v8191_v42  }
 0x3ff   : > { %6486 = vset.pattern.permute.xlu0 %v10485_v52  ;;  %v8468_v0 = vpop.permute.xlu0 %2529 }
 0x400   : > { %3125 = vperm.xlu0 %6486, %v7950_v18   ;;  %10538 = vst [vmem:[#allocation123_spill] sm:$0xff] %v8468_v0  ;;  %6468 = vset.pattern.permute.xlu1 %v10485_v52 }
 0x401   : > { %3161 = vperm.xlu1 %6468, %v8191_v42  }
 0x403   : > { %v8474_v6 = vpop.permute.xlu0 %2537 }
 0x404   : > { %3133 = vperm.xlu0 %6486, %v7990_v23   ;;  %10539 = vst [vmem:[#allocation124_spill] sm:$0xff] %v8474_v6  ;;  %v8489_v23 = vpop.permute.xlu1 %2965 }
 0x405   : > { %3165 = vperm.xlu1 %6468, %v8106_v8  }
 0x407   : > { %v8478_v18 = vpop.permute.xlu0 %2561 }
 0x408   : > { %3141 = vperm.xlu0 %6486, %v7996_v45   ;;  %v8499_v6 = vpop.permute.xlu1 %3045 }
 0x409   : > { %6469 = vset.pattern.permute.xlu1 %v10489_v29 }
 0x40a   : > { %3245 = vperm.xlu1 %6469, %v8106_v8  }
 0x40b   : > { %v8484_v0 = vpop.permute.xlu0 %2573 }
 0x40c   : > { %3145 = vperm.xlu0 %6486, %v7966_v20   ;;  %10540 = vst [vmem:[#allocation125_spill] sm:$0xff] %v8484_v0 }
 0x40e   : > { %6470 = vset.pattern.permute.xlu1 %v10488_v16 }
 0x40f   : > { %v8491_v45 = vpop.permute.xlu0 %2581  ;;  %2769 = vperm.xlu1 %6470, %v8201_v30  }
 0x410   : > { %3157 = vperm.xlu0 %6486, %v8096_v9   ;;  %10541 = vst [vmem:[#allocation126_spill] sm:$0xff] %v8491_v45  ;;  %v8504_v9 = vpop.permute.xlu1 %3121 }
 0x413   : > { %v8496_v20 = vpop.permute.xlu0 %2589  ;;  %6472 = vset.pattern.permute.xlu1 %v10471_v31 }
 0x414   : > { %3169 = vperm.xlu0 %6486, %v8201_v30   ;;  %10542 = vst [vmem:[#allocation127_spill] sm:$0xff] %v8496_v20  ;;  %v8509_v42 = vpop.permute.xlu1 %3201  ;;  %2849 = vperm.xlu1 %6472, %v8201_v30  }
 0x417   : > { %v8553_v2 = vpop.permute.xlu0 %2597 }
 0x418   : > { %3181 = vperm.xlu0 %6486, %v8136_v54   ;;  %v8513_v20 = vpop.permute.xlu1 %3205  ;;  %2853 = vperm.xlu1 %6472, %v8121_v49   ;;  %10546 = vst [vmem:[#allocation131_spill] sm:$0xff] %v8553_v2 }
 0x41c   : > { %7050 = vset.pattern.permute.xlu0 %v10489_v29  ;;  %v8516_v24 = vpop.permute.xlu1 %2813  ;;  %6473 = vset.pattern.permute.xlu1 %v10474_v57 }
 0x41d   : > { %2933 = vperm.xlu1 %6473, %v8121_v49  }
 0x420   : > { %v8521_v8 = vpop.permute.xlu1 %2889 }
 0x421   : > { %6474 = vset.pattern.permute.xlu1 %v10477_v46 }
 0x422   : > { %3009 = vperm.xlu1 %6474, %v8201_v30  }
 0x424   : > { %v8526_v26 = vpop.permute.xlu1 %2969 }
 0x426   : > { %6476 = vset.pattern.permute.xlu1 %v10481_v33 }
 0x427   : > { %3089 = vperm.xlu1 %6476, %v8201_v30  }
 0x428   : > { %v8529_v22 = vpop.permute.xlu1 %2973 }
 0x42b   : > { %3093 = vperm.xlu1 %6476, %v8121_v49  }
 0x42c   : > { %v8533_v45 = vpop.permute.xlu1 %3053 }
 0x42f   : > { %6477 = vset.pattern.permute.xlu1 %v10485_v52 }
 0x430   : > { %3173 = vperm.xlu1 %6477, %v8121_v49   ;;  %v8538_v43 = vpop.permute.xlu1 %3129  ;;  %v8549_v49 = vld [vmem:[%s10339_s10] ss:$0 sm:$0xff] }
 0x431   : > { %10543 = vst [vmem:[#allocation128_spill] sm:$0xff] %v8538_v43 }
 0x434   : > { %6478 = vset.pattern.permute.xlu1 %v10489_v29  ;;  %v8542_v14 = vpop.permute.xlu1 %3209 }
 0x435   : > { %3249 = vperm.xlu1 %6478, %v8201_v30   ;;  %10544 = vst [vmem:[#allocation129_spill] sm:$0xff] %v8542_v14 }
 0x438   : > { %v8551_v30 = vpop.permute.xlu1 %3213 }
 0x439   : > { %6480 = vset.pattern.permute.xlu1 %v10488_v16  ;;  %10545 = vst [vmem:[#allocation130_spill] sm:$0xff] %v8551_v30 }
 0x43a   : > { %2777 = vperm.xlu1 %6480, %v8210_v19  }
 0x43c   : > { %v8560_v0 = vpop.permute.xlu1 %2821 }
 0x43d   : > { %10547 = vst [vmem:[#allocation132_spill] sm:$0xff] %v8560_v0 }
 0x43e   : > { %2781 = vperm.xlu1 %6480, %v8136_v54  }
 0x442   : > { %6482 = vset.pattern.permute.xlu1 %v10471_v31 }
 0x443   : > { %2861 = vperm.xlu1 %6482, %v8136_v54  }
 0x447   : > { %6483 = vset.pattern.permute.xlu1 %v10474_v57  ;;  %v8564_v57 = vpop.permute.xlu0 %2605 }
 0x448   : > { %2937 = vperm.xlu1 %6483, %v8210_v19   ;;  %10548 = vst [vmem:[#allocation133_spill] sm:$0xff] %v8564_v57 }
 0x44b   : > { %v8572_v0 = vpop.permute.xlu0 %2613 }
 0x44c   : > { %6485 = vset.pattern.permute.xlu1 %v10477_v46  ;;  %10550 = vst [vmem:[#allocation135_spill] sm:$0xff] %v8572_v0 }
 0x44d   : > { %3017 = vperm.xlu1 %6485, %v8210_v19  }
 0x451   : > { %3021 = vperm.xlu1 %6485, %v8136_v54  }
 0x455   : > { %6487 = vset.pattern.permute.xlu1 %v10481_v33 }
 0x46e   : > { %v5973_v16 = vpop.f32.mrb[32].mxu0 }
 0x46f   : > { %v1647_v34 = vadd.f32 %v5973_v16, %v8549_v49  ;;  %v1641_v44 = vpop.f32.mrb[33].mxu0 }
 0x470   : > { %v1642_v31 = vadd.f32 %v8549_v49, %v1641_v44 }
 0x471   : > { %v1721_v51 = vmax.f32 %v1647_v34, 0.0 }
 0x472   : > { %v1720_v62 = vmax.f32 %v1642_v31, 0.0  ;;  %v5976_v5 = vpop.f32.mrb[34].mxu0 }
 0x473   : > { %v1657_v61 = vadd.f32 %v5976_v5, %v8549_v49  ;;  %v1651_v21 = vpop.f32.mrb[35].mxu0 }
 0x474   : > { %v1652_v2 = vadd.f32 %v8549_v49, %v1651_v21  ;;  %6027 = vmatprep.mubr.f32.mxu1 %v1720_v62  ;;  %v8570_v21 = vpop.permute.xlu1 %2897  ;;  %3101 = vperm.xlu1 %6487, %v8136_v54  }
 0x475   : > { %v1723_v16 = vmax.f32 %v1657_v61, 0.0  ;;  %6028 = vmatmul.mubr.f32.vlgmr.msra.gmra.mrb[32].mxu1 %v1721_v51  ;;  %10549 = vst [vmem:[#allocation134_spill] sm:$0xff] %v8570_v21 }
 0x476   : > { %v1722_v44 = vmax.f32 %v1652_v2, 0.0  ;;  %v5979_v31 = vpop.f32.mrb[36].mxu0 }
 0x477   : > { %v1667_v34 = vadd.f32 %v5979_v31, %v8549_v49  ;;  %v1661_v36 = vpop.f32.mrb[37].mxu0 }
 0x478   : > { %v1662_v5 = vadd.f32 %v8549_v49, %v1661_v36  ;;  %6030 = vmatprep.mubr.f32.mxu1 %v1722_v44  ;;  %6488 = vset.pattern.permute.xlu1 %v10485_v52 }
 0x479   : > { %v1725_v46 = vmax.f32 %v1667_v34, 0.0  ;;  %6031 = vmatmul.mubr.f32.gmra.mrb[34].mxu1 %v1723_v16 }
 0x47a   : > { %v1724_v62 = vmax.f32 %v1662_v5, 0.0  ;;  %v5982_v57 = vpop.f32.mrb[38].mxu0  ;;  %v8579_v5 = vpop.permute.xlu1 %2977  ;;  %3177 = vperm.xlu1 %6488, %v8210_v19  }
 0x47b   : > { %v1677_v51 = vadd.f32 %v5982_v57, %v8549_v49  ;;  %v1671_v61 = vpop.f32.mrb[39].mxu0  ;;  %10551 = vst [vmem:[#allocation136_spill] sm:$0xff] %v8579_v5  ;;  %v8582_v57 = vpop.permute.xlu0 %2621 }
 0x47c   : > { %v1672_v2 = vadd.f32 %v8549_v49, %v1671_v61  ;;  %6033 = vmatprep.mubr.f32.mxu1 %v1724_v62  ;;  %10552 = vst [vmem:[#allocation137_spill] sm:$0xff] %v8582_v57 }
 0x47d   : > { %v1727_v36 = vmax.f32 %v1677_v51, 0.0  ;;  %6034 = vmatmul.mubr.f32.gmra.mrb[36].mxu1 %v1725_v46 }
 0x47e   : > { %v1726_v44 = vmax.f32 %v1672_v2, 0.0  ;;  %v5985_v16 = vpop.f32.mrb[40].mxu0  ;;  %6489 = vset.pattern.permute.xlu1 %v10489_v29 }
 0x47f   : > { %v1687_v31 = vadd.f32 %v5985_v16, %v8549_v49  ;;  %v1681_v34 = vpop.f32.mrb[41].mxu0  ;;  %v8588_v16 = vpop.permute.xlu0 %2645 }
 0x480   : > { %v1682_v0 = vadd.f32 %v8549_v49, %v1681_v34  ;;  %6036 = vmatprep.mubr.f32.mxu1 %v1726_v44  ;;  %10553 = vst [vmem:[#allocation138_spill] sm:$0xff] %v8588_v16  ;;  %v8590_v44 = vpop.permute.xlu1 %2981  ;;  %3257 = vperm.xlu1 %6489, %v8210_v19  }
 0x481   : > { %v1729_v61 = vmax.f32 %v1687_v31, 0.0  ;;  %6037 = vmatmul.mubr.f32.gmra.mrb[38].mxu1 %v1727_v36  ;;  %10554 = vst [vmem:[#allocation139_spill] sm:$0xff] %v8590_v44 }
 0x482   : > { %v1728_v33 = vmax.f32 %v1682_v0, 0.0  ;;  %v5988_v46 = vpop.f32.mrb[42].mxu0 }
 0x483   : > { %v1697_v62 = vadd.f32 %v5988_v46, %v8549_v49  ;;  %v1691_v51 = vpop.f32.mrb[43].mxu0 }
 0x484   : > { %v1692_v2 = vadd.f32 %v8549_v49, %v1691_v51  ;;  %6039 = vmatprep.mubr.f32.mxu1 %v1728_v33  ;;  %v8599_v16 = vpop.permute.xlu1 %3061  ;;  %3261 = vperm.xlu1 %6489, %v8136_v54  }
 0x485   : > { %v1731_v34 = vmax.f32 %v1697_v62, 0.0  ;;  %6040 = vmatmul.mubr.f32.gmra.mrb[40].mxu1 %v1729_v61  ;;  %v8596_v62 = vpop.permute.xlu0 %2657  ;;  %10556 = vst [vmem:[#allocation141_spill] sm:$0xff] %v8599_v16 }
 0x486   : > { %v1730_v31 = vmax.f32 %v1692_v2, 0.0  ;;  %v5991_v36 = vpop.f32.mrb[44].mxu0  ;;  %10555 = vst [vmem:[#allocation140_spill] sm:$0xff] %v8596_v62 }
 0x487   : > { %v1707_v52 = vadd.f32 %v5991_v36, %v8549_v49  ;;  %v1701_v0 = vpop.f32.mrb[45].mxu0 }
 0x488   : > { %v1702_v46 = vadd.f32 %v8549_v49, %v1701_v0  ;;  %6042 = vmatprep.mubr.f32.mxu1 %v1730_v31 }
 0x489   : > { %v1733_v51 = vmax.f32 %v1707_v52, 0.0  ;;  %6043 = vmatmul.mubr.f32.gmra.mrb[42].mxu1 %v1731_v34  ;;  %v8603_v31 = vpop.permute.xlu0 %2665 }
 0x48a   : > { %v1732_v33 = vmax.f32 %v1702_v46, 0.0  ;;  %v5994_v57 = vpop.f32.mrb[46].mxu0  ;;  %10557 = vst [vmem:[#allocation142_spill] sm:$0xff] %v8603_v31 }
 0x48b   : > { %v1717_v61 = vadd.f32 %v5994_v57, %v8549_v49  ;;  %v1711_v2 = vpop.f32.mrb[47].mxu0 }
 0x48c   : > { %v1712_v29 = vadd.f32 %v8549_v49, %v1711_v2  ;;  %6045 = vmatprep.mubr.f32.mxu1 %v1732_v33 }
 0x48d   : > { %v1735_v19 = vmax.f32 %v1717_v61, 0.0  ;;  %6046 = vmatmul.mubr.f32.gmra.mrb[44].mxu1 %v1733_v51  ;;  %v8605_v34 = vpop.permute.xlu0 %2673  ;;  %v8619_v51 = vpop.permute.xlu1 %3137 }
 0x48e   : > { %v1734_v36 = vmax.f32 %v1712_v29, 0.0  ;;  %10558 = vst [vmem:[#allocation143_spill] sm:$0xff] %v8605_v34  ;;  %10563 = vst [vmem:[#allocation148_spill] sm:$0xff] %v8619_v51 }
 0x490   : > { %6048 = vmatprep.mubr.f32.mxu1 %v1734_v36 }
 0x491   : > { %6049 = vmatmul.mubr.f32.gmra.mrb[46].mxu1 %v1735_v19  ;;  %v8607_v52 = vpop.permute.xlu0 %2681  ;;  %v8623_v61 = vpop.permute.xlu1 %3217 }
 0x492   : > { %10559 = vst [vmem:[#allocation144_spill] sm:$0xff] %v8607_v52  ;;  %10565 = vst [vmem:[#allocation150_spill] sm:$0xff] %v8623_v61 }
 0x495   : > { %v8609_v57 = vpop.permute.xlu0 %2689  ;;  %v8627_v29 = vpop.permute.xlu1 %3221 }
 0x496   : > { %10560 = vst [vmem:[#allocation145_spill] sm:$0xff] %v8609_v57  ;;  %10567 = vst [vmem:[#allocation152_spill] sm:$0xff] %v8627_v29 }
 0x499   : > { %v8611_v0 = vpop.permute.xlu0 %2697  ;;  %v8631_v36 = vpop.permute.xlu1 %2825 }
 0x49a   : > { %10561 = vst [vmem:[#allocation146_spill] sm:$0xff] %v8611_v0  ;;  %10569 = vst [vmem:[#allocation154_spill] sm:$0xff] %v8631_v36 }
 0x49d   : > { %v8613_v46 = vpop.permute.xlu0 %2721  ;;  %v8635_v57 = vpop.permute.xlu1 %2829 }
 0x49e   : > { %10571 = vst [vmem:[#allocation156_spill] sm:$0xff] %v8635_v57 }
 0x4a1   : > { %v8615_v54 = vpop.permute.xlu0 %2733  ;;  %v8639_v34 = vpop.permute.xlu1 %2909 }
 0x4a2   : > { %10573 = vst [vmem:[#allocation158_spill] sm:$0xff] %v8639_v34 }
 0x4a5   : > { %v8617_v49 = vpop.permute.xlu0 %2741  ;;  %v8643_v62 = vpop.permute.xlu1 %2985 }
 0x4a6   : > { %10562 = vst [vmem:[#allocation147_spill] sm:$0xff] %v8617_v49  ;;  %10575 = vst [vmem:[#allocation160_spill] sm:$0xff] %v8643_v62 }
 0x4a9   : > { %v8621_v33 = vpop.permute.xlu0 %2749 }
 0x4aa   : > { %10564 = vst [vmem:[#allocation149_spill] sm:$0xff] %v8621_v33 }
 0x4ad   : > { %v8625_v2 = vpop.permute.xlu0 %2761 }
 0x4ae   : > { %10566 = vst [vmem:[#allocation151_spill] sm:$0xff] %v8625_v2  ;;  %v8647_v2 = vpop.permute.xlu1 %3065 }
 0x4af   : > { %10577 = vst [vmem:[#allocation162_spill] sm:$0xff] %v8647_v2 }
 0x4b1   : > { %v8629_v19 = vpop.permute.xlu0 %2773 }
 0x4b2   : > { %10568 = vst [vmem:[#allocation153_spill] sm:$0xff] %v8629_v19  ;;  %v8651_v19 = vpop.permute.xlu1 %3069 }
 0x4b3   : > { %10579 = vst [vmem:[#allocation164_spill] sm:$0xff] %v8651_v19 }
 0x4b5   : > { %v8633_v0 = vpop.permute.xlu0 %2989 }
 0x4b6   : > { %10570 = vst [vmem:[#allocation155_spill] sm:$0xff] %v8633_v0  ;;  %v8655_v0 = vpop.permute.xlu1 %3149 }
 0x4b7   : > { %10581 = vst [vmem:[#allocation166_spill] sm:$0xff] %v8655_v0 }
 0x4b9   : > { %v8637_v52 = vpop.permute.xlu0 %3001 }
 0x4ba   : > { %10572 = vst [vmem:[#allocation157_spill] sm:$0xff] %v8637_v52  ;;  %v8659_v52 = vpop.permute.xlu1 %3225 }
 0x4bb   : > { %10582 = vst [vmem:[#allocation167_spill] sm:$0xff] %v8659_v52 }
 0x4bd   : > { %v8641_v31 = vpop.permute.xlu0 %3013 }
 0x4be   : > { %10574 = vst [vmem:[#allocation159_spill] sm:$0xff] %v8641_v31  ;;  %v8663_v31 = vpop.permute.xlu1 %2753 }
 0x4bf   : > { %10583 = vst [vmem:[#allocation168_spill] sm:$0xff] %v8663_v31 }
 0x4c1   : > { %v8645_v33 = vpop.permute.xlu0 %3229 }
 0x4c2   : > { %10576 = vst [vmem:[#allocation161_spill] sm:$0xff] %v8645_v33  ;;  %v8667_v33 = vpop.permute.xlu1 %2757 }
 0x4c3   : > { %10585 = vst [vmem:[#allocation170_spill] sm:$0xff] %v8667_v33 }
 0x4c5   : > { %v8649_v29 = vpop.permute.xlu0 %3241 }
 0x4c6   : > { %10578 = vst [vmem:[#allocation163_spill] sm:$0xff] %v8649_v29  ;;  %v8671_v29 = vpop.permute.xlu1 %2837 }
 0x4c7   : > { %10587 = vst [vmem:[#allocation172_spill] sm:$0xff] %v8671_v29 }
 0x4c9   : > { %v8653_v36 = vpop.permute.xlu0 %3253 }
 0x4ca   : > { %10580 = vst [vmem:[#allocation165_spill] sm:$0xff] %v8653_v36  ;;  %v8675_v36 = vpop.permute.xlu1 %2913 }
 0x4cb   : > { %10589 = vst [vmem:[#allocation174_spill] sm:$0xff] %v8675_v36 }
 0x4cd   : > { %v8657_v57 = vpop.permute.xlu0 %2801 }
 0x4ce   : > { %v8679_v61 = vpop.permute.xlu1 %2993 }
 0x4cf   : > { %10591 = vst [vmem:[#allocation176_spill] sm:$0xff] %v8679_v61 }
 0x4d1   : > { %v8661_v34 = vpop.permute.xlu0 %2809 }
 0x4d2   : > { %v8683_v51 = vpop.permute.xlu1 %2997 }
 0x4d3   : > { %10592 = vst [vmem:[#allocation177_spill] sm:$0xff] %v8683_v51 }
 0x4d5   : > { %v8665_v62 = vpop.permute.xlu0 %2817 }
 0x4d6   : > { %10584 = vst [vmem:[#allocation169_spill] sm:$0xff] %v8665_v62  ;;  %v8687_v16 = vpop.permute.xlu1 %3077 }
 0x4d7   : > { %10593 = vst [vmem:[#allocation178_spill] sm:$0xff] %v8687_v16 }
 0x4d9   : > { %v8669_v2 = vpop.permute.xlu0 %2833 }
 0x4da   : > { %10586 = vst [vmem:[#allocation171_spill] sm:$0xff] %v8669_v2  ;;  %v8691_v2 = vpop.permute.xlu1 %3153 }
 0x4db   : > { %10595 = vst [vmem:[#allocation180_spill] sm:$0xff] %v8691_v2  ;;  %v8714_v2 = vld [vmem:[%s10341_s12] ss:$0 sm:$0xff] }
 0x4dd   : > { %v8673_v19 = vpop.permute.xlu0 %2845 }
 0x4de   : > { %10588 = vst [vmem:[#allocation173_spill] sm:$0xff] %v8673_v19  ;;  %v8695_v19 = vpop.permute.xlu1 %3233 }
 0x4df   : > { %10597 = vst [vmem:[#allocation182_spill] sm:$0xff] %v8695_v19 }
 0x4e1   : > { %v8677_v0 = vpop.permute.xlu0 %2857 }
 0x4e2   : > { %10590 = vst [vmem:[#allocation175_spill] sm:$0xff] %v8677_v0  ;;  %v8699_v0 = vpop.permute.xlu1 %3237 }
 0x4e3   : > { %10599 = vst [vmem:[#allocation184_spill] sm:$0xff] %v8699_v0 }
 0x4e5   : > { %v8681_v52 = vpop.permute.xlu0 %2885 }
 0x4e6   : > { %v8703_v44 = vpop.permute.xlu1 %2765 }
 0x4e7   : > { %10601 = vst [vmem:[#allocation186_spill] sm:$0xff] %v8703_v44 }
 0x4e9   : > { %v8685_v31 = vpop.permute.xlu0 %2893 }
 0x4ea   : > { %v8709_v16 = vpop.permute.xlu1 %2841 }
 0x4eb   : > { %10603 = vst [vmem:[#allocation188_spill] sm:$0xff] %v8709_v16 }
 0x4ed   : > { %v8689_v33 = vpop.permute.xlu0 %2901 }
 0x4ee   : > { %10594 = vst [vmem:[#allocation179_spill] sm:$0xff] %v8689_v33 }
 0x4f1   : > { %v8693_v29 = vpop.permute.xlu0 %2905 }
 0x4f2   : > { %10596 = vst [vmem:[#allocation181_spill] sm:$0xff] %v8693_v29 }
 0x4f5   : > { %v8697_v36 = vpop.permute.xlu0 %2917 }
 0x4f6   : > { %10598 = vst [vmem:[#allocation183_spill] sm:$0xff] %v8697_v36  ;;  %v8718_v36 = vpop.permute.xlu1 %2921 }
 0x4f7   : > { %10604 = vst [vmem:[#allocation189_spill] sm:$0xff] %v8718_v36 }
 0x4f9   : > { %v8701_v61 = vpop.permute.xlu0 %2929 }
 0x4fa   : > { %10600 = vst [vmem:[#allocation185_spill] sm:$0xff] %v8701_v61  ;;  %v8724_v16 = vpop.permute.xlu1 %2925 }
 0x4fb   : > { %10606 = vst [vmem:[#allocation191_spill] sm:$0xff] %v8724_v16 }
 0x4fd   : > { %v8705_v51 = vpop.permute.xlu0 %2941 }
 0x4fe   : > { %10602 = vst [vmem:[#allocation187_spill] sm:$0xff] %v8705_v51  ;;  %v8732_v16 = vpop.permute.xlu1 %3005 }
 0x4ff   : > { %10608 = vst [vmem:[#allocation193_spill] sm:$0xff] %v8732_v16 }
 0x501   : > { %v8707_v5 = vpop.permute.xlu0 %3041 }
 0x505   : > { %v8716_v19 = vpop.permute.xlu0 %3049 }
 0x509   : > { %v8722_v62 = vpop.permute.xlu0 %3057 }
 0x50a   : > { %10605 = vst [vmem:[#allocation190_spill] sm:$0xff] %v8722_v62 }
 0x50d   : > { %v8730_v62 = vpop.permute.xlu0 %3073 }
 0x50e   : > { %10607 = vst [vmem:[#allocation192_spill] sm:$0xff] %v8730_v62  ;;  %v8738_v62 = vpop.permute.xlu1 %3081 }
 0x50f   : > { %10610 = vst [vmem:[#allocation195_spill] sm:$0xff] %v8738_v62 }
 0x511   : > { %v8736_v56 = vpop.permute.xlu0 %3085 }
 0x512   : > { %10609 = vst [vmem:[#allocation194_spill] sm:$0xff] %v8736_v56 }
 0x548   : > { %v6029_v0 = vpop.f32.mrb[32].mxu1 }
 0x549   : > { %v1831_v61 = vadd.f32 %v6029_v0, %v8714_v2  ;;  %v1825_v29 = vpop.f32.mrb[33].mxu1 }
 0x54a   : > { %v1826_v44 = vadd.f32 %v8714_v2, %v1825_v29 }
 0x54b   : > { %v5417_v51 = vmul.f32 -1.442695, %v1831_v61 }
 0x54c   : > { %v5416_v33 = vmul.f32 -1.442695, %v1826_v44  ;;  %v6032_v21 = vpop.f32.mrb[34].mxu1 }
 0x54d   : > { %7067 = vpow2.f32 %v5417_v51  ;;  %v1841_v49 = vadd.f32 %v6032_v21, %v8714_v2  ;;  %v1835_v30 = vpop.f32.mrb[35].mxu1 }
 0x54e   : > { %7069 = vpow2.f32 %v5416_v33  ;;  %v1836_v36 = vadd.f32 %v8714_v2, %v1835_v30 }
 0x54f   : > { %v5419_v14 = vmul.f32 -1.442695, %v1841_v49 }
 0x550   : > { %v5418_v41 = vmul.f32 -1.442695, %v1836_v36  ;;  %v6035_v0 = vpop.f32.mrb[36].mxu1 }
 0x551   : > { %7071 = vpow2.f32 %v5419_v14  ;;  %v1851_v29 = vadd.f32 %v6035_v0, %v8714_v2  ;;  %v1845_v61 = vpop.f32.mrb[37].mxu1 }
 0x552   : > { %7073 = vpow2.f32 %v5418_v41  ;;  %v1846_v44 = vadd.f32 %v8714_v2, %v1845_v61 }
 0x553   : > { %v5421_v51 = vmul.f32 -1.442695, %v1851_v29 }
 0x554   : > { %v5420_v21 = vmul.f32 -1.442695, %v1846_v44  ;;  %v6038_v47 = vpop.f32.mrb[38].mxu1 }
 0x555   : > { %7075 = vpow2.f32 %v5421_v51  ;;  %v1861_v30 = vadd.f32 %v6038_v47, %v8714_v2  ;;  %v1855_v49 = vpop.f32.mrb[39].mxu1 }
 0x556   : > { %7077 = vpow2.f32 %v5420_v21  ;;  %v1856_v14 = vadd.f32 %v8714_v2, %v1855_v49 }
 0x557   : > { %v7068_v33 = vpop.eup %7067  ;;  %v5423_v36 = vmul.f32 -1.442695, %v1861_v30 }
 0x558   : > { %v7070_v0 = vpop.eup %7069  ;;  %v1953_v41 = vadd.f32 1.0, %v7068_v33  ;;  %v5422_v43 = vmul.f32 -1.442695, %v1856_v14  ;;  %v6041_v61 = vpop.f32.mrb[40].mxu1 }
 0x559   : > { %v1952_v29 = vadd.f32 1.0, %v7070_v0  ;;  %7079 = vpow2.f32 %v5423_v36  ;;  %v1871_v44 = vadd.f32 %v6041_v61, %v8714_v2  ;;  %v1865_v51 = vpop.f32.mrb[41].mxu1  ;;  %v7051_v36 = vld [vmem:[%s10342_s13 + $0x40] sm:$0xff]   ;;  %v8749_v61 = vpop.permute.xlu0 %3097 }
 0x55a   : > { %7081 = vrcp.f32 %v1953_v41  ;;  %v1866_v47 = vadd.f32 %v8714_v2, %v1865_v51  ;;  %v7052_v41 = vld [vmem:[%s10342_s13] sm:$0xff]   ;;  %10611 = vst [vmem:[#allocation196_spill] sm:$0xff] %v8749_v61  ;;  %5655 = vmatprep.subr.bf16.mxu0 %v7051_v36 }
 0x55b   : > { %v7072_v21 = vpop.eup %7071  ;;  %7083 = vrcp.f32 %v1952_v29  ;;  %v5425_v49 = vmul.f32 -1.442695, %v1871_v44  ;;  %v8752_v44 = vpop.permute.xlu1 %3161  ;;  %5656 = vmatpush3.bf16.msra.mxu0 %v7052_v41 }
 0x55c   : > { %v7074_v30 = vpop.eup %7073  ;;  %v1955_v16 = vadd.f32 1.0, %v7072_v21  ;;  %7085 = vpow2.f32 %v5422_v43  ;;  %v5424_v14 = vmul.f32 -1.442695, %v1866_v47  ;;  %v6044_v33 = vpop.f32.mrb[42].mxu1  ;;  %10612 = vst [vmem:[#allocation197_spill] sm:$0xff] %v8752_v44 }
 0x55d   : > { %v1954_v13 = vadd.f32 1.0, %v7074_v30  ;;  %7087 = vpow2.f32 %v5425_v49  ;;  %v1881_v56 = vadd.f32 %v6044_v33, %v8714_v2  ;;  %v1875_v0 = vpop.f32.mrb[43].mxu1 }
 0x55e   : > { %7089 = vrcp.f32 %v1955_v16  ;;  %v1876_v43 = vadd.f32 %v8714_v2, %v1875_v0 }
 0x55f   : > { %v7076_v29 = vpop.eup %7075  ;;  %7091 = vrcp.f32 %v1954_v13  ;;  %v5427_v51 = vmul.f32 -1.442695, %v1881_v56  ;;  %v7053_v56 = vld [vmem:[%s10342_s13 + $0x48] sm:$0xff]  }
 0x560   : > { %v7078_v47 = vpop.eup %7077  ;;  %v1957_v21 = vadd.f32 1.0, %v7076_v29  ;;  %7093 = vpow2.f32 %v5424_v14  ;;  %v5426_v49 = vmul.f32 -1.442695, %v1876_v43  ;;  %v6047_v30 = vpop.f32.mrb[44].mxu1  ;;  %v7054_v14 = vld [vmem:[%s10342_s13 + $0x8] sm:$0xff]   ;;  %5657 = vmatprep.subr.bf16.mxu0 %v7053_v56 }
 0x561   : > { %v1956_v33 = vadd.f32 1.0, %v7078_v47  ;;  %7095 = vpow2.f32 %v5427_v51  ;;  %v1891_v16 = vadd.f32 %v6047_v30, %v8714_v2  ;;  %v1885_v61 = vpop.f32.mrb[45].mxu1  ;;  %v3126_v29 = vpop.permute.xlu0 %3125  ;;  %5658 = vmatpush3.bf16.msra.mxu0 %v7054_v14  ;;  %v7056_v14 = vld [vmem:[%s10342_s13 + $0x10] sm:$0xff]  }
 0x562   : > { %7097 = vrcp.f32 %v1957_v21  ;;  %v1886_v13 = vadd.f32 %v8714_v2, %v1885_v61  ;;  %v8773_v21 = vpop.permute.xlu1 %3165 }
 0x563   : > { %v7080_v0 = vpop.eup %7079  ;;  %7099 = vrcp.f32 %v1956_v33  ;;  %v5429_v36 = vmul.f32 -1.442695, %v1891_v16  ;;  %10614 = vst [vmem:[#allocation198_spill] sm:$0xff] %v8773_v21 }
 0x564   : > { %v8769_v41 = vpop.eup %7081  ;;  %v1959_v43 = vadd.f32 1.0, %v7080_v0  ;;  %7101 = vpow2.f32 %v5426_v49  ;;  %v5428_v51 = vmul.f32 -1.442695, %v1886_v13  ;;  %v6050_v47 = vpop.f32.mrb[46].mxu1 }
 0x565   : > { %v8771_v61 = vpop.eup %7083  ;;  %5142 = vst.msk [vmem:[%s8760_s20 + $0x8] sm:$0xff] %vm709_vm0, %v8769_v41  ;;  %7103 = vpow2.f32 %v5429_v36  ;;  %v8779_v30 = vmul.f32 %v8769_v41, %v3126_v29  ;;  %v1901_v33 = vadd.f32 %v6050_v47, %v8714_v2  ;;  %v1895_v16 = vpop.f32.mrb[47].mxu1  ;;  %v2785_v49 = vmul.f32 %v8769_v41, %v8428_v7  ;;  %v7055_v7 = vld [vmem:[%s10342_s13 + $0x50] sm:$0xff]  }
 0x566   : > { %v7086_v13 = vpop.eup %7085  ;;  %5141 = vst.msk [vmem:[%s8760_s20] sm:$0xff] %vm709_vm0, %v8771_v61  ;;  %7105 = vrcp.f32 %v1959_v43  ;;  %v8789_v56 = vmul.f32 %v8771_v61, %v8504_v9  ;;  %v1896_v0 = vadd.f32 %v8714_v2, %v1895_v16  ;;  %v2784_v36 = vmul.f32 %v8771_v61, %v8613_v46  ;;  %5659 = vmatprep.subr.bf16.mxu0 %v7055_v7 }
 0x567   : > { %v7088_v29 = vpop.eup %7087  ;;  %v1958_v43 = vadd.f32 1.0, %v7086_v13  ;;  %7107 = vpow2.f32 %v5428_v51  ;;  %v5431_v9 = vmul.f32 -1.442695, %v1901_v33  ;;  %v2144_v2 = vmul.f32 %v8771_v61, %v8085_v59  ;;  %5660 = vmatpush3.bf16.msra.mxu0 %v7056_v14 }
 0x568   : > { %v8802_v47 = vpop.eup %7089  ;;  %v1961_v16 = vadd.f32 1.0, %v7088_v29  ;;  %v6540_v46 = vpack.i.bf16 %v8779_v30, %v8789_v56  ;;  %v5430_v21 = vmul.f32 -1.442695, %v1896_v0  ;;  %v6490_v44 = vpack.i.bf16 %v2785_v49, %v2784_v36  ;;  %v8829_v36 = vpop.permute.xlu1 %3245 }
 0x569   : > { %v8806_v62 = vpop.eup %7091  ;;  %5144 = vst.msk [vmem:[%s8760_s20 + $0x18] sm:$0xff] %vm709_vm0, %v8802_v47  ;;  %7109 = vrcp.f32 %v1958_v43  ;;  %v2145_v51 = vmul.f32 %v8769_v41, %v7855_v60  ;;  %v2864_v59 = vmul.f32 %v8771_v61, %v8657_v57  ;;  %v2865_v49 = vmul.f32 %v8769_v41, %v8464_v4  ;;  %v7057_v60 = vld [vmem:[%s10342_s13 + $0x58] sm:$0xff]  }
 0x56a   : > { %v7094_v33 = vpop.eup %7093  ;;  %5143 = vst.msk [vmem:[%s8760_s20 + $0x10] sm:$0xff] %vm709_vm0, %v8806_v62  ;;  %7111 = vrcp.f32 %v1961_v16  ;;  %6491 = vrot.lane.b32.xlu0 %v6490_v44, %s7323_s30  ;;  %v2224_v13 = vmul.f32 %v8771_v61, %v7934_v10  ;;  %v7058_v57 = vld [vmem:[%s10342_s13 + $0x18] sm:$0xff]   ;;  %v2225_v4 = vmul.f32 %v8769_v41, %v8185_v1  ;;  %5661 = vmatprep.subr.bf16.mxu0 %v7057_v60 }
 0x56b   : > { %v7096_v0 = vpop.eup %7095  ;;  %v1960_v7 = vadd.f32 1.0, %v7094_v33  ;;  %7113 = vpow2.f32 %v5431_v9  ;;  %v6495_v44 = vpack.i.bf16 %v2145_v51, %v2144_v2  ;;  %v6500_v29 = vpack.i.bf16 %v2865_v49, %v2864_v59  ;;  %5662 = vmatpush3.bf16.msra.mxu0 %v7058_v57  ;;  %v7060_v51 = vld [vmem:[%s10342_s13 + $0x20] sm:$0xff]  }
 0x56c   : > { %v8833_v14 = vpop.eup %7097  ;;  %v1963_v10 = vadd.f32 1.0, %v7096_v0  ;;  %7115 = vpow2.f32 %v5430_v21  ;;  %v6505_v9 = vpack.i.bf16 %v2225_v4, %v2224_v13  ;;  %v2944_v2 = vmul.f32 %v8771_v61, %v8471_v25  ;;  %v7059_v25 = vld [vmem:[%s10342_s13 + $0x60] sm:$0xff]  }
 0x56d   : > { %10615 = vst [vmem:[#allocation199_spill] sm:$0xff] %v8833_v14  ;;  %v8835_v43 = vpop.eup %7099  ;;  %5146 = vst.msk [vmem:[%s8760_s20 + $0x28] sm:$0xff] %vm709_vm0, %v8833_v14  ;;  %7117 = vrcp.f32 %v1960_v7  ;;  %6496 = vrot.lane.b32.xlu1 %v6495_v44, %s7323_s30  ;;  %v2945_v21 = vmul.f32 %v8769_v41, %v8681_v52  ;;  %v2304_v16 = vmul.f32 %v8771_v61, %v8245_v50  ;;  %5663 = vmatprep.subr.bf16.mxu0 %v7059_v25  ;;  %v8867_v44 = vpop.permute.xlu1 %2769 }
 0x56e   : > { %10616 = vst [vmem:[#allocation200_spill] sm:$0xff] %v8835_v43  ;;  %v7102_v1 = vpop.eup %7101  ;;  %5145 = vst.msk [vmem:[%s8760_s20 + $0x20] sm:$0xff] %vm709_vm0, %v8835_v43  ;;  %7119 = vrcp.f32 %v1963_v10  ;;  %6501 = vrot.lane.b32.xlu0 %v6500_v29, %s7324_s4  ;;  %v2305_v49 = vmul.f32 %v8769_v41, %v7979_v40  ;;  %v3024_v52 = vmul.f32 %v8771_v61, %v8482_v63  ;;  %v7061_v10 = vld [vmem:[%s10342_s13 + $0x68] sm:$0xff]  }
 0x56f   : > { %v7104_v59 = vpop.eup %7103  ;;  %v1962_v33 = vadd.f32 1.0, %v7102_v1  ;;  %v3025_v13 = vmul.f32 %v8769_v41, %v8489_v23  ;;  %v6510_v57 = vpack.i.bf16 %v2945_v21, %v2944_v2  ;;  %v2384_v0 = vmul.f32 %v8771_v61, %v8017_v58  ;;  %5664 = vmatpush3.bf16.msra.mxu0 %v7060_v51  ;;  %v7062_v29 = vld [vmem:[%s10342_s13 + $0x28] sm:$0xff]  }
 0x570   : > { %v8863_v50 = vpop.eup %7105  ;;  %v1965_v60 = vadd.f32 1.0, %v7104_v59  ;;  %v6515_v40 = vpack.i.bf16 %v2305_v49, %v2304_v16  ;;  %v2385_v58 = vmul.f32 %v8769_v41, %v8324_v3  ;;  %v3104_v4 = vmul.f32 %v8771_v61, %v8707_v5  ;;  %5665 = vmatprep.subr.bf16.mxu0 %v7061_v10  ;;  %v7063_v49 = vld [vmem:[%s10342_s13 + $0x70] sm:$0xff]  }
 0x571   : > { %10617 = vst [vmem:[#allocation201_spill] sm:$0xff] %v8863_v50  ;;  %v7108_v7 = vpop.eup %7107  ;;  %5148 = vst.msk [vmem:[%s8760_s20 + $0x38] sm:$0xff] %vm709_vm0, %v8863_v50  ;;  %7121 = vrcp.f32 %v1962_v33  ;;  %6506 = vrot.lane.b32.xlu1 %v6505_v9, %s7324_s4  ;;  %v6520_v63 = vpack.i.bf16 %v3025_v13, %v3024_v52  ;;  %v3105_v2 = vmul.f32 %v8769_v41, %v8499_v6  ;;  %v8915_v13 = vpop.permute.xlu1 %2849 }
 0x572   : > { %7123 = vrcp.f32 %v1965_v60  ;;  %v1964_v23 = vadd.f32 1.0, %v7108_v7  ;;  %6511 = vrot.lane.b32.xlu0 %v6510_v57, %s7325_s5  ;;  %v2464_v3 = vmul.f32 %v8771_v61, %v8369_v35  ;;  %v2465_v1 = vmul.f32 %v8769_v41, %v8080_v17 }
 0x573   : > { %v8884_v9 = vpop.eup %7109  ;;  %v2544_v5 = vmul.f32 %v8771_v61, %v8182_v53  ;;  %v6525_v16 = vpack.i.bf16 %v2385_v58, %v2384_v0  ;;  %v2545_v25 = vmul.f32 %v8769_v41, %v8438_v11  ;;  %v6530_v17 = vpack.i.bf16 %v3105_v2, %v3104_v4  ;;  %5666 = vmatpush3.bf16.msra.mxu0 %v7062_v29 }
 0x574   : > { %10618 = vst [vmem:[#allocation202_spill] sm:$0xff] %v8884_v9  ;;  %v8894_v21 = vpop.eup %7111  ;;  %5147 = vst.msk [vmem:[%s8760_s20 + $0x30] sm:$0xff] %vm709_vm0, %v8884_v9  ;;  %7125 = vrcp.f32 %v1964_v23  ;;  %v6535_v35 = vpack.i.bf16 %v2465_v1, %v2464_v3  ;;  %v3264_v53 = vmul.f32 %v8771_v61, %v8509_v42  ;;  %v3265_v33 = vmul.f32 %v8769_v41, %v8513_v20  ;;  %v7064_v20 = vld [vmem:[%s10342_s13 + $0x30] sm:$0xff]   ;;  %v7066_v23 = vld [vmem:[%s10342_s13 + $0x38] sm:$0xff]  }
 0x575   : > { %10619 = vst [vmem:[#allocation203_spill] sm:$0xff] %v8894_v21  ;;  %v7114_v6 = vpop.eup %7113  ;;  %5150 = vst.msk [vmem:[%s8760_s20 + $0x48] sm:$0xff] %vm709_vm0, %v8894_v21  ;;  %6516 = vrot.lane.b32.xlu1 %v6515_v40, %s7325_s5  ;;  %v6545_v11 = vpack.i.bf16 %v2545_v25, %v2544_v5  ;;  %v2624_v60 = vmul.f32 %v8771_v61, %v8478_v18  ;;  %v2625_v57 = vmul.f32 %v8769_v41, %v8256_v48  ;;  %v7065_v40 = vld [vmem:[%s10342_s13 + $0x78] sm:$0xff]   ;;  %v8947_v58 = vpop.permute.xlu1 %2853 }
 0x576   : > { %v7116_v51 = vpop.eup %7115  ;;  %v1967_v59 = vadd.f32 1.0, %v7114_v6  ;;  %6521 = vrot.lane.b32.xlu0 %v6520_v63, %s7326_s26  ;;  %v6550_v7 = vpack.i.bf16 %v3265_v33, %v3264_v53  ;;  %5667 = vmatprep.subr.bf16.mxu0 %v7063_v49  ;;  %v2786_v10 = vmul.f32 %v8806_v62, %v8435_v38  ;;  %v2787_v29 = vmul.f32 %v8802_v47, %v8615_v54  ;;  %v10621_v33 = vld [vmem:[#allocation55_spill] sm:$0xff] }
 0x577   : > { %v8913_v52 = vpop.eup %7117  ;;  %v1966_v42 = vadd.f32 1.0, %v7116_v51  ;;  %v6555_v48 = vpack.i.bf16 %v2625_v57, %v2624_v60  ;;  %5668 = vmatpush3.bf16.msra.mxu0 %v7064_v20  ;;  %v2146_v38 = vmul.f32 %v8806_v62, %v7860_v55  ;;  %v2147_v54 = vmul.f32 %v8802_v47, %v8100_v15 }
 0x578   : > { %10620 = vst [vmem:[#allocation204_spill] sm:$0xff] %v8913_v52  ;;  %v8924_v0 = vpop.eup %7119  ;;  %5149 = vst.msk [vmem:[%s8760_s20 + $0x40] sm:$0xff] %vm709_vm0, %v8913_v52  ;;  %7127 = vrcp.f32 %v1967_v59  ;;  %5669 = vmatprep.subr.bf16.mxu0 %v7065_v40  ;;  %v2866_v3 = vmul.f32 %v8806_v62, %v8661_v34  ;;  %v2867_v1 = vmul.f32 %v8802_v47, %v8516_v24  ;;  %v3134_v59 = vpop.permute.xlu0 %3133  ;;  %v10625_v40 = vld [vmem:[#allocation70_spill] sm:$0xff] }
 0x579   : > { %5152 = vst.msk [vmem:[%s8760_s20 + $0x58] sm:$0xff] %vm709_vm0, %v8924_v0  ;;  %7129 = vrcp.f32 %v1966_v42  ;;  %6526 = vrot.lane.b32.xlu1 %v6525_v16, %s7326_s26  ;;  %v8972_v56 = vpop.permute.xlu1 %2933  ;;  %v6565_v5 = vpack.i.bf16 %v2147_v54, %v2146_v38  ;;  %v2226_v55 = vmul.f32 %v8806_v62, %v7939_v12  ;;  %v2227_v15 = vmul.f32 %v8802_v47, %v7943_v27  ;;  %v10627_v54 = vld [vmem:[#allocation130_spill] sm:$0xff] }
 0x57a   : > { %6531 = vrot.lane.b32.xlu0 %v6530_v17, %s7327_s1  ;;  %v6570_v16 = vpack.i.bf16 %v2867_v1, %v2866_v3  ;;  %v2946_v25 = vmul.f32 %v8806_v62, %v8521_v8  ;;  %v2947_v34 = vmul.f32 %v8802_v47, %v8685_v31  ;;  %v2306_v12 = vmul.f32 %v8806_v62, %v7987_v28 }
 0x57b   : > { %v8934_v18 = vpop.eup %7121  ;;  %5670 = vmatpush3.bf16.msra.mxu0 %v7066_v23  ;;  %v6575_v24 = vpack.i.bf16 %v2227_v15, %v2226_v55  ;;  %v2307_v27 = vmul.f32 %v8802_v47, %v8254_v39  ;;  %v3026_v8 = vmul.f32 %v8806_v62, %v8526_v26  ;;  %v3027_v31 = vmul.f32 %v8802_v47, %v8529_v22  ;;  %v10629_v15 = vld [vmem:[#allocation125_spill] sm:$0xff] }
 0x57c   : > { %v8939_v63 = vpop.eup %7123  ;;  %5151 = vst.msk [vmem:[%s8760_s20 + $0x50] sm:$0xff] %vm709_vm0, %v8934_v18  ;;  %v6580_v17 = vpack.i.bf16 %v2947_v34, %v2946_v25  ;;  %v2386_v28 = vmul.f32 %v8806_v62, %v8021_v32  ;;  %v2387_v39 = vmul.f32 %v8802_v47, %v8030_v37  ;;  %v3106_v26 = vmul.f32 %v8806_v62, %v8716_v19  ;;  %v10622_v32 = vld [vmem:[#allocation104_spill] sm:$0xff]  ;;  %v10630_v34 = vld [vmem:[#allocation118_spill] sm:$0xff] }
 0x57d   : > { %5154 = vst.msk [vmem:[%s8760_s20 + $0x68] sm:$0xff] %vm709_vm0, %v8939_v63  ;;  %6536 = vrot.lane.b32.xlu1 %v6535_v35, %s7327_s1  ;;  %v8998_v6 = vpop.permute.xlu1 %3009  ;;  %v6585_v53 = vpack.i.bf16 %v2307_v27, %v2306_v12  ;;  %v6590_v51 = vpack.i.bf16 %v3027_v31, %v3026_v8  ;;  %v3107_v22 = vmul.f32 %v8802_v47, %v8533_v45  ;;  %v10623_v37 = vld [vmem:[#allocation128_spill] sm:$0xff]  ;;  %v10631_v12 = vld [vmem:[#allocation147_spill] sm:$0xff] }
 0x57e   : > { %v8953_v4 = vpop.eup %7125  ;;  %6541 = vrot.lane.b32.xlu0 %v6540_v46, %s7328_s24  ;;  %v6560_v46 = vpack.i.bf16 %v2787_v29, %v2786_v10  ;;  %v2466_v49 = vmul.f32 %v8806_v62, %v10621_v33  ;;  %v2467_v42 = vmul.f32 %v8802_v47, %v10622_v32  ;;  %v3186_v60 = vmul.f32 %v8806_v62, %v10623_v37  ;;  %v10626_v29 = vld [vmem:[#allocation129_spill] sm:$0xff]  ;;  %v10632_v8 = vld [vmem:[#allocation23_spill] sm:$0xff] }
 0x57f   : > { %5153 = vst.msk [vmem:[%s8760_s20 + $0x60] sm:$0xff] %vm709_vm0, %v8953_v4  ;;  %v3187_v19 = vmul.f32 %v8802_v47, %v3134_v59  ;;  %v6600_v57 = vpack.i.bf16 %v3107_v22, %v3106_v26  ;;  %v2547_v23 = vmul.f32 %v8802_v47, %v10625_v40  ;;  %v3266_v38 = vmul.f32 %v8806_v62, %v10626_v29  ;;  %v10635_v22 = vld [vmem:[#allocation132_spill] sm:$0xff]  ;;  %v10642_v29 = vld [vmem:[#allocation82_spill] sm:$0xff] }
 0x580   : > { %v6605_v45 = vpack.i.bf16 %v2467_v42, %v2466_v49  ;;  %v2789_v27 = vmul.f32 %v8833_v14, %v10631_v12  ;;  %v2148_v31 = vmul.f32 %v8835_v43, %v10632_v8  ;;  %v2869_v59 = vmul.f32 %v8833_v14, %v10635_v22  ;;  %v10637_v49 = vld [vmem:[#allocation69_spill] sm:$0xff]  ;;  %v10650_v22 = vld [vmem:[#allocation106_spill] sm:$0xff] }
 0x581   : > { %6546 = vrot.lane.b32.xlu1 %v6545_v11, %s7328_s24  ;;  %v9012_v35 = vpop.permute.xlu1 %3089  ;;  %v6595_v11 = vpack.i.bf16 %v2387_v39, %v2386_v28  ;;  %v6610_v10 = vpack.i.bf16 %v3187_v19, %v3186_v60  ;;  %v2228_v32 = vmul.f32 %v8835_v43, %v10637_v49  ;;  %v10638_v42 = vld [vmem:[#allocation29_spill] sm:$0xff]  ;;  %v10639_v19 = vld [vmem:[#allocation134_spill] sm:$0xff] }
 0x582   : > { %v8967_v2 = vpop.eup %7127  ;;  %6551 = vrot.lane.b32.xlu0 %v6550_v7, %s7329_s21  ;;  %v10624_v7 = vld [vmem:[#allocation68_spill] sm:$0xff]  ;;  %v2229_v37 = vmul.f32 %v8833_v14, %v10638_v42  ;;  %v10648_v8 = vld [vmem:[#allocation141_spill] sm:$0xff] }
 0x583   : > { %v8970_v30 = vpop.eup %7129  ;;  %5156 = vst.msk [vmem:[%s8760_s20 + $0x78] sm:$0xff] %vm709_vm0, %v8967_v2 }
 0x584   : > { %5155 = vst.msk [vmem:[%s8760_s20 + $0x70] sm:$0xff] %vm709_vm0, %v8970_v30  ;;  %v6645_v40 = vpack.i.bf16 %v2229_v37, %v2228_v32 }
 0x585   : > { %6556 = vrot.lane.b32.xlu1 %v6555_v48, %s7329_s21  ;;  %v9031_v20 = vpop.permute.xlu1 %3093  ;;  %v2546_v48 = vmul.f32 %v8806_v62, %v10624_v7 }
 0x586   : > { %6561 = vrot.lane.b32.xlu0 %v6560_v46, %s7323_s30  ;;  %v3267_v46 = vmul.f32 %v8802_v47, %v10627_v54 }
 0x587   : > { %v6615_v1 = vpack.i.bf16 %v2547_v23, %v2546_v48  ;;  %v10641_v23 = vld [vmem:[#allocation35_spill] sm:$0xff] }
 0x588   : > { %v6620_v25 = vpack.i.bf16 %v3267_v46, %v3266_v38  ;;  %v2309_v38 = vmul.f32 %v8833_v14, %v10642_v29  ;;  %v10643_v46 = vld [vmem:[#allocation136_spill] sm:$0xff] }
 0x589   : > { %6566 = vrot.lane.b32.xlu1 %v6565_v5, %s7323_s30  ;;  %v9045_v3 = vpop.permute.xlu1 %3173  ;;  %v10628_v5 = vld [vmem:[#allocation83_spill] sm:$0xff]  ;;  %v10655_v29 = vld [vmem:[#allocation152_spill] sm:$0xff] }
 0x58a   : > { %6571 = vrot.lane.b32.xlu0 %v6570_v16, %s7324_s4  ;;  %v2626_v55 = vmul.f32 %v8806_v62, %v10628_v5  ;;  %v2627_v16 = vmul.f32 %v8802_v47, %v10629_v15  ;;  %v10644_v5 = vld [vmem:[#allocation139_spill] sm:$0xff] }
 0x58d   : > { %6576 = vrot.lane.b32.xlu1 %v6575_v24, %s7324_s4  ;;  %v2788_v24 = vmul.f32 %v8835_v43, %v10630_v34  ;;  %v10646_v34 = vld [vmem:[#allocation43_spill] sm:$0xff] }
 0x58e   : > { %6581 = vrot.lane.b32.xlu0 %v6580_v17, %s7325_s5  ;;  %v6625_v17 = vpack.i.bf16 %v2627_v16, %v2626_v55  ;;  %v3029_v55 = vmul.f32 %v8833_v14, %v10644_v5  ;;  %v10645_v16 = vld [vmem:[#allocation93_spill] sm:$0xff]  ;;  %v10657_v5 = vld [vmem:[#allocation126_spill] sm:$0xff] }
 0x58f   : > { %v6630_v39 = vpack.i.bf16 %v2789_v27, %v2788_v24  ;;  %v2389_v24 = vmul.f32 %v8833_v14, %v10646_v34  ;;  %v10647_v27 = vld [vmem:[#allocation190_spill] sm:$0xff]  ;;  %v10659_v34 = vld [vmem:[#allocation149_spill] sm:$0xff] }
 0x591   : > { %6586 = vrot.lane.b32.xlu1 %v6585_v53, %s7325_s5  ;;  %v10633_v53 = vld [vmem:[#allocation57_spill] sm:$0xff] }
 0x592   : > { %6591 = vrot.lane.b32.xlu0 %v6590_v51, %s7326_s26  ;;  %v2149_v28 = vmul.f32 %v8833_v14, %v10633_v53  ;;  %v10634_v51 = vld [vmem:[#allocation169_spill] sm:$0xff] }
 0x593   : > { %v2868_v26 = vmul.f32 %v8835_v43, %v10634_v51  ;;  %v10649_v51 = vld [vmem:[#allocation56_spill] sm:$0xff] }
 0x594   : > { %v6635_v33 = vpack.i.bf16 %v2149_v28, %v2148_v31  ;;  %v3109_v31 = vmul.f32 %v8833_v14, %v10648_v8  ;;  %v3142_v28 = vpop.permute.xlu0 %3141 }
 0x595   : > { %6596 = vrot.lane.b32.xlu1 %v6595_v11, %s7326_s26  ;;  %v9065_v11 = vpop.permute.xlu1 %3249  ;;  %v6640_v60 = vpack.i.bf16 %v2869_v59, %v2868_v26  ;;  %v2468_v26 = vmul.f32 %v8835_v43, %v10649_v51  ;;  %v2469_v59 = vmul.f32 %v8833_v14, %v10650_v22  ;;  %v3189_v32 = vmul.f32 %v8833_v14, %v3142_v28  ;;  %v10663_v51 = vld [vmem:[#allocation154_spill] sm:$0xff]  ;;  %v10664_v22 = vld [vmem:[#allocation156_spill] sm:$0xff] }
 0x596   : > { %6601 = vrot.lane.b32.xlu0 %v6600_v57, %s7327_s1  ;;  %10636 = vst [vmem:[#allocation55_spill] sm:$0xff] %v9065_v11  ;;  %v2948_v57 = vmul.f32 %v8835_v43, %v10639_v19  ;;  %v10652_v19 = vld [vmem:[#allocation117_spill] sm:$0xff] }
 0x599   : > { %6606 = vrot.lane.b32.xlu1 %v6605_v45, %s7327_s1  ;;  %v10640_v45 = vld [vmem:[#allocation179_spill] sm:$0xff]  ;;  %v9079_v48 = vpop.permute.xlu1 %2777 }
 0x59a   : > { %6611 = vrot.lane.b32.xlu0 %v6610_v10, %s7328_s24  ;;  %v2949_v7 = vmul.f32 %v8833_v14, %v10640_v45  ;;  %v2308_v10 = vmul.f32 %v8835_v43, %v10641_v23  ;;  %v10653_v45 = vld [vmem:[#allocation72_spill] sm:$0xff]  ;;  %v10654_v23 = vld [vmem:[#allocation150_spill] sm:$0xff] }
 0x59c   : > { %v6650_v54 = vpack.i.bf16 %v2949_v7, %v2948_v57  ;;  %v6655_v15 = vpack.i.bf16 %v2309_v38, %v2308_v10  ;;  %v2548_v57 = vmul.f32 %v8835_v43, %v10652_v19  ;;  %v2549_v7 = vmul.f32 %v8833_v14, %v10653_v45  ;;  %v10668_v45 = vld [vmem:[#allocation181_spill] sm:$0xff] }
 0x59d   : > { %6616 = vrot.lane.b32.xlu1 %v6615_v1, %s7328_s24  ;;  %v3028_v1 = vmul.f32 %v8835_v43, %v10643_v46  ;;  %v9099_v53 = vpop.permute.xlu1 %2781  ;;  %v3268_v10 = vmul.f32 %v8835_v43, %v10654_v23  ;;  %v3269_v38 = vmul.f32 %v8833_v14, %v10655_v29  ;;  %v10656_v46 = vld [vmem:[#allocation85_spill] sm:$0xff]  ;;  %v10670_v29 = vld [vmem:[#allocation36_spill] sm:$0xff] }
 0x59e   : > { %6621 = vrot.lane.b32.xlu0 %v6620_v25, %s7329_s21  ;;  %v2388_v25 = vmul.f32 %v8835_v43, %v10645_v16  ;;  %v10658_v16 = vld [vmem:[#allocation120_spill] sm:$0xff] }
 0x59f   : > { %v6660_v12 = vpack.i.bf16 %v3029_v55, %v3028_v1  ;;  %v2628_v1 = vmul.f32 %v8835_v43, %v10656_v46  ;;  %v2629_v55 = vmul.f32 %v8833_v14, %v10657_v5  ;;  %v10672_v5 = vld [vmem:[#allocation160_spill] sm:$0xff] }
 0x5a1   : > { %6626 = vrot.lane.b32.xlu1 %v6625_v17, %s7329_s21  ;;  %v3108_v17 = vmul.f32 %v8835_v43, %v10647_v27  ;;  %v9112_v37 = vpop.permute.xlu1 %2861  ;;  %v6695_v27 = vpack.i.bf16 %v2629_v55, %v2628_v1  ;;  %v3030_v55 = vmul.f32 %v8884_v9, %v10672_v5  ;;  %v10685_v5 = vld [vmem:[#allocation167_spill] sm:$0xff] }
 0x5a2   : > { %6631 = vrot.lane.b32.xlu0 %v6630_v39, %s7323_s30  ;;  %v6665_v39 = vpack.i.bf16 %v2389_v24, %v2388_v25  ;;  %v2790_v25 = vmul.f32 %v8884_v9, %v10658_v16  ;;  %v2791_v24 = vmul.f32 %v8863_v50, %v10659_v34  ;;  %v3146_v34 = vpop.permute.xlu0 %3145 }
 0x5a3   : > { %v6670_v42 = vpack.i.bf16 %v3109_v31, %v3108_v17  ;;  %v10661_v17 = vld [vmem:[#allocation24_spill] sm:$0xff]  ;;  %v10662_v31 = vld [vmem:[#allocation59_spill] sm:$0xff] }
 0x5a4   : > { %v2150_v8 = vmul.f32 %v8884_v9, %v10661_v17  ;;  %v2151_v28 = vmul.f32 %v8863_v50, %v10662_v31 }
 0x5a5   : > { %6636 = vrot.lane.b32.xlu1 %v6635_v33, %s7323_s30  ;;  %v10651_v33 = vld [vmem:[#allocation148_spill] sm:$0xff] }
 0x5a6   : > { %6641 = vrot.lane.b32.xlu0 %v6640_v60, %s7324_s4  ;;  %v3188_v49 = vmul.f32 %v8835_v43, %v10651_v33  ;;  %v6675_v60 = vpack.i.bf16 %v2469_v59, %v2468_v26  ;;  %v2870_v26 = vmul.f32 %v8884_v9, %v10663_v51  ;;  %v2871_v59 = vmul.f32 %v8863_v50, %v10664_v22 }
 0x5a9   : > { %6646 = vrot.lane.b32.xlu1 %v6645_v40, %s7324_s4  ;;  %v6680_v40 = vpack.i.bf16 %v3189_v32, %v3188_v49  ;;  %v6705_v49 = vpack.i.bf16 %v2151_v28, %v2150_v8  ;;  %v10666_v32 = vld [vmem:[#allocation71_spill] sm:$0xff]  ;;  %v10676_v8 = vld [vmem:[#allocation45_spill] sm:$0xff] }
 0x5aa   : > { %6651 = vrot.lane.b32.xlu0 %v6650_v54, %s7325_s5  ;;  %v6685_v54 = vpack.i.bf16 %v2549_v7, %v2548_v57  ;;  %v6710_v57 = vpack.i.bf16 %v2871_v59, %v2870_v26  ;;  %v2950_v7 = vmul.f32 %v8884_v9, %v10668_v45  ;;  %v2391_v31 = vmul.f32 %v8863_v50, %v10676_v8  ;;  %v10678_v26 = vld [vmem:[#allocation164_spill] sm:$0xff]  ;;  %v10682_v45 = vld [vmem:[#allocation166_spill] sm:$0xff] }
 0x5ab   : > { %v3111_v22 = vmul.f32 %v8863_v50, %v10678_v26 }
 0x5ad   : > { %6656 = vrot.lane.b32.xlu1 %v6655_v15, %s7325_s5  ;;  %v6690_v15 = vpack.i.bf16 %v3269_v38, %v3268_v10  ;;  %v2310_v38 = vmul.f32 %v8884_v9, %v10670_v29  ;;  %v10683_v29 = vld [vmem:[#allocation119_spill] sm:$0xff] }
 0x5ae   : > { %6661 = vrot.lane.b32.xlu0 %v6660_v12, %s7326_s26  ;;  %v9132_v12 = vpop.permute.xlu1 %2937 }
 0x5af   : > { %10660 = vst [vmem:[#allocation104_spill] sm:$0xff] %v9132_v12 }
 0x5b1   : > { %6666 = vrot.lane.b32.xlu1 %v6665_v39, %s7326_s26  ;;  %v6700_v39 = vpack.i.bf16 %v2791_v24, %v2790_v25 }
 0x5b2   : > { %6671 = vrot.lane.b32.xlu0 %v6670_v42, %s7327_s1  ;;  %v9146_v33 = vpop.permute.xlu1 %3017  ;;  %v2230_v42 = vmul.f32 %v8884_v9, %v10666_v32  ;;  %v10680_v32 = vld [vmem:[#allocation58_spill] sm:$0xff] }
 0x5b3   : > { %10665 = vst [vmem:[#allocation128_spill] sm:$0xff] %v9146_v33 }
 0x5b5   : > { %6676 = vrot.lane.b32.xlu1 %v6675_v60, %s7327_s1  ;;  %v10667_v60 = vld [vmem:[#allocation30_spill] sm:$0xff] }
 0x5b6   : > { %6681 = vrot.lane.b32.xlu0 %v6680_v40, %s7328_s24  ;;  %v2231_v19 = vmul.f32 %v8863_v50, %v10667_v60  ;;  %v10669_v40 = vld [vmem:[#allocation158_spill] sm:$0xff]  ;;  %v9166_v25 = vpop.permute.xlu1 %3021  ;;  %v10681_v60 = vld [vmem:[#allocation108_spill] sm:$0xff] }
 0x5b7   : > { %v2951_v23 = vmul.f32 %v8863_v50, %v10669_v40  ;;  %10674 = vst [vmem:[#allocation68_spill] sm:$0xff] %v9166_v25  ;;  %v3158_v40 = vpop.permute.xlu0 %3157 }
 0x5b8   : > { %v6715_v10 = vpack.i.bf16 %v2231_v19, %v2230_v42  ;;  %v2470_v42 = vmul.f32 %v8884_v9, %v10680_v32  ;;  %v2471_v19 = vmul.f32 %v8863_v50, %v10681_v60  ;;  %v10693_v60 = vld [vmem:[#allocation25_spill] sm:$0xff] }
 0x5b9   : > { %6686 = vrot.lane.b32.xlu1 %v6685_v54, %s7328_s24  ;;  %v10671_v54 = vld [vmem:[#allocation84_spill] sm:$0xff]  ;;  %v6720_v1 = vpack.i.bf16 %v2951_v23, %v2950_v7  ;;  %v3191_v7 = vmul.f32 %v8863_v50, %v10682_v45 }
 0x5ba   : > { %6691 = vrot.lane.b32.xlu0 %v6690_v15, %s7329_s21  ;;  %v2311_v46 = vmul.f32 %v8863_v50, %v10671_v54  ;;  %v10673_v15 = vld [vmem:[#allocation155_spill] sm:$0xff]  ;;  %v9180_v59 = vpop.permute.xlu1 %3101  ;;  %v10684_v54 = vld [vmem:[#allocation74_spill] sm:$0xff] }
 0x5bb   : > { %v3031_v16 = vmul.f32 %v8863_v50, %v10673_v15  ;;  %10679 = vst [vmem:[#allocation70_spill] sm:$0xff] %v9180_v59  ;;  %v10686_v15 = vld [vmem:[#allocation161_spill] sm:$0xff] }
 0x5bc   : > { %v6725_v24 = vpack.i.bf16 %v2311_v46, %v2310_v38  ;;  %v2550_v38 = vmul.f32 %v8884_v9, %v10683_v29  ;;  %v2551_v46 = vmul.f32 %v8863_v50, %v10684_v54 }
 0x5bd   : > { %6696 = vrot.lane.b32.xlu1 %v6695_v27, %s7329_s21  ;;  %v10675_v27 = vld [vmem:[#allocation95_spill] sm:$0xff]  ;;  %v6730_v28 = vpack.i.bf16 %v3031_v16, %v3030_v55  ;;  %v3270_v55 = vmul.f32 %v8884_v9, %v10685_v5  ;;  %v3271_v16 = vmul.f32 %v8863_v50, %v10686_v15  ;;  %v10699_v5 = vld [vmem:[#allocation73_spill] sm:$0xff] }
 0x5be   : > { %6701 = vrot.lane.b32.xlu0 %v6700_v39, %s7323_s30  ;;  %v2390_v17 = vmul.f32 %v8884_v9, %v10675_v27  ;;  %v10677_v39 = vld [vmem:[#allocation162_spill] sm:$0xff]  ;;  %v6755_v27 = vpack.i.bf16 %v2551_v46, %v2550_v38  ;;  %v10697_v38 = vld [vmem:[#allocation172_spill] sm:$0xff]  ;;  %v10700_v15 = vld [vmem:[#allocation31_spill] sm:$0xff] }
 0x5bf   : > { %v3110_v51 = vmul.f32 %v8884_v9, %v10677_v39  ;;  %v6760_v39 = vpack.i.bf16 %v3271_v16, %v3270_v55  ;;  %v2873_v54 = vmul.f32 %v8894_v21, %v10697_v38  ;;  %v2232_v55 = vmul.f32 %v8913_v52, %v10699_v5  ;;  %v10707_v38 = vld [vmem:[#allocation180_spill] sm:$0xff] }
 0x5c0   : > { %v2233_v16 = vmul.f32 %v8894_v21, %v10700_v15 }
 0x5c1   : > { %6706 = vrot.lane.b32.xlu1 %v6705_v49, %s7323_s30  ;;  %v6735_v49 = vpack.i.bf16 %v2391_v31, %v2390_v17  ;;  %v6740_v23 = vpack.i.bf16 %v3111_v22, %v3110_v51  ;;  %v10688_v17 = vld [vmem:[#allocation88_spill] sm:$0xff]  ;;  %v10689_v31 = vld [vmem:[#allocation127_spill] sm:$0xff]  ;;  %v10691_v22 = vld [vmem:[#allocation170_spill] sm:$0xff] }
 0x5c2   : > { %6711 = vrot.lane.b32.xlu0 %v6710_v57, %s7324_s4  ;;  %v3190_v57 = vmul.f32 %v8884_v9, %v3146_v34  ;;  %v9199_v34 = vpop.permute.xlu1 %3177  ;;  %v2630_v8 = vmul.f32 %v8884_v9, %v10688_v17  ;;  %v10690_v51 = vld [vmem:[#allocation168_spill] sm:$0xff] }
 0x5c3   : > { %10687 = vst [vmem:[#allocation129_spill] sm:$0xff] %v9199_v34  ;;  %v2792_v26 = vmul.f32 %v8913_v52, %v10690_v51  ;;  %v10703_v51 = vld [vmem:[#allocation37_spill] sm:$0xff] }
 0x5c4   : > { %v10727_v34 = vld [vmem:[#allocation41_spill] sm:$0xff] }
 0x5c5   : > { %6716 = vrot.lane.b32.xlu1 %v6715_v10, %s7324_s4  ;;  %v6745_v10 = vpack.i.bf16 %v2471_v19, %v2470_v42  ;;  %v2152_v19 = vmul.f32 %v8913_v52, %v10693_v60  ;;  %v6785_v60 = vpack.i.bf16 %v2233_v16, %v2232_v55  ;;  %v10708_v55 = vld [vmem:[#allocation96_spill] sm:$0xff]  ;;  %v10709_v16 = vld [vmem:[#allocation47_spill] sm:$0xff]  ;;  %v2064_v59 = vmul.f32 %v8771_v61, %v10727_v34  ;;  %v10734_v34 = vld [vmem:[#allocation38_spill] sm:$0xff] }
 0x5c6   : > { %6721 = vrot.lane.b32.xlu0 %v6720_v1, %s7325_s5  ;;  %v6750_v1 = vpack.i.bf16 %v3191_v7, %v3190_v57  ;;  %v9213_v32 = vpop.permute.xlu1 %3257  ;;  %v10694_v57 = vld [vmem:[#allocation61_spill] sm:$0xff]  ;;  %v2392_v15 = vmul.f32 %v8913_v52, %v10708_v55 }
 0x5c7   : > { %10692 = vst [vmem:[#allocation130_spill] sm:$0xff] %v9213_v32  ;;  %v2153_v45 = vmul.f32 %v8894_v21, %v10694_v57 }
 0x5c9   : > { %6726 = vrot.lane.b32.xlu1 %v6725_v24, %s7325_s5  ;;  %v9202_v24 = vpop.permute.xlu0 %3169 }
 0x5ca   : > { %6731 = vrot.lane.b32.xlu0 %v6730_v28, %s7326_s26  ;;  %v2631_v28 = vmul.f32 %v8863_v50, %v10689_v31  ;;  %v9229_v46 = vpop.permute.xlu1 %3261 }
 0x5cb   : > { %10698 = vst [vmem:[#allocation125_spill] sm:$0xff] %v9229_v46 }
 0x5cc   : > { %v6765_v42 = vpack.i.bf16 %v2631_v28, %v2630_v8  ;;  %v10701_v8 = vld [vmem:[#allocation174_spill] sm:$0xff]  ;;  %v10702_v28 = vld [vmem:[#allocation183_spill] sm:$0xff] }
 0x5cd   : > { %6736 = vrot.lane.b32.xlu1 %v6735_v49, %s7326_s26  ;;  %v2793_v49 = vmul.f32 %v8894_v21, %v10691_v22  ;;  %v9221_v7 = vpop.permute.xlu0 %3181  ;;  %v2952_v31 = vmul.f32 %v8913_v52, %v10701_v8  ;;  %v10704_v22 = vld [vmem:[#allocation86_spill] sm:$0xff]  ;;  %v10710_v8 = vld [vmem:[#allocation192_spill] sm:$0xff] }
 0x5ce   : > { %6741 = vrot.lane.b32.xlu0 %v6740_v23, %s7327_s1  ;;  %10695 = vst [vmem:[#allocation83_spill] sm:$0xff] %v9221_v7 }
 0x5cf   : > { %v6770_v23 = vpack.i.bf16 %v2793_v49, %v2792_v26  ;;  %v2312_v26 = vmul.f32 %v8913_v52, %v10703_v51  ;;  %v2313_v49 = vmul.f32 %v8894_v21, %v10704_v22  ;;  %v10712_v51 = vld [vmem:[#allocation60_spill] sm:$0xff] }
 0x5d1   : > { %6746 = vrot.lane.b32.xlu1 %v6745_v10, %s7327_s1  ;;  %v10696_v10 = vld [vmem:[#allocation171_spill] sm:$0xff]  ;;  %v6795_v5 = vpack.i.bf16 %v2313_v49, %v2312_v26 }
 0x5d2   : > { %6751 = vrot.lane.b32.xlu0 %v6750_v1, %s7328_s24  ;;  %v2872_v29 = vmul.f32 %v8913_v52, %v10696_v10  ;;  %v6775_v1 = vpack.i.bf16 %v2153_v45, %v2152_v19  ;;  %v10705_v19 = vld [vmem:[#allocation176_spill] sm:$0xff]  ;;  %v10706_v45 = vld [vmem:[#allocation177_spill] sm:$0xff]  ;;  %v10713_v49 = vld [vmem:[#allocation111_spill] sm:$0xff] }
 0x5d3   : > { %v3032_v57 = vmul.f32 %v8913_v52, %v10705_v19  ;;  %v10714_v19 = vld [vmem:[#allocation121_spill] sm:$0xff] }
 0x5d4   : > { %v6780_v17 = vpack.i.bf16 %v2873_v54, %v2872_v29  ;;  %v9257_v54 = vmul.f32 %v8913_v52, %v10707_v38 }
 0x5d5   : > { %6756 = vrot.lane.b32.xlu1 %v6755_v27, %s7328_s24 }
 0x5d6   : > { %6761 = vrot.lane.b32.xlu0 %v6760_v39, %s7329_s21  ;;  %v2953_v39 = vmul.f32 %v8894_v21, %v10702_v28  ;;  %v10711_v28 = vld [vmem:[#allocation178_spill] sm:$0xff] }
 0x5d8   : > { %v6790_v29 = vpack.i.bf16 %v2953_v39, %v2952_v31  ;;  %v3112_v31 = vmul.f32 %v8913_v52, %v10710_v8  ;;  %v3113_v39 = vmul.f32 %v8894_v21, %v10711_v28  ;;  %v10717_v28 = vld [vmem:[#allocation184_spill] sm:$0xff] }
 0x5d9   : > { %6766 = vrot.lane.b32.xlu1 %v6765_v42, %s7329_s21 }
 0x5da   : > { %6771 = vrot.lane.b32.xlu0 %v6770_v23, %s7323_s30  ;;  %v3033_v23 = vmul.f32 %v8894_v21, %v10706_v45  ;;  %v9280_v45 = vmul.f32 %v8913_v52, %v10714_v19 }
 0x5dc   : > { %v9235_v27 = vpop.permute.xlu0 %6491  ;;  %v6800_v26 = vpack.i.bf16 %v3033_v23, %v3032_v57  ;;  %v9294_v57 = vmul.f32 %v8894_v21, %v10717_v28  ;;  %v10718_v23 = vld [vmem:[#allocation90_spill] sm:$0xff] }
 0x5dd   : > { %6776 = vrot.lane.b32.xlu1 %v6775_v1, %s7323_s30  ;;  %v9260_v1 = vmul.f32 %v8894_v21, %v3158_v40  ;;  %v2472_v40 = vmul.f32 %v8913_v52, %v10712_v51  ;;  %v9298_v51 = vmul.f32 %v8913_v52, %v10718_v23  ;;  %v10722_v28 = vld [vmem:[#allocation26_spill] sm:$0xff]  ;;  %v10723_v23 = vld [vmem:[#allocation63_spill] sm:$0xff] }
 0x5de   : > { %6781 = vrot.lane.b32.xlu0 %v6780_v17, %s7324_s4  ;;  %v2393_v17 = vmul.f32 %v8894_v21, %v10709_v16  ;;  %v10716_v16 = vld [vmem:[#allocation182_spill] sm:$0xff]  ;;  %v9315_v46 = vmul.f32 %v8934_v18, %v10722_v28 }
 0x5df   : > { %v9247_v42 = vpop.permute.xlu1 %6496  ;;  %v9290_v8 = vmul.f32 %v8913_v52, %v10716_v16  ;;  %v10721_v16 = vld [vmem:[#allocation186_spill] sm:$0xff]  ;;  %v9319_v52 = vmul.f32 %v8924_v0, %v10723_v23 }
 0x5e0   : > { %v9253_v10 = vpop.permute.xlu0 %6501  ;;  %v9311_v9 = vmul.f32 %v8924_v0, %v10721_v16  ;;  %v10726_v16 = vld [vmem:[#allocation42_spill] sm:$0xff]  ;;  %v6805_v7 = vpack.i.bf16 %v2393_v17, %v2392_v15  ;;  %v10728_v15 = vld [vmem:[#allocation188_spill] sm:$0xff] }
 0x5e1   : > { %6786 = vrot.lane.b32.xlu1 %v6785_v60, %s7324_s4  ;;  %v2473_v60 = vmul.f32 %v8894_v21, %v10713_v49  ;;  %v10719_v49 = vld [vmem:[#allocation131_spill] sm:$0xff]  ;;  %v2065_v28 = vmul.f32 %v8769_v41, %v10726_v16  ;;  %v9347_v17 = vmul.f32 %v8934_v18, %v10728_v15 }
 0x5e2   : > { %6791 = vrot.lane.b32.xlu0 %v6790_v29, %s7325_s5  ;;  %v10715_v29 = vld [vmem:[#allocation76_spill] sm:$0xff]  ;;  %v9302_v19 = vmul.f32 %v8894_v21, %v10719_v49  ;;  %v6820_v49 = vpack.i.bf16 %v9260_v1, %v9257_v54  ;;  %v6810_v1 = vpack.i.bf16 %v3113_v39, %v3112_v31  ;;  %v6494_v31 = vunpack.i.h.bf16 %v9235_v27 }
 0x5e3   : > { %v9274_v22 = vpop.permute.xlu1 %6506  ;;  %v9284_v38 = vmul.f32 %v8894_v21, %v10715_v29  ;;  %v10720_v29 = vld [vmem:[#allocation151_spill] sm:$0xff]  ;;  %v6815_v25 = vpack.i.bf16 %v2473_v60, %v2472_v40  ;;  %v6493_v39 = vunpack.i.l.bf16 %v9235_v27  ;;  %v10729_v40 = vld [vmem:[#allocation173_spill] sm:$0xff]  ;;  %v6498_v60 = vunpack.i.l.bf16 %v9247_v42 }
 0x5e4   : > { %v9286_v55 = vpop.permute.xlu0 %6511  ;;  %v9307_v50 = vmul.f32 %v8934_v18, %v10720_v29  ;;  %v10725_v29 = vld [vmem:[#allocation99_spill] sm:$0xff] }
 0x5e5   : > { %6796 = vrot.lane.b32.xlu1 %v6795_v5, %s7325_s5  ;;  %v10724_v5 = vld [vmem:[#allocation138_spill] sm:$0xff]  ;;  %v2704_v32 = vmul.f32 %v8771_v61, %v10725_v29  ;;  %v6830_v29 = vpack.i.bf16 %v9294_v57, %v9290_v8  ;;  %v10730_v8 = vld [vmem:[#allocation75_spill] sm:$0xff]  ;;  %v6509_v61 = vunpack.i.h.bf16 %v9274_v22  ;;  %v6513_v33 = vunpack.i.l.bf16 %v9286_v55 }
 0x5e6   : > { %v2705_v21 = vmul.f32 %v8769_v41, %v10724_v5  ;;  %6801 = vrot.lane.b32.xlu0 %v6800_v26, %s7326_s26  ;;  %v6825_v5 = vpack.i.bf16 %v9284_v38, %v9280_v45  ;;  %v6835_v41 = vpack.i.bf16 %v9302_v19, %v9298_v51  ;;  %v9355_v26 = vmul.f32 %v8924_v0, %v10729_v40  ;;  %v10731_v51 = vld [vmem:[#allocation32_spill] sm:$0xff] }
 0x5e7   : > { %v9332_v23 = vpop.permute.xlu1 %6516  ;;  %v6503_v45 = vunpack.i.l.bf16 %v9253_v10  ;;  %v9361_v57 = vmul.f32 %v8934_v18, %v10730_v8  ;;  %v9365_v27 = vmul.f32 %v8924_v0, %v10731_v51  ;;  %v6504_v19 = vunpack.i.h.bf16 %v9253_v10 }
 0x5e8   : > { %v6522_v54 = vpop.permute.xlu0 %6521  ;;  %v9378_v8 = vmul.f32 %v8934_v18, %v10734_v34  ;;  %v6508_v51 = vunpack.i.l.bf16 %v9274_v22  ;;  %v6514_v10 = vunpack.i.h.bf16 %v9286_v55  ;;  %v4293_v14 = vsel %vm709_vm0, %v2704_v32, %v6493_v39 }
 0x5e9   : > { %6806 = vrot.lane.b32.xlu1 %v6805_v7, %s7326_s26  ;;  %v6499_v7 = vunpack.i.h.bf16 %v9247_v42  ;;  %v10733_v42 = vld [vmem:[#allocation191_spill] sm:$0xff]  ;;  %v6850_v34 = vpack.i.bf16 %v9355_v26, %v9347_v17  ;;  %v4176_v43 = vsel %vm709_vm0, %v2064_v59, %v6498_v60  ;;  %v4309_v22 = vsel %vm4192_vm2, %v4293_v14, %v6503_v45 }
 0x5ea   : > { %6811 = vrot.lane.b32.xlu0 %v6810_v1, %s7327_s1  ;;  %v10732_v1 = vld [vmem:[#allocation189_spill] sm:$0xff]  ;;  %v9374_v40 = vmul.f32 %v8924_v0, %v10733_v42  ;;  %v6524_v11 = vunpack.i.h.bf16 %v6522_v54  ;;  %v6523_v12 = vunpack.i.l.bf16 %v6522_v54  ;;  %v4325_v17 = vsel %vm4209_vm3, %v4309_v22, %v6513_v33 }
 0x5eb   : > { %v6527_v38 = vpop.permute.xlu1 %6526  ;;  %v9370_v15 = vmul.f32 %v8934_v18, %v10732_v1  ;;  %v4294_v1 = vsel %vm709_vm0, %v2705_v21, %v6494_v31  ;;  %v4177_v42 = vsel %vm709_vm0, %v2065_v28, %v6499_v7  ;;  %v6518_v21 = vunpack.i.l.bf16 %v9332_v23 }
 0x5ec   : > { %v6532_v16 = vpop.permute.xlu0 %6531  ;;  %v4193_v28 = vsel %vm4192_vm2, %v4176_v43, %v6508_v51  ;;  %v6519_v14 = vunpack.i.h.bf16 %v9332_v23  ;;  %v6528_v54 = vunpack.i.l.bf16 %v6527_v38  ;;  %v4341_v60 = vsel %vm1118_vm1, %v4325_v17, %v6523_v12 }
 0x5ed   : > { %6816 = vrot.lane.b32.xlu1 %v6815_v25, %s7327_s1  ;;  %v4310_v25 = vsel %vm4192_vm2, %v4294_v1, %v6504_v19  ;;  %v6534_v31 = vunpack.i.h.bf16 %v6532_v16  ;;  %v6533_v32 = vunpack.i.l.bf16 %v6532_v16  ;;  %v6529_v43 = vunpack.i.h.bf16 %v6527_v38 }
 0x5ee   : > { %6821 = vrot.lane.b32.xlu0 %v6820_v49, %s7328_s24  ;;  %v4194_v49 = vsel %vm4192_vm2, %v4177_v42, %v6509_v61  ;;  %v4326_v59 = vsel %vm4209_vm3, %v4310_v25, %v6514_v10  ;;  %v4210_v33 = vsel %vm4209_vm3, %v4193_v28, %v6518_v21  ;;  %v10735_v38 = vpack.i.bf16 %v9311_v9, %v9307_v50 }
 0x5ef   : > { %v6537_v55 = vpop.permute.xlu1 %6536  ;;  %v4342_v45 = vsel %vm1118_vm1, %v4326_v59, %v6524_v11  ;;  %v4357_v16 = vsel %vm4242_vm4, %v4341_v60, %v6533_v32  ;;  %v4211_v12 = vsel %vm4209_vm3, %v4194_v49, %v6519_v14  ;;  %v4226_v11 = vsel %vm1118_vm1, %v4210_v33, %v6528_v54  ;;  %v10737_v54 = vld [vmem:[#allocation87_spill] sm:$0xff] }
 0x5f0   : > { %v6542_v39 = vpop.permute.xlu0 %6541  ;;  %v6538_v19 = vunpack.i.l.bf16 %v6537_v55  ;;  %v6539_v51 = vunpack.i.h.bf16 %v6537_v55  ;;  %v4227_v25 = vsel %vm1118_vm1, %v4211_v12, %v6529_v43  ;;  %v10736_v14 = vpack.i.bf16 %v9319_v52, %v9315_v46  ;;  %v10744_v12 = vld [vmem:[#allocation62_spill] sm:$0xff] }
 0x5f1   : > { %6826 = vrot.lane.b32.xlu1 %v6825_v5, %s7328_s24  ;;  %v6544_v7 = vunpack.i.h.bf16 %v6542_v39  ;;  %v6543_v26 = vunpack.i.l.bf16 %v6542_v39  ;;  %v4358_v5 = vsel %vm4242_vm4, %v4342_v45, %v6534_v31  ;;  %v6855_v52 = vpack.i.bf16 %v9365_v27, %v9361_v57  ;;  %v10742_v57 = vld [vmem:[#allocation195_spill] sm:$0xff] }
 0x5f2   : > { %6831 = vrot.lane.b32.xlu0 %v6830_v29, %s7329_s21  ;;  %v4243_v21 = vsel %vm4242_vm4, %v4226_v11, %v6538_v19  ;;  %v4244_v39 = vsel %vm4242_vm4, %v4227_v25, %v6539_v51  ;;  %v10739_v19 = vld [vmem:[#allocation193_spill] sm:$0xff]  ;;  %v10740_v51 = vld [vmem:[#allocation98_spill] sm:$0xff]  ;;  %v3114_v27 = vmul.f32 %v8934_v18, %v10742_v57 }
 0x5f3   : > { %v6547_v61 = vpop.permute.xlu1 %6546  ;;  %v4373_v22 = vsel %vm4259_vm5, %v4357_v16, %v6543_v26  ;;  %v4374_v55 = vsel %vm4259_vm5, %v4358_v5, %v6544_v7  ;;  %v2315_v7 = vmul.f32 %v8924_v0, %v10737_v54  ;;  %v10738_v26 = vld [vmem:[#allocation157_spill] sm:$0xff]  ;;  %v6860_v5 = vpack.i.bf16 %v9374_v40, %v9370_v15  ;;  %v10747_v25 = vld [vmem:[#allocation198_spill] sm:$0xff] }
 0x5f4   : > { %v6552_v23 = vpop.permute.xlu0 %6551  ;;  %v6549_v10 = vunpack.i.h.bf16 %v6547_v61  ;;  %v6548_v1 = vunpack.i.l.bf16 %v6547_v61  ;;  %v3034_v60 = vmul.f32 %v8934_v18, %v10738_v26  ;;  %v3035_v61 = vmul.f32 %v8924_v0, %v10739_v19  ;;  %v10745_v11 = vld [vmem:[#allocation113_spill] sm:$0xff]  ;;  %v10755_v19 = vld [vmem:[#allocation103_spill] sm:$0xff] }
 0x5f5   : > { %6836 = vrot.lane.b32.xlu1 %v6835_v41, %s7329_s21  ;;  %v6554_v29 = vunpack.i.h.bf16 %v6552_v23  ;;  %v6553_v42 = vunpack.i.l.bf16 %v6552_v23  ;;  %v2394_v23 = vmul.f32 %v8934_v18, %v10740_v51  ;;  %v10752_v54 = vld [vmem:[#allocation133_spill] sm:$0xff]  ;;  %v9496_v26 = vmul.f32 %v8953_v4, %v8867_v44 }
 0x5f6   : > { %6841 = vrot.lane.b32.xlu0 %v10735_v38, %s7323_s30  ;;  %v4260_v9 = vsel %vm4259_vm5, %v4243_v21, %v6548_v1  ;;  %v4261_v59 = vsel %vm4259_vm5, %v4244_v39, %v6549_v10  ;;  %v6870_v10 = vpack.i.bf16 %v3035_v61, %v3034_v60  ;;  %v10741_v1 = vld [vmem:[#allocation49_spill] sm:$0xff]  ;;  %v2475_v38 = vmul.f32 %v8924_v0, %v10745_v11  ;;  %v10749_v39 = vld [vmem:[#allocation78_spill] sm:$0xff] }
 0x5f7   : > { %v6557_v41 = vpop.permute.xlu1 %6556  ;;  %v4389_v31 = vsel %vm4276_vm6, %v4373_v22, %v6553_v42  ;;  %v4390_v32 = vsel %vm4276_vm6, %v4374_v55, %v6554_v29  ;;  %v2395_v29 = vmul.f32 %v8924_v0, %v10741_v1  ;;  %v10743_v42 = vld [vmem:[#allocation194_spill] sm:$0xff]  ;;  %v10746_v22 = vld [vmem:[#allocation197_spill] sm:$0xff]  ;;  %v3195_v21 = vmul.f32 %v8924_v0, %v10747_v25  ;;  %v10758_v1 = vld [vmem:[#allocation27_spill] sm:$0xff] }
 0x5f8   : > { %v6559_v28 = vunpack.i.h.bf16 %v6557_v41  ;;  %v6558_v49 = vunpack.i.l.bf16 %v6557_v41  ;;  %v9421_v17 = vpop.permute.xlu0 %6561  ;;  %v4406_v50 = vpack.c.bf16 %v4390_v32, %v4389_v31  ;;  %v3115_v15 = vmul.f32 %v8924_v0, %v10743_v42  ;;  %v10748_v31 = vld [vmem:[#allocation122_spill] sm:$0xff]  ;;  %v10753_v60 = vld [vmem:[#allocation153_spill] sm:$0xff] }
 0x5f9   : > { %6846 = vrot.lane.b32.xlu1 %v10736_v14, %s7323_s30  ;;  %v3194_v55 = vmul.f32 %v8934_v18, %v10746_v22  ;;  %v9471_v32 = vmul.f32 %v8934_v18, %v10748_v31  ;;  %v2707_v61 = vmul.f32 %v8802_v47, %v10755_v19  ;;  %v6875_v51 = vpack.i.bf16 %v2395_v29, %v2394_v23  ;;  %v10759_v42 = vld [vmem:[#allocation65_spill] sm:$0xff] }
 0x5fa   : > { %v4277_v45 = vsel %vm4276_vm6, %v4260_v9, %v6558_v49  ;;  %v4278_v43 = vsel %vm4276_vm6, %v4261_v59, %v6559_v28  ;;  %6851 = vrot.lane.b32.xlu0 %v6850_v34, %s7324_s4  ;;  %4588 = vmatprep.mubr.bf16.mxu0 %v4406_v50  ;;  %v6865_v34 = vpack.i.bf16 %v2315_v7, %v9378_v8  ;;  %v10750_v49 = vld [vmem:[#allocation163_spill] sm:$0xff]  ;;  %v10751_v59 = vld [vmem:[#allocation92_spill] sm:$0xff] }
 0x5fb   : > { %v4405_v33 = vpack.c.bf16 %v4278_v43, %v4277_v45  ;;  %v9438_v16 = vpop.permute.xlu1 %6566  ;;  %v2474_v8 = vmul.f32 %v8934_v18, %v10744_v12  ;;  %v9475_v28 = vmul.f32 %v8924_v0, %v10749_v39  ;;  %v9479_v50 = vmul.f32 %v8934_v18, %v10750_v49  ;;  %v10760_v39 = vld [vmem:[#allocation77_spill] sm:$0xff] }
 0x5fc   : > { %v9442_v46 = vpop.permute.xlu0 %6571  ;;  %v9483_v9 = vmul.f32 %v8924_v0, %v8829_v36  ;;  %v9488_v14 = vmul.f32 %v8934_v18, %v10751_v59  ;;  %v9492_v7 = vmul.f32 %v8924_v0, %v10752_v54  ;;  %v9500_v45 = vmul.f32 %v8939_v63, %v10753_v60  ;;  %v10754_v36 = vld [vmem:[#allocation102_spill] sm:$0xff] }
 0x5fd   : > { %6856 = vrot.lane.b32.xlu1 %v6855_v52, %s7324_s4  ;;  %4589 = vmatmul.mubr.bf16.vlgmr.msra.gmra.mrb[48].mxu0 %v4405_v33  ;;  %v2706_v43 = vmul.f32 %v8806_v62, %v10754_v36  ;;  %v10756_v33 = vld [vmem:[#allocation15_spill] sm:$0xff]  ;;  %v9515_v57 = vmul.f32 %v8953_v4, %v10758_v1  ;;  %v9519_v12 = vmul.f32 %v8939_v63, %v10759_v42 }
 0x5fe   : > { %6861 = vrot.lane.b32.xlu0 %v6860_v5, %s7325_s5  ;;  %v2066_v52 = vmul.f32 %v8806_v62, %v10756_v33  ;;  %v10757_v5 = vld [vmem:[#allocation16_spill] sm:$0xff]  ;;  %v6880_v22 = vpack.i.bf16 %v3115_v15, %v3114_v27  ;;  %v6885_v25 = vpack.i.bf16 %v2475_v38, %v2474_v8  ;;  %v6890_v62 = vpack.i.bf16 %v3195_v21, %v3194_v55 }
 0x5ff   : > { %v9457_v40 = vpop.permute.xlu1 %6576  ;;  %v6905_v23 = vpack.i.bf16 %v9492_v7, %v9488_v14  ;;  %v6910_v29 = vpack.i.bf16 %v9500_v45, %v9496_v26  ;;  %v9532_v31 = vmul.f32 %v8953_v4, %v8915_v13  ;;  %v6564_v27 = vunpack.i.h.bf16 %v9421_v17 }
 0x600   : > { %v9467_v41 = vpop.permute.xlu0 %6581  ;;  %v6563_v15 = vunpack.i.l.bf16 %v9421_v17  ;;  %v6569_v8 = vunpack.i.h.bf16 %v9438_v16  ;;  %v9540_v38 = vmul.f32 %v8939_v63, %v8947_v58  ;;  %v6568_v55 = vunpack.i.l.bf16 %v9438_v16  ;;  %v10762_v58 = vld [vmem:[#allocation185_spill] sm:$0xff] }
 0x601   : > { %6866 = vrot.lane.b32.xlu1 %v6865_v34, %s7325_s5  ;;  %v2067_v34 = vmul.f32 %v8802_v47, %v10757_v5  ;;  %v6900_v47 = vpack.i.bf16 %v9483_v9, %v9479_v50  ;;  %v6573_v21 = vunpack.i.l.bf16 %v9442_v46  ;;  %v6915_v13 = vpack.i.bf16 %v9519_v12, %v9515_v57  ;;  %v10761_v50 = vld [vmem:[#allocation33_spill] sm:$0xff] }
 0x602   : > { %6871 = vrot.lane.b32.xlu0 %v6870_v10, %s7326_s26  ;;  %v6895_v10 = vpack.i.bf16 %v9475_v28, %v9471_v32  ;;  %v9548_v28 = vmul.f32 %v8953_v4, %v10760_v39  ;;  %v6574_v17 = vunpack.i.h.bf16 %v9442_v46  ;;  %v9553_v9 = vmul.f32 %v8939_v63, %v10761_v50  ;;  %v10764_v12 = vld [vmem:[#allocation89_spill] sm:$0xff] }
 0x603   : > { %v9511_v44 = vpop.permute.xlu1 %6586  ;;  %v9557_v16 = vmul.f32 %v8953_v4, %v10762_v58  ;;  %v9561_v59 = vmul.f32 %v8939_v63, %v8972_v56  ;;  %v6579_v14 = vunpack.i.h.bf16 %v9457_v40  ;;  %v6578_v54 = vunpack.i.l.bf16 %v9457_v40 }
 0x604   : > { %v6592_v11 = vpop.permute.xlu0 %6591  ;;  %v6584_v7 = vunpack.i.h.bf16 %v9467_v41  ;;  %v6583_v46 = vunpack.i.l.bf16 %v9467_v41  ;;  %v4296_v60 = vsel %vm709_vm0, %v2707_v61, %v6564_v27  ;;  %v4295_v36 = vsel %vm709_vm0, %v2706_v43, %v6563_v15 }
 0x605   : > { %6876 = vrot.lane.b32.xlu1 %v6875_v51, %s7326_s26  ;;  %v4179_v19 = vsel %vm709_vm0, %v2067_v34, %v6569_v8  ;;  %v6920_v56 = vpack.i.bf16 %v9540_v38, %v9532_v31  ;;  %v4178_v33 = vsel %vm709_vm0, %v2066_v52, %v6568_v55  ;;  %v4311_v40 = vsel %vm4192_vm2, %v4295_v36, %v6573_v21 }
 0x606   : > { %6881 = vrot.lane.b32.xlu0 %v6880_v22, %s7327_s1  ;;  %v6594_v5 = vunpack.i.h.bf16 %v6592_v11  ;;  %v6593_v51 = vunpack.i.l.bf16 %v6592_v11  ;;  %v4312_v1 = vsel %vm4192_vm2, %v4296_v60, %v6574_v17  ;;  %v6588_v61 = vunpack.i.l.bf16 %v9511_v44 }
 0x607   : > { %v6597_v32 = vpop.permute.xlu1 %6596  ;;  %v4195_v34 = vsel %vm4192_vm2, %v4178_v33, %v6578_v54  ;;  %v4328_v52 = vsel %vm4209_vm3, %v4312_v1, %v6584_v7  ;;  %v6589_v11 = vunpack.i.h.bf16 %v9511_v44  ;;  %v9608_v26 = vmul.f32 %v8939_v63, %v9045_v3 }
 0x608   : > { %v6602_v49 = vpop.permute.xlu0 %6601  ;;  %v6598_v31 = vunpack.i.l.bf16 %v6597_v32  ;;  %v4344_v38 = vsel %vm1118_vm1, %v4328_v52, %v6594_v5  ;;  %v6599_v55 = vunpack.i.h.bf16 %v6597_v32  ;;  %v4212_v17 = vsel %vm4209_vm3, %v4195_v34, %v6588_v61 }
 0x609   : > { %6886 = vrot.lane.b32.xlu1 %v6885_v25, %s7327_s1  ;;  %v6604_v42 = vunpack.i.h.bf16 %v6602_v49  ;;  %v6603_v43 = vunpack.i.l.bf16 %v6602_v49  ;;  %v4196_v25 = vsel %vm4192_vm2, %v4179_v19, %v6579_v14  ;;  %v6925_v34 = vpack.i.bf16 %v9553_v9, %v9548_v28  ;;  %v10765_v28 = vld [vmem:[#allocation159_spill] sm:$0xff] }
 0x60a   : > { %6891 = vrot.lane.b32.xlu0 %v6890_v62, %s7328_s24  ;;  %v4327_v62 = vsel %vm4209_vm3, %v4311_v40, %v6583_v46  ;;  %v4213_v7 = vsel %vm4209_vm3, %v4196_v25, %v6589_v11  ;;  %v4228_v32 = vsel %vm1118_vm1, %v4212_v17, %v6598_v31  ;;  %v6930_v52 = vpack.i.bf16 %v9561_v59, %v9557_v16  ;;  %v10768_v59 = vld [vmem:[#allocation51_spill] sm:$0xff] }
 0x60b   : > { %v6607_v41 = vpop.permute.xlu1 %6606  ;;  %v4343_v8 = vsel %vm1118_vm1, %v4327_v62, %v6593_v51  ;;  %v4229_v36 = vsel %vm1118_vm1, %v4213_v7, %v6599_v55  ;;  %v10763_v62 = vld [vmem:[#allocation39_spill] sm:$0xff]  ;;  %v3036_v11 = vmul.f32 %v8953_v4, %v8998_v6  ;;  %v3037_v9 = vmul.f32 %v8939_v63, %v10765_v28  ;;  %v10767_v6 = vld [vmem:[#allocation100_spill] sm:$0xff] }
 0x60c   : > { %v6612_v22 = vpop.permute.xlu0 %6611  ;;  %v6608_v21 = vunpack.i.l.bf16 %v6607_v41  ;;  %v4359_v49 = vsel %vm4242_vm4, %v4343_v8, %v6603_v43  ;;  %v6609_v50 = vunpack.i.h.bf16 %v6607_v41  ;;  %v2316_v57 = vmul.f32 %v8953_v4, %v10763_v62  ;;  %v10782_v62 = vld [vmem:[#allocation200_spill] sm:$0xff] }
 0x60d   : > { %6896 = vrot.lane.b32.xlu1 %v6895_v10, %s7328_s24  ;;  %v6614_v27 = vunpack.i.h.bf16 %v6612_v22  ;;  %v6613_v15 = vunpack.i.l.bf16 %v6612_v22  ;;  %v4360_v10 = vsel %vm4242_vm4, %v4344_v38, %v6604_v42  ;;  %v9618_v42 = vmul.f32 %v8953_v4, %v9202_v24 }
 0x60e   : > { %6901 = vrot.lane.b32.xlu0 %v6900_v47, %s7329_s21  ;;  %v4245_v19 = vsel %vm4242_vm4, %v4228_v32, %v6608_v21  ;;  %v4246_v5 = vsel %vm4242_vm4, %v4229_v36, %v6609_v50  ;;  %v2317_v24 = vmul.f32 %v8939_v63, %v10764_v12  ;;  %v9645_v31 = vmul.f32 %v8970_v30, %v9079_v48  ;;  %v10769_v50 = vld [vmem:[#allocation104_spill] sm:$0xff]  ;;  %v10773_v32 = vld [vmem:[#allocation123_spill] sm:$0xff]  ;;  %v10783_v12 = vld [vmem:[#allocation105_spill] sm:$0xff] }
 0x60f   : > { %v6617_v39 = vpop.permute.xlu1 %6616  ;;  %v4375_v46 = vsel %vm4259_vm5, %v4359_v49, %v6613_v15  ;;  %v4376_v60 = vsel %vm4259_vm5, %v4360_v10, %v6614_v27  ;;  %v10766_v27 = vld [vmem:[#allocation175_spill] sm:$0xff]  ;;  %v2396_v16 = vmul.f32 %v8953_v4, %v10767_v6  ;;  %v2397_v48 = vmul.f32 %v8939_v63, %v10768_v59 }
 0x610   : > { %v6622_v44 = vpop.permute.xlu0 %6621  ;;  %v6619_v58 = vunpack.i.h.bf16 %v6617_v39  ;;  %v6618_v14 = vunpack.i.l.bf16 %v6617_v39  ;;  %v9649_v15 = vmul.f32 %v8970_v30, %v10766_v27  ;;  %v6935_v38 = vpack.i.bf16 %v2317_v24, %v2316_v57  ;;  %v10784_v24 = vld [vmem:[#allocation199_spill] sm:$0xff] }
 0x611   : > { %6906 = vrot.lane.b32.xlu1 %v6905_v23, %s7329_s21  ;;  %v6624_v47 = vunpack.i.h.bf16 %v6622_v44  ;;  %v6623_v54 = vunpack.i.l.bf16 %v6622_v44  ;;  %v3116_v55 = vmul.f32 %v8953_v4, %v9012_v35  ;;  %v6960_v21 = vpack.i.bf16 %v9608_v26, %v9618_v42  ;;  %v10770_v35 = vld [vmem:[#allocation187_spill] sm:$0xff]  ;;  %v10779_v42 = vld [vmem:[#allocation28_spill] sm:$0xff] }
 0x612   : > { %6911 = vrot.lane.b32.xlu0 %v6910_v29, %s7323_s30  ;;  %v4262_v45 = vsel %vm4259_vm5, %v4245_v19, %v6618_v14  ;;  %v4263_v29 = vsel %vm4259_vm5, %v4246_v5, %v6619_v58  ;;  %v6940_v17 = vpack.i.bf16 %v3037_v9, %v3036_v11  ;;  %v9677_v44 = vmul.f32 %v8970_v30, %v10769_v50  ;;  %v10771_v14 = vld [vmem:[#allocation64_spill] sm:$0xff]  ;;  %v10776_v5 = vld [vmem:[#allocation165_spill] sm:$0xff] }
 0x613   : > { %v6627_v23 = vpop.permute.xlu1 %6626  ;;  %v4391_v33 = vsel %vm4276_vm6, %v4375_v46, %v6623_v54  ;;  %v4392_v40 = vsel %vm4276_vm6, %v4376_v60, %v6624_v47  ;;  %v9681_v58 = vmul.f32 %v8967_v2, %v10770_v35  ;;  %v2476_v47 = vmul.f32 %v8953_v4, %v10771_v14  ;;  %v10772_v54 = vld [vmem:[#allocation115_spill] sm:$0xff]  ;;  %v10774_v19 = vld [vmem:[#allocation80_spill] sm:$0xff]  ;;  %v10786_v9 = vld [vmem:[#allocation17_spill] sm:$0xff] }
 0x614   : > { %v6629_v51 = vunpack.i.h.bf16 %v6627_v23  ;;  %v6628_v41 = vunpack.i.l.bf16 %v6627_v23  ;;  %v9604_v1 = vpop.permute.xlu0 %6631  ;;  %v4408_v61 = vpack.c.bf16 %v4392_v40, %v4391_v33  ;;  %v2477_v7 = vmul.f32 %v8939_v63, %v10772_v54  ;;  %v10775_v33 = vld [vmem:[#allocation55_spill] sm:$0xff]  ;;  %v10785_v11 = vld [vmem:[#allocation44_spill] sm:$0xff] }
 0x615   : > { %6916 = vrot.lane.b32.xlu1 %v6915_v13, %s7323_s30  ;;  %v9633_v13 = vmul.f32 %v8967_v2, %v9099_v53  ;;  %v9653_v53 = vmul.f32 %v8967_v2, %v9112_v37  ;;  %v3117_v37 = vmul.f32 %v8939_v63, %v9031_v20  ;;  %v6945_v20 = vpack.i.bf16 %v2397_v48, %v2396_v16  ;;  %v10787_v54 = vld [vmem:[#allocation79_spill] sm:$0xff] }
 0x616   : > { %6921 = vrot.lane.b32.xlu0 %v6920_v56, %s7324_s4  ;;  %4596 = vmatprep.mubr.bf16.mxu0 %v4408_v61  ;;  %v4279_v43 = vsel %vm4276_vm6, %v4262_v45, %v6628_v41  ;;  %v4280_v3 = vsel %vm4276_vm6, %v4263_v29, %v6629_v51  ;;  %v2556_v46 = vmul.f32 %v8953_v4, %v10773_v32  ;;  %v10777_v61 = vld [vmem:[#allocation94_spill] sm:$0xff]  ;;  %v10778_v45 = vld [vmem:[#allocation135_spill] sm:$0xff]  ;;  %v6634_v6 = vunpack.i.h.bf16 %v9604_v1 }
 0x617   : > { %v9623_v22 = vpop.permute.xlu1 %6636  ;;  %v4407_v25 = vpack.c.bf16 %v4280_v3, %v4279_v43  ;;  %v6980_v49 = vpack.i.bf16 %v9633_v13, %v9645_v31  ;;  %v6990_v10 = vpack.i.bf16 %v9653_v53, %v9649_v15  ;;  %v6950_v36 = vpack.i.bf16 %v3117_v37, %v3116_v55  ;;  %v10780_v3 = vld [vmem:[#allocation67_spill] sm:$0xff]  ;;  %v10791_v53 = vld [vmem:[#allocation128_spill] sm:$0xff] }
 0x618   : > { %v9635_v56 = vpop.permute.xlu0 %6641  ;;  %v2557_v23 = vmul.f32 %v8939_v63, %v10774_v19  ;;  %v3276_v40 = vmul.f32 %v8953_v4, %v10775_v33  ;;  %v3277_v51 = vmul.f32 %v8939_v63, %v10776_v5  ;;  %v9701_v26 = vmul.f32 %v8953_v4, %v10777_v61 }
 0x619   : > { %6926 = vrot.lane.b32.xlu1 %v6925_v34, %s7324_s4  ;;  %4597 = vmatmul.mubr.bf16.gmra.mrb[52].mxu0 %v4407_v25  ;;  %v9705_v29 = vmul.f32 %v8939_v63, %v10778_v45  ;;  %v9709_v43 = vmul.f32 %v8970_v30, %v10779_v42  ;;  %v9713_v34 = vmul.f32 %v8967_v2, %v10780_v3  ;;  %v10781_v25 = vld [vmem:[#allocation140_spill] sm:$0xff]  ;;  %v6633_v16 = vunpack.i.l.bf16 %v9604_v1 }
 0x61a   : > { %6931 = vrot.lane.b32.xlu0 %v6930_v52, %s7325_s5  ;;  %v2708_v57 = vmul.f32 %v10782_v62, %v10781_v25  ;;  %v2709_v52 = vmul.f32 %v10784_v24, %v10783_v12  ;;  %v2068_v28 = vmul.f32 %v10782_v62, %v10785_v11  ;;  %v2069_v27 = vmul.f32 %v10784_v24, %v10786_v9 }
 0x61b   : > { %v9661_v8 = vpop.permute.xlu1 %6646  ;;  %v6639_v59 = vunpack.i.h.bf16 %v9623_v22  ;;  %v6955_v48 = vpack.i.bf16 %v2477_v7, %v2476_v47  ;;  %v6643_v55 = vunpack.i.l.bf16 %v9635_v56  ;;  %v6970_v50 = vpack.i.bf16 %v3277_v51, %v3276_v40 }
 0x61c   : > { %v9669_v39 = vpop.permute.xlu0 %6651  ;;  %v6644_v35 = vunpack.i.h.bf16 %v9635_v56  ;;  %v6985_v1 = vpack.i.bf16 %v9713_v34, %v9709_v43  ;;  %v9737_v32 = vmul.f32 %v8970_v30, %v10787_v54  ;;  %v6648_v47 = vunpack.i.l.bf16 %v9661_v8  ;;  %v10790_v34 = vld [vmem:[#allocation91_spill] sm:$0xff] }
 0x61d   : > { %6936 = vrot.lane.b32.xlu1 %v6935_v38, %s7325_s5  ;;  %v6638_v38 = vunpack.i.l.bf16 %v9623_v22  ;;  %v6649_v22 = vunpack.i.h.bf16 %v9661_v8  ;;  %v6654_v7 = vunpack.i.h.bf16 %v9669_v39  ;;  %v4298_v56 = vsel %vm709_vm0, %v2709_v52, %v6634_v6 }
 0x61e   : > { %6941 = vrot.lane.b32.xlu0 %v6940_v17, %s7326_s26  ;;  %v6965_v17 = vpack.i.bf16 %v2557_v23, %v2556_v46  ;;  %v6653_v46 = vunpack.i.l.bf16 %v9669_v39  ;;  %v4181_v19 = vsel %vm709_vm0, %v2069_v27, %v6639_v59  ;;  %v10788_v23 = vld [vmem:[#allocation34_spill] sm:$0xff]  ;;  %v4314_v61 = vsel %vm4192_vm2, %v4298_v56, %v6644_v35 }
 0x61f   : > { %v9691_v60 = vpop.permute.xlu1 %6656  ;;  %v9750_v33 = vmul.f32 %v8967_v2, %v10788_v23  ;;  %v4180_v8 = vsel %vm709_vm0, %v2068_v28, %v6638_v38  ;;  %v4198_v3 = vsel %vm4192_vm2, %v4181_v19, %v6649_v22  ;;  %v4330_v62 = vsel %vm4209_vm3, %v4314_v61, %v6654_v7  ;;  %v10789_v61 = vld [vmem:[#allocation40_spill] sm:$0xff] }
 0x620   : > { %v6662_v41 = vpop.permute.xlu0 %6661  ;;  %v2318_v43 = vmul.f32 %v8970_v30, %v10789_v61  ;;  %v7000_v15 = vpack.i.bf16 %v9681_v58, %v9677_v44  ;;  %v10797_v58 = vld [vmem:[#allocation130_spill] sm:$0xff]  ;;  %v4655_v61 = vld [vmem:[%s10344_s15 + $0x10] sm:$0xff] }
 0x621   : > { %6946 = vrot.lane.b32.xlu1 %v6945_v20, %s7326_s26  ;;  %v6975_v20 = vpack.i.bf16 %v9705_v29, %v9701_v26  ;;  %v6664_v5 = vunpack.i.h.bf16 %v6662_v41  ;;  %v6663_v39 = vunpack.i.l.bf16 %v6662_v41  ;;  %v6658_v26 = vunpack.i.l.bf16 %v9691_v60 }
 0x622   : > { %6951 = vrot.lane.b32.xlu0 %v6950_v36, %s7327_s1  ;;  %v4297_v36 = vsel %vm709_vm0, %v2708_v57, %v6633_v16  ;;  %v6659_v41 = vunpack.i.h.bf16 %v9691_v60 }
 0x623   : > { %v6667_v37 = vpop.permute.xlu1 %6666  ;;  %v4313_v40 = vsel %vm4192_vm2, %v4297_v36, %v6643_v55  ;;  %v4346_v11 = vsel %vm1118_vm1, %v4330_v62, %v6664_v5  ;;  %v10796_v62 = vld [vmem:[#allocation129_spill] sm:$0xff] }
 0x624   : > { %v6672_v14 = vpop.permute.xlu0 %6671  ;;  %v4329_v25 = vsel %vm4209_vm3, %v4313_v40, %v6653_v46  ;;  %v6668_v57 = vunpack.i.l.bf16 %v6667_v37  ;;  %v6669_v28 = vunpack.i.h.bf16 %v6667_v37  ;;  %v4215_v35 = vsel %vm4209_vm3, %v4198_v3, %v6659_v41  ;;  %v10795_v3 = vld [vmem:[#allocation70_spill] sm:$0xff] }
 0x625   : > { %6956 = vrot.lane.b32.xlu1 %v6955_v48, %s7327_s1  ;;  %v6674_v45 = vunpack.i.h.bf16 %v6672_v14  ;;  %v6673_v29 = vunpack.i.l.bf16 %v6672_v14  ;;  %v4345_v52 = vsel %vm1118_vm1, %v4329_v25, %v6663_v39  ;;  %v6995_v39 = vpack.i.bf16 %v9750_v33, %v9737_v32  ;;  %v10794_v33 = vld [vmem:[#allocation196_spill] sm:$0xff] }
 0x626   : > { %6961 = vrot.lane.b32.xlu0 %v6960_v21, %s7328_s24  ;;  %v4197_v21 = vsel %vm4192_vm2, %v4180_v8, %v6648_v47  ;;  %v4231_v22 = vsel %vm1118_vm1, %v4215_v35, %v6669_v28  ;;  %v3119_v25 = vmul.f32 %v8967_v2, %v10795_v3  ;;  %v9822_v44 = vmul.f32 %v8970_v30, %v10796_v62  ;;  %v4657_v3 = vld [vmem:[%s10344_s15 + $0x20] sm:$0xff] }
 0x627   : > { %v6677_v51 = vpop.permute.xlu1 %6676  ;;  %v4214_v6 = vsel %vm4209_vm3, %v4197_v21, %v6658_v26  ;;  %v4361_v16 = vsel %vm4242_vm4, %v4345_v52, %v6673_v29  ;;  %v4362_v59 = vsel %vm4242_vm4, %v4346_v11, %v6674_v45  ;;  %v10792_v26 = vld [vmem:[#allocation68_spill] sm:$0xff]  ;;  %v10793_v29 = vld [vmem:[#allocation83_spill] sm:$0xff]  ;;  %v3118_v21 = vmul.f32 %v8970_v30, %v10794_v33  ;;  %v10799_v11 = vld [vmem:[#allocation101_spill] sm:$0xff] }
 0x628   : > { %v6682_v42 = vpop.permute.xlu0 %6681  ;;  %v6678_v9 = vunpack.i.l.bf16 %v6677_v51  ;;  %v6679_v48 = vunpack.i.h.bf16 %v6677_v51  ;;  %v4230_v37 = vsel %vm1118_vm1, %v4214_v6, %v6668_v57  ;;  %v3039_v45 = vmul.f32 %v8967_v2, %v10792_v26  ;;  %v10798_v57 = vld [vmem:[#allocation125_spill] sm:$0xff] }
 0x629   : > { %6966 = vrot.lane.b32.xlu1 %v6965_v17, %s7328_s24  ;;  %v6684_v12 = vunpack.i.h.bf16 %v6682_v42  ;;  %v6683_v24 = vunpack.i.l.bf16 %v6682_v42  ;;  %v9812_v42 = vmul.f32 %v8967_v2, %v10793_v29  ;;  %v9827_v41 = vmul.f32 %v8970_v30, %v10797_v58 }
 0x62a   : > { %6971 = vrot.lane.b32.xlu0 %v6970_v50, %s7329_s21  ;;  %v4247_v47 = vsel %vm4242_vm4, %v4230_v37, %v6678_v9  ;;  %v4248_v56 = vsel %vm4242_vm4, %v4231_v22, %v6679_v48  ;;  %v2398_v28 = vmul.f32 %v8970_v30, %v10799_v11  ;;  %v10800_v9 = vld [vmem:[#allocation53_spill] sm:$0xff]  ;;  %v10804_v37 = vld [vmem:[#allocation116_spill] sm:$0xff] }
 0x62b   : > { %v6687_v27 = vpop.permute.xlu1 %6686  ;;  %v4377_v14 = vsel %vm4259_vm5, %v4361_v16, %v6683_v24  ;;  %v4378_v54 = vsel %vm4259_vm5, %v4362_v59, %v6684_v12  ;;  %v9831_v12 = vmul.f32 %v8967_v2, %v10798_v57  ;;  %v7020_v59 = vpack.i.bf16 %v3119_v25, %v3118_v21  ;;  %v4654_v22 = vld [vmem:[%s10344_s15 + $0x8] sm:$0xff] }
 0x62c   : > { %v6692_v60 = vpop.permute.xlu0 %6691  ;;  %v6689_v38 = vunpack.i.h.bf16 %v6687_v27  ;;  %v6688_v55 = vunpack.i.l.bf16 %v6687_v27  ;;  %v2399_v27 = vmul.f32 %v8967_v2, %v10800_v9  ;;  %v7030_v48 = vpack.i.bf16 %v9812_v42, %v9822_v44  ;;  %v4658_v25 = vld [vmem:[%s10344_s15 + $0x28] sm:$0xff] }
 0x62d   : > { %6976 = vrot.lane.b32.xlu1 %v6975_v20, %s7329_s21  ;;  %v6694_v17 = vunpack.i.h.bf16 %v6692_v60  ;;  %v6693_v50 = vunpack.i.l.bf16 %v6692_v60  ;;  %v7040_v60 = vpack.i.bf16 %v9831_v12, %v9827_v41  ;;  %v4663_v41 = vld [vmem:[%s10344_s15 + $0x50] sm:$0xff]  ;;  %v4664_v12 = vld [vmem:[%s10344_s15 + $0x58] sm:$0xff] }
 0x62e   : > { %6981 = vrot.lane.b32.xlu0 %v6980_v49, %s7323_s30  ;;  %v4264_v40 = vsel %vm4259_vm5, %v4247_v47, %v6688_v55  ;;  %v4265_v13 = vsel %vm4259_vm5, %v4248_v56, %v6689_v38  ;;  %v10801_v38 = vld [vmem:[#allocation142_spill] sm:$0xff]  ;;  %v10806_v56 = vld [vmem:[#allocation81_spill] sm:$0xff] }
 0x62f   : > { %v6697_v20 = vpop.permute.xlu1 %6696  ;;  %v4393_v7 = vsel %vm4276_vm6, %v4377_v14, %v6693_v50  ;;  %v4394_v46 = vsel %vm4276_vm6, %v4378_v54, %v6694_v17  ;;  %v10802_v55 = vld [vmem:[#allocation202_spill] sm:$0xff]  ;;  %v2479_v14 = vmul.f32 %v8967_v2, %v10804_v37  ;;  %v4653_v54 = vld [vmem:[%s10344_s15] sm:$0xff] }
 0x630   : > { %v6699_v36 = vunpack.i.h.bf16 %v6697_v20  ;;  %v6698_v19 = vunpack.i.l.bf16 %v6697_v20  ;;  %v9782_v23 = vpop.permute.xlu0 %6701  ;;  %v4410_v8 = vpack.c.bf16 %v4394_v46, %v4393_v7  ;;  %v2710_v17 = vmul.f32 %v10802_v55, %v10801_v38  ;;  %v10803_v50 = vld [vmem:[#allocation66_spill] sm:$0xff]  ;;  %v10805_v7 = vld [vmem:[#allocation124_spill] sm:$0xff] }
 0x631   : > { %6986 = vrot.lane.b32.xlu1 %v6985_v1, %s7323_s30  ;;  %v2319_v1 = vmul.f32 %v8967_v2, %v10790_v34  ;;  %v2478_v35 = vmul.f32 %v8970_v30, %v10803_v50  ;;  %v7015_v20 = vpack.i.bf16 %v2399_v27, %v2398_v28  ;;  %v9864_v46 = vmul.f32 %v8970_v30, %v10805_v7  ;;  %v10809_v34 = vld [vmem:[#allocation107_spill] sm:$0xff] }
 0x632   : > { %6991 = vrot.lane.b32.xlu0 %v6990_v10, %s7324_s4  ;;  %4604 = vmatprep.mubr.bf16.mxu0 %v4410_v8  ;;  %v4281_v31 = vsel %vm4276_vm6, %v4264_v40, %v6698_v19  ;;  %v4282_v49 = vsel %vm4276_vm6, %v4265_v13, %v6699_v36  ;;  %v3038_v10 = vmul.f32 %v8970_v30, %v10791_v53  ;;  %v6704_v8 = vunpack.i.h.bf16 %v9782_v23 }
 0x633   : > { %v9796_v5 = vpop.permute.xlu1 %6706  ;;  %v4409_v51 = vpack.c.bf16 %v4282_v49, %v4281_v31  ;;  %v7005_v52 = vpack.i.bf16 %v2319_v1, %v2318_v43  ;;  %v9868_v36 = vmul.f32 %v8967_v2, %v10806_v56  ;;  %v6279_v19 = vpack.c.bf16 %v4654_v22, %v4653_v54  ;;  %v10807_v31 = vld [vmem:[#allocation97_spill] sm:$0xff]  ;;  %v4656_v43 = vld [vmem:[%s10344_s15 + $0x18] sm:$0xff] }
 0x634   : > { %v9814_v32 = vpop.permute.xlu0 %6711  ;;  %v7010_v6 = vpack.i.bf16 %v3039_v45, %v3038_v10  ;;  %v6703_v40 = vunpack.i.l.bf16 %v9782_v23  ;;  %v9876_v49 = vmul.f32 %v8970_v30, %v10807_v31  ;;  %v10810_v23 = vld [vmem:[#allocation201_spill] sm:$0xff]  ;;  %v6709_v10 = vunpack.i.h.bf16 %v9796_v5  ;;  %v10812_v45 = vld [vmem:[#allocation18_spill] sm:$0xff] }
 0x635   : > { %6996 = vrot.lane.b32.xlu1 %v6995_v39, %s7324_s4  ;;  %4605 = vmatmul.mubr.bf16.gmra.mrb[56].mxu0 %v4409_v51  ;;  %v10808_v39 = vld [vmem:[#allocation137_spill] sm:$0xff]  ;;  %v2711_v1 = vmul.f32 %v10810_v23, %v10809_v34  ;;  %v6283_v26 = vpack.c.bf16 %v4656_v43, %v4655_v61  ;;  %v2071_v29 = vmul.f32 %v10810_v23, %v10812_v45  ;;  %v6708_v42 = vunpack.i.l.bf16 %v9796_v5  ;;  %s10393_s4 = sshll.u32 %s7465_s3, 11 }
 0x636   : > { %7001 = vrot.lane.b32.xlu0 %v7000_v15, %s7325_s5  ;;  %v9880_v51 = vmul.f32 %v8967_v2, %v10808_v39  ;;  %v10811_v15 = vld [vmem:[#allocation46_spill] sm:$0xff]  ;;  %6280 = vmatprep.subr.bf16.mxu0 %v6279_v19  ;;  %v6714_v33 = vunpack.i.h.bf16 %v9814_v32  ;;  %v6713_v21 = vunpack.i.l.bf16 %v9814_v32  ;;  %v7025_v5 = vpack.i.bf16 %v2479_v14, %v2478_v35 }
 0x637   : > { %v9834_v24 = vpop.permute.xlu1 %6716  ;;  %v2070_v53 = vmul.f32 %v10802_v55, %v10811_v15  ;;  %6282 = vmatpush3.bf16.msra.mxu0 %v6279_v19  ;;  %v7035_v58 = vpack.i.bf16 %v9868_v36, %v9864_v46  ;;  %v6287_v32 = vpack.c.bf16 %v4658_v25, %v4657_v3  ;;  %6327 = vmatprep.subr.bf16.mxu1 %v6279_v19  ;;  %v4659_v55 = vld [vmem:[%s10344_s15 + $0x30] sm:$0xff] }
 0x638   : > { %v9840_v16 = vpop.permute.xlu0 %6721  ;;  %v6718_v62 = vunpack.i.l.bf16 %v9834_v24  ;;  %6284 = vmatprep.subr.bf16.mxu0 %v6283_v26  ;;  %v4300_v57 = vsel %vm709_vm0, %v2711_v1, %v6704_v8  ;;  %v6719_v11 = vunpack.i.h.bf16 %v9834_v24  ;;  %v7045_v9 = vpack.i.bf16 %v9880_v51, %v9876_v49  ;;  %6335 = vmatpush3.bf16.msra.mxu1 %v6279_v19  ;;  %v4660_v24 = vld [vmem:[%s10344_s15 + $0x38] sm:$0xff]  ;;  %v4662_v19 = vld [vmem:[%s10344_s15 + $0x48] sm:$0xff] }
 0x639   : > { %7006 = vrot.lane.b32.xlu1 %v7005_v52, %s7325_s5  ;;  %v4299_v52 = vsel %vm709_vm0, %v2710_v17, %v6703_v40  ;;  %v4183_v27 = vsel %vm709_vm0, %v2071_v29, %v6709_v10  ;;  %6328 = vmatprep.subr.bf16.mxu1 %v6283_v26  ;;  %v4182_v17 = vsel %vm709_vm0, %v2070_v53, %v6708_v42 }
 0x63a   : > { %7011 = vrot.lane.b32.xlu0 %v7010_v6, %s7326_s26  ;;  %v6724_v6 = vunpack.i.h.bf16 %v9840_v16  ;;  %v4315_v50 = vsel %vm4192_vm2, %v4299_v52, %v6713_v21  ;;  %v4316_v35 = vsel %vm4192_vm2, %v4300_v57, %v6714_v33  ;;  %v6291_v22 = vpack.c.bf16 %v4660_v24, %v4659_v55 }
 0x63b   : > { %v9860_v47 = vpop.permute.xlu1 %6726  ;;  %6286 = vmatpush3.bf16.msra.mxu0 %v6283_v26 }
 0x63c   : > { %v9872_v13 = vpop.permute.xlu0 %6731  ;;  %v6728_v38 = vunpack.i.l.bf16 %v9860_v47  ;;  %6288 = vmatprep.subr.bf16.mxu0 %v6287_v32  ;;  %v6729_v7 = vunpack.i.h.bf16 %v9860_v47  ;;  %6336 = vmatpush3.bf16.msra.mxu1 %v6283_v26  ;;  %v4332_v40 = vsel %vm4209_vm3, %v4316_v35, %v6724_v6  ;;  %v4666_v35 = vld [vmem:[%s10344_s15 + $0x68] sm:$0xff] }
 0x63d   : > { %7016 = vrot.lane.b32.xlu1 %v7015_v20, %s7326_s26  ;;  %v6734_v37 = vunpack.i.h.bf16 %v9872_v13  ;;  %v6733_v14 = vunpack.i.l.bf16 %v9872_v13  ;;  %v4200_v20 = vsel %vm4192_vm2, %v4183_v27, %v6719_v11  ;;  %6329 = vmatprep.subr.bf16.mxu1 %v6287_v32  ;;  %s10832_s26 = sld [smem:[#allocation212_spill]] }
 0x63e   : > { %7021 = vrot.lane.b32.xlu0 %v7020_v59, %s7327_s1  ;;  %v6723_v59 = vunpack.i.l.bf16 %v9840_v16  ;;  %v4199_v16 = vsel %vm4192_vm2, %v4182_v17, %v6718_v62  ;;  %v4217_v1 = vsel %vm4209_vm3, %v4200_v20, %v6729_v7 }
 0x63f   : > { %v9907_v44 = vpop.permute.xlu1 %6736  ;;  %v4216_v13 = vsel %vm4209_vm3, %v4199_v16, %v6728_v38  ;;  %6290 = vmatpush3.bf16.msra.mxu0 %v6287_v32  ;;  %v4348_v61 = vsel %vm1118_vm1, %v4332_v40, %v6734_v37 }
 0x640   : > { %v6742_v28 = vpop.permute.xlu0 %6741  ;;  %v4331_v8 = vsel %vm4209_vm3, %v4315_v50, %v6723_v59  ;;  %v6739_v47 = vunpack.i.h.bf16 %v9907_v44  ;;  %v6738_v31 = vunpack.i.l.bf16 %v9907_v44  ;;  %6292 = vmatprep.subr.bf16.mxu0 %v6291_v22  ;;  %6337 = vmatpush3.bf16.msra.mxu1 %v6287_v32  ;;  %v6299_v32 = vpack.c.bf16 %v4664_v12, %v4663_v41  ;;  %v4665_v50 = vld [vmem:[%s10344_s15 + $0x60] sm:$0xff] }
 0x641   : > { %7026 = vrot.lane.b32.xlu1 %v7025_v5, %s7327_s1  ;;  %v6744_v46 = vunpack.i.h.bf16 %v6742_v28  ;;  %v6743_v56 = vunpack.i.l.bf16 %v6742_v28  ;;  %v4347_v51 = vsel %vm1118_vm1, %v4331_v8, %v6733_v14  ;;  %6330 = vmatprep.subr.bf16.mxu1 %v6291_v22  ;;  %v6303_v16 = vpack.c.bf16 %v4666_v35, %v4665_v50  ;;  %v10814_v8 = vld [vmem:[#allocation204_spill] sm:$0xff]  ;;  %s5217_s1 = sshll.u32 %s7887_s23, 4  ;;  %s7330_s23 = smov [#allocation2]   ;;  %s10228_s1 = int_to_ptr.vmem [resolvable:$true] %s5217_s1 }
 0x642   : > { %7031 = vrot.lane.b32.xlu0 %v7030_v48, %s7328_s24  ;;  %v4661_v48 = vld [vmem:[%s10344_s15 + $0x40] sm:$0xff]  ;;  %v4232_v33 = vsel %vm1118_vm1, %v4216_v13, %v6738_v31  ;;  %v4233_v21 = vsel %vm1118_vm1, %v4217_v1, %v6739_v47  ;;  %s7211_s30 = scalar_lea.vmem %s10228_s1, 2048  ;;  %s7215_s6 = sshll.u32 %s7330_s23, 4  ;;  %s7216_s6 = int_to_ptr.vmem [resolvable:$false] %s7215_s6 }
 0x643   : > { %v6747_v54 = vpop.permute.xlu1 %6746  ;;  %v6295_v23 = vpack.c.bf16 %v4662_v19, %v4661_v48  ;;  %v4363_v15 = vsel %vm4242_vm4, %v4347_v51, %v6743_v56  ;;  %v4364_v53 = vsel %vm4242_vm4, %v4348_v61, %v6744_v46  ;;  %6294 = vmatpush3.bf16.msra.mxu0 %v6291_v22  ;;  %v10813_v19 = vld [vmem:[#allocation143_spill] sm:$0xff]  ;;  %v10817_v61 = vld [vmem:[#allocation48_spill] sm:$0xff]  ;;  %s10226_s28 = scalar_lea.hbm %s10832_s26, %s10393_s4  ;;  %p7212_p11 = scmp.ne.s32.totalorder %s10228_s1, %s7211_s30 }
 0x644   : > { %v6752_v36 = vpop.permute.xlu0 %6751  ;;  %v6748_v43 = vunpack.i.l.bf16 %v6747_v54  ;;  %v6749_v10 = vunpack.i.h.bf16 %v6747_v54  ;;  %6338 = vmatpush3.bf16.msra.mxu1 %v6291_v22  ;;  %v4667_v54 = vld [vmem:[%s10344_s15 + $0x70] sm:$0xff]  ;;  %v4668_v22 = vld [vmem:[%s10344_s15 + $0x78] sm:$0xff]  ;;  %v2712_v40 = vmul.f32 %v10814_v8, %v10813_v19  ;;  %s7217_s5 = scalar_lea.vmem %s7216_s6, 4096  ;;  %p7218_p0 = scmp.lt.s32.totalorder %s10228_s1, %s7216_s6 }
 0x645   : > { %7036 = vrot.lane.b32.xlu1 %v7035_v58, %s7328_s24  ;;  %v6754_v49 = vunpack.i.h.bf16 %v6752_v36  ;;  %v6753_v39 = vunpack.i.l.bf16 %v6752_v36  ;;  %6296 = vmatprep.subr.bf16.mxu0 %v6295_v23  ;;  %v6307_v7 = vpack.c.bf16 %v4668_v22, %v4667_v54  ;;  %s10833_s24 = smov %s10832_s26  ;;  %p7213_p12 = pnand %p7212_p11, %p7482_p5 }
 0x646   : > { %7041 = vrot.lane.b32.xlu0 %v7040_v60, %s7329_s21  ;;  %v4249_v62 = vsel %vm4242_vm4, %v4232_v33, %v6748_v43  ;;  %v4250_v57 = vsel %vm4242_vm4, %v4233_v21, %v6749_v10  ;;  %6331 = vmatprep.subr.bf16.mxu1 %v6295_v23  ;;  %v2072_v43 = vmul.f32 %v10814_v8, %v10817_v61  ;;  %p7219_p1 = scmp.lt.s32.totalorder %s7217_s5, %s7211_s30 }
 0x647   : > { %v6757_v34 = vpop.permute.xlu1 %6756  ;;  %v4379_v3 = vsel %vm4259_vm5, %v4363_v15, %v6753_v39  ;;  %v4380_v25 = vsel %vm4259_vm5, %v4364_v53, %v6754_v49  ;;  %6298 = vmatpush3.bf16.msra.mxu0 %v6295_v23  ;;  %v10815_v49 = vld [vmem:[#allocation109_spill] sm:$0xff]  ;;  %v10816_v39 = vld [vmem:[#allocation203_spill] sm:$0xff]  ;;  %p7214_p13 = pneg %p7213_p12 }
 0x648   : > { %v6762_v26 = vpop.permute.xlu0 %6761  ;;  %v6759_v60 = vunpack.i.h.bf16 %v6757_v34  ;;  %v6758_v45 = vunpack.i.l.bf16 %v6757_v34  ;;  %6300 = vmatprep.subr.bf16.mxu0 %v6299_v32  ;;  %6339 = vmatpush3.bf16.msra.mxu1 %v6295_v23  ;;  %v2713_v51 = vmul.f32 %v10816_v39, %v10815_v49  ;;  %v10818_v34 = vld [vmem:[#allocation19_spill] sm:$0xff]  ;;  %p7220_p2 = por %p7219_p1, %p7218_p0 }
 0x649   : > { %7046 = vrot.lane.b32.xlu1 %v7045_v9, %s7329_s21  ;;  %v6764_v29 = vunpack.i.h.bf16 %v6762_v26  ;;  %v6763_v42 = vunpack.i.l.bf16 %v6762_v26  ;;  %6332 = vmatprep.subr.bf16.mxu1 %v6299_v32  ;;  %v2073_v23 = vmul.f32 %v10816_v39, %v10818_v34  ;;  %s10205_s21 = scalar_lea.vmem [#allocation4], %s5356_s0 }
 0x64a   : > { %v4266_v27 = vsel %vm4259_vm5, %v4249_v62, %v6758_v45  ;;  %v4267_v6 = vsel %vm4259_vm5, %v4250_v57, %v6759_v60  ;;  %p7221_p3 = pnand %p7220_p2, %p7214_p13 }
 0x64b   : > { %v6767_v44 = vpop.permute.xlu1 %6766  ;;  %v4395_v5 = vsel %vm4276_vm6, %v4379_v3, %v6763_v42  ;;  %v4396_v58 = vsel %vm4276_vm6, %v4380_v25, %v6764_v29  ;;  %6302 = vmatpush3.bf16.msra.mxu0 %v6299_v32 }
 0x64c   : > { %v6769_v52 = vunpack.i.h.bf16 %v6767_v44  ;;  %v6768_v11 = vunpack.i.l.bf16 %v6767_v44  ;;  %v6772_v28 = vpop.permute.xlu0 %6771  ;;  %v4412_v9 = vpack.c.bf16 %v4396_v58, %v4395_v5  ;;  %6304 = vmatprep.subr.bf16.mxu0 %v6303_v16  ;;  %6340 = vmatpush3.bf16.msra.mxu1 %v6299_v32 }
 0x64d   : > { %6333 = vmatprep.subr.bf16.mxu1 %v6303_v16  ;;  %v6774_v56 = vunpack.i.h.bf16 %v6772_v28  ;;  %v6773_v36 = vunpack.i.l.bf16 %v6772_v28 }
 0x64e   : > { %4612 = vmatprep.mubr.bf16.mxu0 %v4412_v9  ;;  %v4283_v59 = vsel %vm4276_vm6, %v4266_v27, %v6768_v11  ;;  %v4284_v38 = vsel %vm4276_vm6, %v4267_v6, %v6769_v52 }
 0x64f   : > { %v6777_v55 = vpop.permute.xlu1 %6776  ;;  %v4411_v24 = vpack.c.bf16 %v4284_v38, %v4283_v59  ;;  %6306 = vmatpush3.bf16.msra.mxu0 %v6303_v16  ;;  %v4302_v12 = vsel %vm709_vm0, %v2713_v51, %v6774_v56  ;;  %v4301_v60 = vsel %vm709_vm0, %v2712_v40, %v6773_v36 }
 0x650   : > { %v6782_v17 = vpop.permute.xlu0 %6781  ;;  %6341 = vmatpush3.bf16.msra.mxu1 %v6303_v16  ;;  %6308 = vmatprep.subr.bf16.mxu0 %v6307_v7  ;;  %v6779_v48 = vunpack.i.h.bf16 %v6777_v55  ;;  %v6778_v13 = vunpack.i.l.bf16 %v6777_v55 }
 0x651   : > { %4613 = vmatmul.mubr.bf16.gmra.mrb[60].mxu0 %v4411_v24  ;;  %6334 = vmatprep.subr.bf16.mxu1 %v6307_v7  ;;  %v6783_v47 = vunpack.i.l.bf16 %v6782_v17  ;;  %v6784_v1 = vunpack.i.h.bf16 %v6782_v17 }
 0x652   : > { %v4185_v45 = vsel %vm709_vm0, %v2073_v23, %v6779_v48  ;;  %v4184_v29 = vsel %vm709_vm0, %v2072_v43, %v6778_v13 }
 0x653   : > { %v6787_v37 = vpop.permute.xlu1 %6786  ;;  %6310 = vmatpush3.bf16.msra.mxu0 %v6307_v7  ;;  %v4317_v42 = vsel %vm4192_vm2, %v4301_v60, %v6783_v47  ;;  %v4318_v25 = vsel %vm4192_vm2, %v4302_v12, %v6784_v1 }
 0x654   : > { %v6792_v14 = vpop.permute.xlu0 %6791  ;;  %6342 = vmatpush3.bf16.msra.mxu1 %v6307_v7  ;;  %v6789_v53 = vunpack.i.h.bf16 %v6787_v37  ;;  %v6788_v10 = vunpack.i.l.bf16 %v6787_v37 }
 0x655   : > { %v6794_v26 = vunpack.i.h.bf16 %v6792_v14  ;;  %v6793_v41 = vunpack.i.l.bf16 %v6792_v14 }
 0x656   : > { %v4201_v32 = vsel %vm4192_vm2, %v4184_v29, %v6788_v10  ;;  %v4202_v57 = vsel %vm4192_vm2, %v4185_v45, %v6789_v53 }
 0x657   : > { %v6797_v20 = vpop.permute.xlu1 %6796  ;;  %v4333_v52 = vsel %vm4209_vm3, %v4317_v42, %v6793_v41  ;;  %v4334_v11 = vsel %vm4209_vm3, %v4318_v25, %v6794_v26 }
 0x658   : > { %v6802_v46 = vpop.permute.xlu0 %6801  ;;  %v6798_v62 = vunpack.i.l.bf16 %v6797_v20  ;;  %v6799_v28 = vunpack.i.h.bf16 %v6797_v20 }
 0x659   : > { %v6804_v33 = vunpack.i.h.bf16 %v6802_v46  ;;  %v6803_v21 = vunpack.i.l.bf16 %v6802_v46 }
 0x65a   : > { %v4218_v50 = vsel %vm4209_vm3, %v4201_v32, %v6798_v62  ;;  %v4219_v46 = vsel %vm4209_vm3, %v4202_v57, %v6799_v28  ;;  %v10822_v57 = vld [vmem:[#allocation20_spill] sm:$0xff] }
 0x65b   : > { %v6807_v31 = vpop.permute.xlu1 %6806  ;;  %v4349_v59 = vsel %vm1118_vm1, %v4333_v52, %v6803_v21  ;;  %v4350_v38 = vsel %vm1118_vm1, %v4334_v11, %v6804_v33  ;;  %v10819_v33 = vld [vmem:[#allocation144_spill] sm:$0xff]  ;;  %v2075_v52 = vmul.f32 %v8924_v0, %v10822_v57 }
 0x65c   : > { %v6812_v15 = vpop.permute.xlu0 %6811  ;;  %v6808_v9 = vunpack.i.l.bf16 %v6807_v31  ;;  %v6809_v55 = vunpack.i.h.bf16 %v6807_v31  ;;  %v2714_v21 = vmul.f32 %v8934_v18, %v10819_v33 }
 0x65d   : > { %v6814_v44 = vunpack.i.h.bf16 %v6812_v15  ;;  %v6813_v5 = vunpack.i.l.bf16 %v6812_v15 }
 0x65e   : > { %v4234_v56 = vsel %vm1118_vm1, %v4218_v50, %v6808_v9  ;;  %v4235_v19 = vsel %vm1118_vm1, %v4219_v46, %v6809_v55 }
 0x65f   : > { %v6817_v3 = vpop.permute.xlu1 %6816  ;;  %v4365_v35 = vsel %vm4242_vm4, %v4349_v59, %v6813_v5  ;;  %v4366_v16 = vsel %vm4242_vm4, %v4350_v38, %v6814_v44  ;;  %v10820_v44 = vld [vmem:[#allocation110_spill] sm:$0xff] }
 0x660   : > { %v6822_v58 = vpop.permute.xlu0 %6821  ;;  %v6818_v24 = vunpack.i.l.bf16 %v6817_v3  ;;  %v6819_v37 = vunpack.i.h.bf16 %v6817_v3  ;;  %v2715_v5 = vmul.f32 %v8924_v0, %v10820_v44 }
 0x661   : > { %v6824_v27 = vunpack.i.h.bf16 %v6822_v58  ;;  %v6823_v6 = vunpack.i.l.bf16 %v6822_v58  ;;  %v10821_v58 = vld [vmem:[#allocation50_spill] sm:$0xff] }
 0x662   : > { %v4251_v8 = vsel %vm4242_vm4, %v4234_v56, %v6818_v24  ;;  %v4252_v31 = vsel %vm4242_vm4, %v4235_v19, %v6819_v37  ;;  %v2074_v32 = vmul.f32 %v8934_v18, %v10821_v58 }
 0x663   : > { %v6827_v17 = vpop.permute.xlu1 %6826  ;;  %v4381_v36 = vsel %vm4259_vm5, %v4365_v35, %v6823_v6  ;;  %v4382_v48 = vsel %vm4259_vm5, %v4366_v16, %v6824_v27 }
 0x664   : > { %v6832_v14 = vpop.permute.xlu0 %6831  ;;  %v6829_v54 = vunpack.i.h.bf16 %v6827_v17  ;;  %v6828_v22 = vunpack.i.l.bf16 %v6827_v17 }
 0x665   : > { %v6834_v20 = vunpack.i.h.bf16 %v6832_v14  ;;  %v6833_v7 = vunpack.i.l.bf16 %v6832_v14 }
 0x666   : > { %v4268_v43 = vsel %vm4259_vm5, %v4251_v8, %v6828_v22  ;;  %v4269_v34 = vsel %vm4259_vm5, %v4252_v31, %v6829_v54 }
 0x667   : > { %v6837_v40 = vpop.permute.xlu1 %6836  ;;  %v4397_v13 = vsel %vm4276_vm6, %v4381_v36, %v6833_v7  ;;  %v4398_v47 = vsel %vm4276_vm6, %v4382_v48, %v6834_v20 }
 0x668   : > { %v6839_v49 = vunpack.i.h.bf16 %v6837_v40  ;;  %v6838_v39 = vunpack.i.l.bf16 %v6837_v40  ;;  %v6842_v51 = vpop.permute.xlu0 %6841  ;;  %v4414_v61 = vpack.c.bf16 %v4398_v47, %v4397_v13 }
 0x669   : > { %v6844_v45 = vunpack.i.h.bf16 %v6842_v51  ;;  %v6843_v29 = vunpack.i.l.bf16 %v6842_v51 }
 0x66a   : > { %4620 = vmatprep.mubr.bf16.mxu0 %v4414_v61  ;;  %v4285_v23 = vsel %vm4276_vm6, %v4268_v43, %v6838_v39  ;;  %v4286_v1 = vsel %vm4276_vm6, %v4269_v34, %v6839_v49 }
 0x66b   : > { %v6847_v15 = vpop.permute.xlu1 %6846  ;;  %v4413_v53 = vpack.c.bf16 %v4286_v1, %v4285_v23  ;;  %v4304_v38 = vsel %vm709_vm0, %v2715_v5, %v6844_v45  ;;  %v4303_v55 = vsel %vm709_vm0, %v2714_v21, %v6843_v29 }
 0x66c   : > { %v6852_v10 = vpop.permute.xlu0 %6851  ;;  %v6849_v42 = vunpack.i.h.bf16 %v6847_v15  ;;  %v6848_v3 = vunpack.i.l.bf16 %v6847_v15 }
 0x66d   : > { %4621 = vmatmul.mubr.bf16.gmra.mrb[64].mxu0 %v4413_v53  ;;  %v6853_v25 = vunpack.i.l.bf16 %v6852_v10  ;;  %v6854_v11 = vunpack.i.h.bf16 %v6852_v10 }
 0x66e   : > { %v4187_v24 = vsel %vm709_vm0, %v2075_v52, %v6849_v42  ;;  %v4186_v17 = vsel %vm709_vm0, %v2074_v32, %v6848_v3 }
 0x66f   : > { %v6857_v26 = vpop.permute.xlu1 %6856  ;;  %v4319_v50 = vsel %vm4192_vm2, %v4303_v55, %v6853_v25  ;;  %v4320_v0 = vsel %vm4192_vm2, %v4304_v38, %v6854_v11 }
 0x670   : > { %v6862_v41 = vpop.permute.xlu0 %6861  ;;  %v6859_v9 = vunpack.i.h.bf16 %v6857_v26  ;;  %v6858_v27 = vunpack.i.l.bf16 %v6857_v26 }
 0x671   : > { %v6864_v6 = vunpack.i.h.bf16 %v6862_v41  ;;  %v6863_v59 = vunpack.i.l.bf16 %v6862_v41 }
 0x672   : > { %v4203_v20 = vsel %vm4192_vm2, %v4186_v17, %v6858_v27  ;;  %v4204_v7 = vsel %vm4192_vm2, %v4187_v24, %v6859_v9  ;;  %v10823_v17 = vld [vmem:[#allocation145_spill] sm:$0xff] }
 0x673   : > { %v6867_v12 = vpop.permute.xlu1 %6866  ;;  %v4335_v46 = vsel %vm4209_vm3, %v4319_v50, %v6863_v59  ;;  %v4336_v56 = vsel %vm4209_vm3, %v4320_v0, %v6864_v6  ;;  %v2716_v50 = vmul.f32 %v8953_v4, %v10823_v17  ;;  %v10824_v0 = vld [vmem:[#allocation112_spill] sm:$0xff] }
 0x674   : > { %v6872_v60 = vpop.permute.xlu0 %6871  ;;  %v6868_v37 = vunpack.i.l.bf16 %v6867_v12  ;;  %v6869_v36 = vunpack.i.h.bf16 %v6867_v12 }
 0x675   : > { %v6874_v18 = vunpack.i.h.bf16 %v6872_v60  ;;  %v6873_v35 = vunpack.i.l.bf16 %v6872_v60 }
 0x676   : > { %v4220_v39 = vsel %vm4209_vm3, %v4203_v20, %v6868_v37  ;;  %v4221_v10 = vsel %vm4209_vm3, %v4204_v7, %v6869_v36  ;;  %v2717_v37 = vmul.f32 %v8939_v63, %v10824_v0 }
 0x677   : > { %v6877_v62 = vpop.permute.xlu1 %6876  ;;  %v4351_v40 = vsel %vm1118_vm1, %v4335_v46, %v6873_v35  ;;  %v4352_v13 = vsel %vm1118_vm1, %v4336_v56, %v6874_v18 }
 0x678   : > { %v6882_v28 = vpop.permute.xlu0 %6881  ;;  %v6878_v48 = vunpack.i.l.bf16 %v6877_v62  ;;  %v6879_v47 = vunpack.i.h.bf16 %v6877_v62 }
 0x679   : > { %v6884_v14 = vunpack.i.h.bf16 %v6882_v28  ;;  %v6883_v54 = vunpack.i.l.bf16 %v6882_v28 }
 0x67a   : > { %v4236_v26 = vsel %vm1118_vm1, %v4220_v39, %v6878_v48  ;;  %v4237_v60 = vsel %vm1118_vm1, %v4221_v10, %v6879_v47 }
 0x67b   : > { %v6887_v16 = vpop.permute.xlu1 %6886  ;;  %v4367_v51 = vsel %vm4242_vm4, %v4351_v40, %v6883_v54  ;;  %v4368_v61 = vsel %vm4242_vm4, %v4352_v13, %v6884_v14  ;;  %v10825_v14 = vld [vmem:[#allocation52_spill] sm:$0xff] }
 0x67c   : > { %v6892_v22 = vpop.permute.xlu0 %6891  ;;  %v6888_v31 = vunpack.i.l.bf16 %v6887_v16  ;;  %v6889_v43 = vunpack.i.h.bf16 %v6887_v16  ;;  %v2076_v54 = vmul.f32 %v8953_v4, %v10825_v14 }
 0x67d   : > { %v6894_v19 = vunpack.i.h.bf16 %v6892_v22  ;;  %v6893_v8 = vunpack.i.l.bf16 %v6892_v22  ;;  %v10826_v22 = vld [vmem:[#allocation21_spill] sm:$0xff] }
 0x67e   : > { %v4253_v45 = vsel %vm4242_vm4, %v4236_v26, %v6888_v31  ;;  %v4254_v21 = vsel %vm4242_vm4, %v4237_v60, %v6889_v43  ;;  %v2077_v20 = vmul.f32 %v8939_v63, %v10826_v22 }
 0x67f   : > { %v6897_v49 = vpop.permute.xlu1 %6896  ;;  %v4383_v41 = vsel %vm4259_vm5, %v4367_v51, %v6893_v8  ;;  %v4384_v12 = vsel %vm4259_vm5, %v4368_v61, %v6894_v19 }
 0x680   : > { %v6902_v34 = vpop.permute.xlu0 %6901  ;;  %v6899_v23 = vunpack.i.h.bf16 %v6897_v49  ;;  %v6898_v1 = vunpack.i.l.bf16 %v6897_v49 }
 0x681   : > { %v6904_v15 = vunpack.i.h.bf16 %v6902_v34  ;;  %v6903_v53 = vunpack.i.l.bf16 %v6902_v34 }
 0x682   : > { %v4270_v5 = vsel %vm4259_vm5, %v4253_v45, %v6898_v1  ;;  %v4271_v58 = vsel %vm4259_vm5, %v4254_v21, %v6899_v23 }
 0x683   : > { %v6907_v29 = vpop.permute.xlu1 %6906  ;;  %v4399_v42 = vsel %vm4276_vm6, %v4383_v41, %v6903_v53  ;;  %v4400_v33 = vsel %vm4276_vm6, %v4384_v12, %v6904_v15 }
 0x684   : > { %v6909_v3 = vunpack.i.h.bf16 %v6907_v29  ;;  %v6908_v25 = vunpack.i.l.bf16 %v6907_v29  ;;  %v6912_v62 = vpop.permute.xlu0 %6911  ;;  %v4416_v44 = vpack.c.bf16 %v4400_v33, %v4399_v42 }
 0x685   : > { %v6914_v38 = vunpack.i.h.bf16 %v6912_v62  ;;  %v6913_v55 = vunpack.i.l.bf16 %v6912_v62 }
 0x686   : > { %4628 = vmatprep.mubr.bf16.mxu0 %v4416_v44  ;;  %v4287_v32 = vsel %vm4276_vm6, %v4270_v5, %v6908_v25  ;;  %v4288_v57 = vsel %vm4276_vm6, %v4271_v58, %v6909_v3 }
 0x687   : > { %v6917_v52 = vpop.permute.xlu1 %6916  ;;  %v4415_v11 = vpack.c.bf16 %v4288_v57, %v4287_v32  ;;  %v4306_v8 = vsel %vm709_vm0, %v2717_v37, %v6914_v38  ;;  %v4305_v40 = vsel %vm709_vm0, %v2716_v50, %v6913_v55 }
 0x688   : > { %v6922_v28 = vpop.permute.xlu0 %6921  ;;  %v6919_v24 = vunpack.i.h.bf16 %v6917_v52  ;;  %v6918_v18 = vunpack.i.l.bf16 %v6917_v52 }
 0x689   : > { %4629 = vmatmul.mubr.bf16.gmra.mrb[68].mxu0 %v4415_v11  ;;  %v6923_v35 = vunpack.i.l.bf16 %v6922_v28  ;;  %v6924_v7 = vunpack.i.h.bf16 %v6922_v28 }
 0x68a   : > { %v4189_v13 = vsel %vm709_vm0, %v2077_v20, %v6919_v24  ;;  %v4188_v47 = vsel %vm709_vm0, %v2076_v54, %v6918_v18 }
 0x68b   : > { %v6927_v9 = vpop.permute.xlu1 %6926  ;;  %v4321_v31 = vsel %vm4192_vm2, %v4305_v40, %v6923_v35  ;;  %v4322_v63 = vsel %vm4192_vm2, %v4306_v8, %v6924_v7  ;;  %v10827_v40 = vld [vmem:[#allocation146_spill] sm:$0xff] }
 0x68c   : > { %v6932_v27 = vpop.permute.xlu0 %6931  ;;  %v6929_v56 = vunpack.i.h.bf16 %v6927_v9  ;;  %v6928_v36 = vunpack.i.l.bf16 %v6927_v9 }
 0x68d   : > { %v6934_v48 = vunpack.i.h.bf16 %v6932_v27  ;;  %v6933_v19 = vunpack.i.l.bf16 %v6932_v27 }
 0x68e   : > { %v4205_v23 = vsel %vm4192_vm2, %v4188_v47, %v6928_v36  ;;  %v4206_v1 = vsel %vm4192_vm2, %v4189_v13, %v6929_v56  ;;  %v2718_v13 = vmul.f32 %v8970_v30, %v10827_v40 }
 0x68f   : > { %v6937_v6 = vpop.permute.xlu1 %6936  ;;  %v4337_v15 = vsel %vm4209_vm3, %v4321_v31, %v6933_v19  ;;  %v4338_v53 = vsel %vm4209_vm3, %v4322_v63, %v6934_v48  ;;  %v10829_v63 = vld [vmem:[#allocation54_spill] sm:$0xff] }
 0x690   : > { %v6942_v59 = vpop.permute.xlu0 %6941  ;;  %v6938_v51 = vunpack.i.l.bf16 %v6937_v6  ;;  %v6939_v10 = vunpack.i.h.bf16 %v6937_v6 }
 0x691   : > { %v6944_v4 = vunpack.i.h.bf16 %v6942_v59  ;;  %v6943_v49 = vunpack.i.l.bf16 %v6942_v59 }
 0x692   : > { %v4222_v21 = vsel %vm4209_vm3, %v4205_v23, %v6938_v51  ;;  %v4223_v52 = vsel %vm4209_vm3, %v4206_v1, %v6939_v10  ;;  %v2078_v51 = vmul.f32 %v8970_v30, %v10829_v63  ;;  %v10135_v63 = vld [vmem:[%s10343_s14] ss:$0 sm:$0xff] }
 0x693   : > { %v6947_v16 = vpop.permute.xlu1 %6946  ;;  %v4353_v60 = vsel %vm1118_vm1, %v4337_v15, %v6943_v49  ;;  %v4354_v45 = vsel %vm1118_vm1, %v4338_v53, %v6944_v4  ;;  %v10828_v49 = vld [vmem:[#allocation114_spill] sm:$0xff] }
 0x694   : > { %v6952_v46 = vpop.permute.xlu0 %6951  ;;  %v6948_v26 = vunpack.i.l.bf16 %v6947_v16  ;;  %v6949_v29 = vunpack.i.h.bf16 %v6947_v16 }
 0x695   : > { %v6954_v61 = vunpack.i.h.bf16 %v6952_v46  ;;  %v6953_v43 = vunpack.i.l.bf16 %v6952_v46 }
 0x696   : > { %v4238_v11 = vsel %vm1118_vm1, %v4222_v21, %v6948_v26  ;;  %v4239_v27 = vsel %vm1118_vm1, %v4223_v52, %v6949_v29 }
 0x697   : > { %v6957_v39 = vpop.permute.xlu1 %6956  ;;  %v4369_v3 = vsel %vm4242_vm4, %v4353_v60, %v6953_v43  ;;  %v4370_v25 = vsel %vm4242_vm4, %v4354_v45, %v6954_v61  ;;  %v10830_v61 = vld [vmem:[#allocation22_spill] sm:$0xff] }
 0x698   : > { %v6962_v34 = vpop.permute.xlu0 %6961  ;;  %v6958_v42 = vunpack.i.l.bf16 %v6957_v39  ;;  %v6959_v62 = vunpack.i.h.bf16 %v6957_v39  ;;  %v2719_v39 = vmul.f32 %v8967_v2, %v10828_v49  ;;  %v2079_v43 = vmul.f32 %v8967_v2, %v10830_v61 }
 0x699   : > { %v6964_v41 = vunpack.i.h.bf16 %v6962_v34  ;;  %v6963_v12 = vunpack.i.l.bf16 %v6962_v34 }
 0x69a   : > { %v4255_v6 = vsel %vm4242_vm4, %v4238_v11, %v6958_v42  ;;  %v4256_v24 = vsel %vm4242_vm4, %v4239_v27, %v6959_v62 }
 0x69b   : > { %v6967_v33 = vpop.permute.xlu1 %6966  ;;  %v4385_v28 = vsel %vm4259_vm5, %v4369_v3, %v6963_v12  ;;  %v4386_v9 = vsel %vm4259_vm5, %v4370_v25, %v6964_v41 }
 0x69c   : > { %v6972_v44 = vpop.permute.xlu0 %6971  ;;  %v6969_v5 = vunpack.i.h.bf16 %v6967_v33  ;;  %v6968_v58 = vunpack.i.l.bf16 %v6967_v33 }
 0x69d   : > { %v6974_v32 = vunpack.i.h.bf16 %v6972_v44  ;;  %v6973_v57 = vunpack.i.l.bf16 %v6972_v44 }
 0x69e   : > { %v4272_v16 = vsel %vm4259_vm5, %v4255_v6, %v6968_v58  ;;  %v4273_v0 = vsel %vm4259_vm5, %v4256_v24, %v6969_v5 }
 0x69f   : > { %v6977_v59 = vpop.permute.xlu1 %6976  ;;  %v4401_v38 = vsel %vm4276_vm6, %v4385_v28, %v6973_v57  ;;  %v4402_v55 = vsel %vm4276_vm6, %v4386_v9, %v6974_v32 }
 0x6a0   : > { %v6979_v17 = vunpack.i.h.bf16 %v6977_v59  ;;  %v6978_v50 = vunpack.i.l.bf16 %v6977_v59  ;;  %v6982_v18 = vpop.permute.xlu0 %6981  ;;  %v4418_v35 = vpack.c.bf16 %v4402_v55, %v4401_v38 }
 0x6a1   : > { %v6984_v48 = vunpack.i.h.bf16 %v6982_v18  ;;  %v6983_v19 = vunpack.i.l.bf16 %v6982_v18 }
 0x6a2   : > { %4636 = vmatprep.mubr.bf16.mxu0 %v4418_v35  ;;  %v4289_v37 = vsel %vm4276_vm6, %v4272_v16, %v6978_v50  ;;  %v4290_v14 = vsel %vm4276_vm6, %v4273_v0, %v6979_v17 }
 0x6a3   : > { %v6987_v54 = vpop.permute.xlu1 %6986  ;;  %v4417_v22 = vpack.c.bf16 %v4290_v14, %v4289_v37  ;;  %v4308_v26 = vsel %vm709_vm0, %v2719_v39, %v6984_v48  ;;  %v4307_v41 = vsel %vm709_vm0, %v2718_v13, %v6983_v19 }
 0x6a4   : > { %v6992_v20 = vpop.permute.xlu0 %6991  ;;  %v6989_v8 = vunpack.i.h.bf16 %v6987_v54  ;;  %v6988_v47 = vunpack.i.l.bf16 %v6987_v54 }
 0x6a5   : > { %4637 = vmatmul.mubr.bf16.gmra.mrb[72].mxu0 %v4417_v22  ;;  %v6993_v31 = vunpack.i.l.bf16 %v6992_v20  ;;  %v6994_v34 = vunpack.i.h.bf16 %v6992_v20 }
 0x6a6   : > { %v4191_v12 = vsel %vm709_vm0, %v2079_v43, %v6989_v8  ;;  %v4190_v60 = vsel %vm709_vm0, %v2078_v51, %v6988_v47 }
 0x6a7   : > { %v6997_v7 = vpop.permute.xlu1 %6996  ;;  %v4323_v45 = vsel %vm4192_vm2, %v4307_v41, %v6993_v31  ;;  %v4324_v2 = vsel %vm4192_vm2, %v4308_v26, %v6994_v34 }
 0x6a8   : > { %v7002_v46 = vpop.permute.xlu0 %7001  ;;  %v6999_v1 = vunpack.i.h.bf16 %v6997_v7  ;;  %v6998_v15 = vunpack.i.l.bf16 %v6997_v7 }
 0x6a9   : > { %v7004_v53 = vunpack.i.h.bf16 %v7002_v46  ;;  %v7003_v10 = vunpack.i.l.bf16 %v7002_v46 }
 0x6aa   : > { %v4207_v62 = vsel %vm4192_vm2, %v4190_v60, %v6998_v15  ;;  %v4208_v44 = vsel %vm4192_vm2, %v4191_v12, %v6999_v1 }
 0x6ab   : > { %v7007_v56 = vpop.permute.xlu1 %7006  ;;  %v4339_v5 = vsel %vm4209_vm3, %v4323_v45, %v7003_v10  ;;  %v4340_v58 = vsel %vm4209_vm3, %v4324_v2, %v7004_v53 }
 0x6ac   : > { %v7012_v36 = vpop.permute.xlu0 %7011  ;;  %v7008_v33 = vunpack.i.l.bf16 %v7007_v56  ;;  %v7009_v32 = vunpack.i.h.bf16 %v7007_v56 }
 0x6ad   : > { %v7014_v30 = vunpack.i.h.bf16 %v7012_v36  ;;  %v7013_v29 = vunpack.i.l.bf16 %v7012_v36 }
 0x6ae   : > { %v4224_v38 = vsel %vm4209_vm3, %v4207_v62, %v7008_v33  ;;  %v4225_v37 = vsel %vm4209_vm3, %v4208_v44, %v7009_v32  ;;  %v4837_v44 = vld [vmem:[%s10346_s17] sm:$0xff] }
 0x6af   : > { %v7017_v4 = vpop.permute.xlu1 %7016  ;;  %v4355_v28 = vsel %vm1118_vm1, %v4339_v5, %v7013_v29  ;;  %v4356_v9 = vsel %vm1118_vm1, %v4340_v58, %v7014_v30  ;;  %v4838_v5 = vld [vmem:[%s10346_s17 + $0x8] sm:$0xff] }
 0x6b0   : > { %v7022_v23 = vpop.permute.xlu0 %7021  ;;  %v7018_v57 = vunpack.i.l.bf16 %v7017_v4  ;;  %v7019_v27 = vunpack.i.h.bf16 %v7017_v4  ;;  %v6311_v58 = vpack.c.bf16 %v4838_v5, %v4837_v44 }
 0x6b1   : > { %v7024_v21 = vunpack.i.h.bf16 %v7022_v23  ;;  %v7023_v3 = vunpack.i.l.bf16 %v7022_v23 }
 0x6b2   : > { %v4240_v14 = vsel %vm1118_vm1, %v4224_v38, %v7018_v57  ;;  %v4241_v20 = vsel %vm1118_vm1, %v4225_v37, %v7019_v27  ;;  %6312 = vmatprep.subr.bf16.mxu1 %v6311_v58 }
 0x6b3   : > { %v7027_v42 = vpop.permute.xlu1 %7026  ;;  %v4371_v55 = vsel %vm4242_vm4, %v4355_v28, %v7023_v3  ;;  %v4372_v24 = vsel %vm4242_vm4, %v4356_v9, %v7024_v21 }
 0x6b4   : > { %v7032_v25 = vpop.permute.xlu0 %7031  ;;  %v7028_v6 = vunpack.i.l.bf16 %v7027_v42  ;;  %v7029_v17 = vunpack.i.h.bf16 %v7027_v42 }
 0x6b5   : > { %v7034_v52 = vunpack.i.h.bf16 %v7032_v25  ;;  %v7033_v11 = vunpack.i.l.bf16 %v7032_v25 }
 0x6b6   : > { %v4257_v7 = vsel %vm4242_vm4, %v4240_v14, %v7028_v6  ;;  %v4258_v48 = vsel %vm4242_vm4, %v4241_v20, %v7029_v17  ;;  %v4841_v14 = vld [vmem:[%s10346_s17 + $0x20] sm:$0xff]  ;;  %v4843_v20 = vld [vmem:[%s10346_s17 + $0x30] sm:$0xff] }
 0x6b7   : > { %v7037_v59 = vpop.permute.xlu1 %7036  ;;  %v4387_v54 = vsel %vm4259_vm5, %v4371_v55, %v7033_v11  ;;  %v4388_v22 = vsel %vm4259_vm5, %v4372_v24, %v7034_v52 }
 0x6b8   : > { %v7042_v50 = vpop.permute.xlu0 %7041  ;;  %v7039_v18 = vunpack.i.h.bf16 %v7037_v59  ;;  %v7038_v35 = vunpack.i.l.bf16 %v7037_v59 }
 0x6b9   : > { %v7044_v16 = vunpack.i.h.bf16 %v7042_v50  ;;  %v7043_v0 = vunpack.i.l.bf16 %v7042_v50  ;;  %v4839_v50 = vld [vmem:[%s10346_s17 + $0x10] sm:$0xff] }
 0x6ba   : > { %v4274_v13 = vsel %vm4259_vm5, %v4257_v7, %v7038_v35  ;;  %v4275_v47 = vsel %vm4259_vm5, %v4258_v48, %v7039_v18  ;;  %v4840_v18 = vld [vmem:[%s10346_s17 + $0x18] sm:$0xff] }
 0x6bb   : > { %v7047_v46 = vpop.permute.xlu1 %7046  ;;  %v4403_v56 = vsel %vm4276_vm6, %v4387_v54, %v7043_v0  ;;  %v4404_v36 = vsel %vm4276_vm6, %v4388_v22, %v7044_v16  ;;  %v6315_v37 = vpack.c.bf16 %v4840_v18, %v4839_v50  ;;  %v4842_v54 = vld [vmem:[%s10346_s17 + $0x28] sm:$0xff]  ;;  %v4844_v7 = vld [vmem:[%s10346_s17 + $0x38] sm:$0xff] }
 0x6bc   : > { %v7049_v19 = vunpack.i.h.bf16 %v7047_v46  ;;  %v7048_v8 = vunpack.i.l.bf16 %v7047_v46  ;;  %v4420_v40 = vpack.c.bf16 %v4404_v36, %v4403_v56  ;;  %v6319_v22 = vpack.c.bf16 %v4842_v54, %v4841_v14 }
 0x6bd   : > { %v6323_v46 = vpack.c.bf16 %v4844_v7, %v4843_v20 }
 0x6be   : > { %4644 = vmatprep.mubr.bf16.mxu0 %v4420_v40  ;;  %v4291_v31 = vsel %vm4276_vm6, %v4274_v13, %v7048_v8  ;;  %v4292_v4 = vsel %vm4276_vm6, %v4275_v47, %v7049_v19 }
 0x6bf   : > { %v4419_v49 = vpack.c.bf16 %v4292_v4, %v4291_v31 }
 0x6c1   : > { %4645 = vmatmul.mubr.bf16.gmra.mrb[76].mxu0 %v4419_v49 }
 0x6d0   : > { %v5671_v39 = vpop.f32.mrb[48].mxu0 }
 0x6d1   : > { %v5672_v51 = vpop.f32.mrb[49].mxu0 }
 0x6d2   : > { %v5673_v61 = vadd.f32 %v5672_v51, %v5671_v39  ;;  %v5674_v43 = vpop.f32.mrb[50].mxu0 }
 0x6d3   : > { %v5675_v34 = vpop.f32.mrb[51].mxu0 }
 0x6d4   : > { %v4591_v23 = vadd.f32 %v5673_v61, %v10135_v63  ;;  %v5676_v1 = vadd.f32 %v5675_v34, %v5674_v43 }
 0x6d6   : > { %v4594_v15 = vadd.f32 %v5676_v1, %v10135_v63  ;;  %6083 = vmatprep.mubr.f32.mxu0 %v4591_v23 }
 0x6d8   : > { %6084 = vmatmul.mubr.f32.vlgmr.msra.gmra.mrb[80].mxu0 %v4594_v15 }
 0x6ec   : > { %v5677_v53 = vpop.f32.mrb[52].mxu0 }
 0x6ed   : > { %v5678_v10 = vpop.f32.mrb[53].mxu0 }
 0x6ee   : > { %v5679_v26 = vadd.f32 %v5678_v10, %v5677_v53  ;;  %v5680_v41 = vpop.f32.mrb[54].mxu0 }
 0x6ef   : > { %v5681_v12 = vpop.f32.mrb[55].mxu0 }
 0x6f0   : > { %v4599_v60 = vadd.f32 %v5679_v26, %v10135_v63  ;;  %v5682_v45 = vadd.f32 %v5681_v12, %v5680_v41 }
 0x6f2   : > { %v4602_v30 = vadd.f32 %v5682_v45, %v10135_v63  ;;  %6086 = vmatprep.mubr.f32.mxu0 %v4599_v60  ;;  %v5449_v60 = vld [vmem:[%s10345_s16] ss:$0 sm:$0xff] }
 0x6f4   : > { %6087 = vmatmul.mubr.f32.gmra.mrb[82].mxu0 %v4602_v30 }
 0x708   : > { %v5683_v29 = vpop.f32.mrb[56].mxu0 }
 0x709   : > { %v5684_v42 = vpop.f32.mrb[57].mxu0 }
 0x70a   : > { %v5685_v2 = vadd.f32 %v5684_v42, %v5683_v29  ;;  %v5686_v33 = vpop.f32.mrb[58].mxu0 }
 0x70b   : > { %v5687_v21 = vpop.f32.mrb[59].mxu0 }
 0x70c   : > { %v4607_v3 = vadd.f32 %v5685_v2, %v10135_v63  ;;  %v5688_v25 = vadd.f32 %v5687_v21, %v5686_v33 }
 0x70e   : > { %v4610_v62 = vadd.f32 %v5688_v25, %v10135_v63  ;;  %6089 = vmatprep.mubr.f32.mxu0 %v4607_v3 }
 0x710   : > { %6090 = vmatmul.mubr.f32.gmra.mrb[84].mxu0 %v4610_v62 }
 0x724   : > { %v5689_v32 = vpop.f32.mrb[60].mxu0 }
 0x725   : > { %v5690_v57 = vpop.f32.mrb[61].mxu0 }
 0x726   : > { %v5691_v52 = vadd.f32 %v5690_v57, %v5689_v32  ;;  %v5692_v11 = vpop.f32.mrb[62].mxu0 }
 0x727   : > { %v5693_v28 = vpop.f32.mrb[63].mxu0 }
 0x728   : > { %v4615_v9 = vadd.f32 %v5691_v52, %v10135_v63  ;;  %v5694_v27 = vadd.f32 %v5693_v28, %v5692_v11 }
 0x72a   : > { %v4618_v6 = vadd.f32 %v5694_v27, %v10135_v63  ;;  %6092 = vmatprep.mubr.f32.mxu0 %v4615_v9 }
 0x72c   : > { %6093 = vmatmul.mubr.f32.gmra.mrb[86].mxu0 %v4618_v6 }
 0x740   : > { %v5695_v59 = vpop.f32.mrb[64].mxu0 }
 0x741   : > { %v5696_v38 = vpop.f32.mrb[65].mxu0 }
 0x742   : > { %v5697_v55 = vadd.f32 %v5696_v38, %v5695_v59  ;;  %v5698_v24 = vpop.f32.mrb[66].mxu0 }
 0x743   : > { %v5699_v17 = vpop.f32.mrb[67].mxu0 }
 0x744   : > { %v4623_v35 = vadd.f32 %v5697_v55, %v10135_v63  ;;  %v5700_v16 = vadd.f32 %v5699_v17, %v5698_v24 }
 0x746   : > { %v4626_v0 = vadd.f32 %v5700_v16, %v10135_v63  ;;  %6095 = vmatprep.mubr.f32.mxu1 %v4623_v35 }
 0x748   : > { %6096 = vmatmul.mubr.f32.vlgmr.msra.gmra.mrb[48].mxu1 %v4626_v0 }
 0x749   : > { %6314 = vmatpush3.bf16.msra.mxu1 %v6311_v58 }
 0x74a   : > { %6316 = vmatprep.subr.bf16.mxu1 %v6315_v37 }
 0x74d   : > { %6318 = vmatpush3.bf16.msra.mxu1 %v6315_v37 }
 0x74e   : > { %6320 = vmatprep.subr.bf16.mxu1 %v6319_v22 }
 0x751   : > { %6322 = vmatpush3.bf16.msra.mxu1 %v6319_v22 }
 0x752   : > { %6324 = vmatprep.subr.bf16.mxu1 %v6323_v46 }
 0x755   : > { %6326 = vmatpush3.bf16.msra.mxu1 %v6323_v46 }
 0x75c   : > { %v5701_v56 = vpop.f32.mrb[68].mxu0 }
 0x75d   : > { %v5702_v36 = vpop.f32.mrb[69].mxu0 }
 0x75e   : > { %v5703_v48 = vadd.f32 %v5702_v36, %v5701_v56  ;;  %v5704_v19 = vpop.f32.mrb[70].mxu0 }
 0x75f   : > { %v5705_v8 = vpop.f32.mrb[71].mxu0 }
 0x760   : > { %v4631_v40 = vadd.f32 %v5703_v48, %v10135_v63  ;;  %v5706_v13 = vadd.f32 %v5705_v8, %v5704_v19 }
 0x762   : > { %v4634_v47 = vadd.f32 %v5706_v13, %v10135_v63  ;;  %6098 = vmatprep.mubr.f32.mxu1 %v4631_v40 }
 0x764   : > { %6099 = vmatmul.mubr.f32.gmra.mrb[50].mxu1 %v4634_v47 }
 0x778   : > { %v5707_v31 = vpop.f32.mrb[72].mxu0 }
 0x779   : > { %v5708_v4 = vpop.f32.mrb[73].mxu0 }
 0x77a   : > { %v5709_v49 = vadd.f32 %v5708_v4, %v5707_v31  ;;  %v5710_v39 = vpop.f32.mrb[74].mxu0  ;;  %v10199_v4 = vld [vmem:[%s10347_s18] ss:$0 sm:$0xff] }
 0x77b   : > { %v5711_v51 = vpop.f32.mrb[75].mxu0 }
 0x77c   : > { %v4639_v61 = vadd.f32 %v5709_v49, %v10135_v63  ;;  %v5712_v43 = vadd.f32 %v5711_v51, %v5710_v39 }
 0x77e   : > { %v4642_v34 = vadd.f32 %v5712_v43, %v10135_v63  ;;  %6101 = vmatprep.mubr.f32.mxu1 %v4639_v61 }
 0x780   : > { %6102 = vmatmul.mubr.f32.gmra.mrb[52].mxu1 %v4642_v34 }
 0x794   : > { %v5713_v23 = vpop.f32.mrb[76].mxu0 }
 0x795   : > { %v5714_v1 = vpop.f32.mrb[77].mxu0 }
 0x796   : > { %v5715_v15 = vadd.f32 %v5714_v1, %v5713_v23  ;;  %v5716_v53 = vpop.f32.mrb[78].mxu0 }
 0x797   : > { %v5717_v10 = vpop.f32.mrb[79].mxu0 }
 0x798   : > { %v4647_v26 = vadd.f32 %v5715_v15, %v10135_v63  ;;  %v5718_v41 = vadd.f32 %v5717_v10, %v5716_v53 }
 0x79a   : > { %v4650_v12 = vadd.f32 %v5718_v41, %v10135_v63  ;;  %6104 = vmatprep.mubr.f32.mxu1 %v4647_v26 }
 0x79c   : > { %6105 = vmatmul.mubr.f32.gmra.mrb[54].mxu1 %v4650_v12 }
 0x7ab   : > { %v6085_v45 = vpop.f32.mrb[80].mxu0 }
 0x7ac   : > { %v4748_v30 = vadd.f32 %v6085_v45, %v5449_v60  ;;  %v4742_v29 = vpop.f32.mrb[81].mxu0 }
 0x7ad   : > { %v4743_v42 = vadd.f32 %v5449_v60, %v4742_v29 }
 0x7ae   : > { %v4822_v33 = vmax.f32 %v4748_v30, 0.0 }
 0x7af   : > { %v4821_v2 = vmax.f32 %v4743_v42, 0.0 }
 0x7b1   : > { %6123 = vmatprep.mubr.msk.f32.mxu1 %vm1118_vm1, %v4821_v2 }
 0x7b2   : > { %6124 = vmatmul.mubr.msk.f32.vlgmr.msra.gmra.mrb[56].mxu1 %vm1118_vm1, %v4822_v33 }
 0x7c7   : > { %v6088_v21 = vpop.f32.mrb[82].mxu0 }
 0x7c8   : > { %v4758_v3 = vadd.f32 %v6088_v21, %v5449_v60  ;;  %v4752_v25 = vpop.f32.mrb[83].mxu0 }
 0x7c9   : > { %v4753_v63 = vadd.f32 %v5449_v60, %v4752_v25 }
 0x7ca   : > { %v4824_v44 = vmax.f32 %v4758_v3, 0.0 }
 0x7cb   : > { %v4823_v62 = vmax.f32 %v4753_v63, 0.0 }
 0x7cd   : > { %6126 = vmatprep.mubr.msk.f32.mxu1 %vm1118_vm1, %v4823_v62 }
 0x7ce   : > { %6127 = vmatmul.mubr.msk.f32.gmra.mrb[58].mxu1 %vm1118_vm1, %v4824_v44 }
 0x7e3   : > { %v6091_v5 = vpop.f32.mrb[84].mxu0 }
 0x7e4   : > { %v4768_v58 = vadd.f32 %v6091_v5, %v5449_v60  ;;  %v4762_v32 = vpop.f32.mrb[85].mxu0 }
 0x7e5   : > { %v4763_v57 = vadd.f32 %v5449_v60, %v4762_v32 }
 0x7e6   : > { %v4826_v11 = vmax.f32 %v4768_v58, 0.0 }
 0x7e7   : > { %v4825_v52 = vmax.f32 %v4763_v57, 0.0 }
 0x7e9   : > { %6129 = vmatprep.mubr.msk.f32.mxu1 %vm1118_vm1, %v4825_v52 }
 0x7ea   : > { %6130 = vmatmul.mubr.msk.f32.gmra.mrb[60].mxu1 %vm1118_vm1, %v4826_v11 }
 0x7ff   : > { %v6094_v28 = vpop.f32.mrb[86].mxu0 }
 0x800   : > { %v4778_v9 = vadd.f32 %v6094_v28, %v5449_v60  ;;  %v4772_v27 = vpop.f32.mrb[87].mxu0 }
 0x801   : > { %v4773_v6 = vadd.f32 %v5449_v60, %v4772_v27 }
 0x802   : > { %v4828_v38 = vmax.f32 %v4778_v9, 0.0 }
 0x803   : > { %v4827_v59 = vmax.f32 %v4773_v6, 0.0 }
 0x805   : > { %6132 = vmatprep.mubr.msk.f32.mxu1 %vm1118_vm1, %v4827_v59 }
 0x806   : > { %6133 = vmatmul.mubr.msk.f32.gmra.mrb[62].mxu1 %vm1118_vm1, %v4828_v38 }
 0x81b   : > { %v6097_v55 = vpop.f32.mrb[48].mxu1 }
 0x81c   : > { %v4788_v24 = vadd.f32 %v6097_v55, %v5449_v60  ;;  %v4782_v17 = vpop.f32.mrb[49].mxu1 }
 0x81d   : > { %v4783_v50 = vadd.f32 %v5449_v60, %v4782_v17 }
 0x81e   : > { %v4830_v35 = vmax.f32 %v4788_v24, 0.0 }
 0x81f   : > { %v4829_v18 = vmax.f32 %v4783_v50, 0.0 }
 0x821   : > { %6135 = vmatprep.mubr.msk.f32.mxu1 %vm1118_vm1, %v4829_v18 }
 0x822   : > { %6136 = vmatmul.mubr.msk.f32.gmra.mrb[64].mxu1 %vm1118_vm1, %v4830_v35 }
 0x837   : > { %v6100_v16 = vpop.f32.mrb[50].mxu1 }
 0x838   : > { %v4798_v0 = vadd.f32 %v6100_v16, %v5449_v60  ;;  %v4792_v37 = vpop.f32.mrb[51].mxu1 }
 0x839   : > { %v4793_v14 = vadd.f32 %v5449_v60, %v4792_v37 }
 0x83a   : > { %v4832_v22 = vmax.f32 %v4798_v0, 0.0 }
 0x83b   : > { %v4831_v54 = vmax.f32 %v4793_v14, 0.0 }
 0x83d   : > { %6138 = vmatprep.mubr.msk.f32.mxu1 %vm1118_vm1, %v4831_v54 }
 0x83e   : > { %6139 = vmatmul.mubr.msk.f32.gmra.mrb[66].mxu1 %vm1118_vm1, %v4832_v22 }
 0x853   : > { %v6103_v20 = vpop.f32.mrb[52].mxu1 }
 0x854   : > { %v4808_v7 = vadd.f32 %v6103_v20, %v5449_v60  ;;  %v4802_v46 = vpop.f32.mrb[53].mxu1 }
 0x855   : > { %v4803_v56 = vadd.f32 %v5449_v60, %v4802_v46 }
 0x856   : > { %v4834_v48 = vmax.f32 %v4808_v7, 0.0 }
 0x857   : > { %v4833_v36 = vmax.f32 %v4803_v56, 0.0 }
 0x859   : > { %6141 = vmatprep.mubr.msk.f32.mxu1 %vm1118_vm1, %v4833_v36 }
 0x85a   : > { %6142 = vmatmul.mubr.msk.f32.gmra.mrb[68].mxu1 %vm1118_vm1, %v4834_v48 }
 0x86f   : > { %v6106_v19 = vpop.f32.mrb[54].mxu1 }
 0x870   : > { %v4818_v8 = vadd.f32 %v6106_v19, %v5449_v60  ;;  %v4812_v40 = vpop.f32.mrb[55].mxu1 }
 0x871   : > { %v4813_v13 = vadd.f32 %v5449_v60, %v4812_v40 }
 0x872   : > { %v4836_v31 = vmax.f32 %v4818_v8, 0.0 }
 0x873   : > { %v4835_v47 = vmax.f32 %v4813_v13, 0.0 }
 0x875   : > { %6144 = vmatprep.mubr.msk.f32.mxu1 %vm1118_vm1, %v4835_v47 }
 0x876   : > { %6145 = vmatmul.mubr.msk.f32.gmra.mrb[70].mxu1 %vm1118_vm1, %v4836_v31 }
 0x885   : > { %v6125_v49 = vpop.f32.mrb[56].mxu1 }
 0x886   : > { %v4972_v39 = vadd.f32 %v6125_v49, %v10199_v4  ;;  %v4966_v51 = vpop.f32.mrb[57].mxu1 }
 0x887   : > { %v4967_v61 = vadd.f32 %v10199_v4, %v4966_v51 }
 0x888   : > { %v5468_v43 = vmul.f32 -1.442695, %v4972_v39 }
 0x889   : > { %v5467_v34 = vmul.f32 -1.442695, %v4967_v61 }
 0x88a   : > { %7131 = vpow2.f32 %v5468_v43 }
 0x88b   : > { %7133 = vpow2.f32 %v5467_v34 }
 0x894   : > { %v7132_v23 = vpop.eup %7131 }
 0x895   : > { %v7134_v1 = vpop.eup %7133  ;;  %v5094_v15 = vadd.f32 1.0, %v7132_v23 }
 0x896   : > { %v5093_v53 = vadd.f32 1.0, %v7134_v1 }
 0x897   : > { %7135 = vrcp.f32 %v5094_v15 }
 0x898   : > { %7137 = vrcp.f32 %v5093_v53 }
 0x8a1   : > { %v7136_v10 = vpop.eup %7135  ;;  %v6128_v26 = vpop.f32.mrb[58].mxu1 }
 0x8a2   : > { %v7138_v41 = vpop.eup %7137  ;;  %5174 = vst [vmem:[%s10205_s21 + $0x8] sm:$0xff] %v7136_v10  ;;  %v4982_v12 = vadd.f32 %v6128_v26, %v10199_v4  ;;  %v4976_v60 = vpop.f32.mrb[59].mxu1 }
 0x8a3   : > { %5173 = vst [vmem:[%s10205_s21] sm:$0xff] %v7138_v41  ;;  %v4977_v45 = vadd.f32 %v10199_v4, %v4976_v60 }
 0x8a4   : > { %v5470_v30 = vmul.f32 -1.442695, %v4982_v12 }
 0x8a5   : > { %v5469_v29 = vmul.f32 -1.442695, %v4977_v45 }
 0x8a6   : > { %7139 = vpow2.f32 %v5470_v30 }
 0x8a7   : > { %7141 = vpow2.f32 %v5469_v29 }
 0x8b0   : > { %v7140_v42 = vpop.eup %7139 }
 0x8b1   : > { %v7142_v2 = vpop.eup %7141  ;;  %v5096_v33 = vadd.f32 1.0, %v7140_v42 }
 0x8b2   : > { %v5095_v21 = vadd.f32 1.0, %v7142_v2 }
 0x8b3   : > { %7143 = vrcp.f32 %v5096_v33 }
 0x8b4   : > { %7145 = vrcp.f32 %v5095_v21 }
 0x8bd   : > { %v7144_v3 = vpop.eup %7143  ;;  %v6131_v25 = vpop.f32.mrb[60].mxu1 }
 0x8be   : > { %v7146_v63 = vpop.eup %7145  ;;  %5176 = vst [vmem:[%s10205_s21 + $0x18] sm:$0xff] %v7144_v3  ;;  %v4992_v62 = vadd.f32 %v6131_v25, %v10199_v4  ;;  %v4986_v44 = vpop.f32.mrb[61].mxu1 }
 0x8bf   : > { %5175 = vst [vmem:[%s10205_s21 + $0x10] sm:$0xff] %v7146_v63  ;;  %v4987_v5 = vadd.f32 %v10199_v4, %v4986_v44 }
 0x8c0   : > { %v5472_v58 = vmul.f32 -1.442695, %v4992_v62 }
 0x8c1   : > { %v5471_v32 = vmul.f32 -1.442695, %v4987_v5 }
 0x8c2   : > { %7147 = vpow2.f32 %v5472_v58 }
 0x8c3   : > { %7149 = vpow2.f32 %v5471_v32 }
 0x8cc   : > { %v7148_v57 = vpop.eup %7147 }
 0x8cd   : > { %v7150_v52 = vpop.eup %7149  ;;  %v5098_v11 = vadd.f32 1.0, %v7148_v57 }
 0x8ce   : > { %v5097_v28 = vadd.f32 1.0, %v7150_v52 }
 0x8cf   : > { %7151 = vrcp.f32 %v5098_v11 }
 0x8d0   : > { %7153 = vrcp.f32 %v5097_v28 }
 0x8d9   : > { %v7152_v9 = vpop.eup %7151  ;;  %v6134_v27 = vpop.f32.mrb[62].mxu1 }
 0x8da   : > { %v7154_v6 = vpop.eup %7153  ;;  %5178 = vst [vmem:[%s10205_s21 + $0x28] sm:$0xff] %v7152_v9  ;;  %v5002_v59 = vadd.f32 %v6134_v27, %v10199_v4  ;;  %v4996_v38 = vpop.f32.mrb[63].mxu1 }
 0x8db   : > { %5177 = vst [vmem:[%s10205_s21 + $0x20] sm:$0xff] %v7154_v6  ;;  %v4997_v55 = vadd.f32 %v10199_v4, %v4996_v38 }
 0x8dc   : > { %v5474_v24 = vmul.f32 -1.442695, %v5002_v59 }
 0x8dd   : > { %v5473_v17 = vmul.f32 -1.442695, %v4997_v55 }
 0x8de   : > { %7155 = vpow2.f32 %v5474_v24 }
 0x8df   : > { %7157 = vpow2.f32 %v5473_v17 }
 0x8e8   : > { %v7156_v50 = vpop.eup %7155 }
 0x8e9   : > { %v7158_v18 = vpop.eup %7157  ;;  %v5100_v35 = vadd.f32 1.0, %v7156_v50 }
 0x8ea   : > { %v5099_v16 = vadd.f32 1.0, %v7158_v18 }
 0x8eb   : > { %7224 = shalt.err (!%p7221_p3)
}
 0x8ec   : > { %s7225_s27 = scalar_lea.hbm %s10226_s28, 2048  ;;  %s7229_s23 = scalar_lea.hbm %s10833_s24, 4096 }
 0x8ed   : > { %p7226_p4 = scmp.ne.s32.totalorder %s10226_s28, %s7225_s27  ;;  %p7230_p9 = scmp.lt.u32.totalorder %s10226_s28, %s10833_s24 }
 0x8ee   : > { %p7231_p10 = scmp.lt.u32.totalorder %s7229_s23, %s7225_s27  ;;  %p7233_p12 = scmp.lt.u32.totalorder %s7225_s27, %s10226_s28 }
 0x8ef   : > { %p7227_p7 = pnand %p7226_p4, %p7482_p5 }
 0x8f0   : > { %p7232_p11 = por %p7231_p10, %p7230_p9 }
 0x8f1   : > { %p7228_p8 = pneg %p7227_p7 }
 0x8f2   : > { %p7234_p13 = por %p7233_p12, %p7232_p11 }
 0x8f4   : > { %p7235_p0 = pnand %p7234_p13, %p7228_p8 }
 0x8f6   : > { %7238 = shalt.err (!%p7235_p0)
}
 0x8f7   : > { %s10394_s30 = smov 128   ;;  %s10395_s5 = smov 8   ;;  %7159 = vrcp.f32 %v5100_v35  ;;  %v6137_v37 = vpop.f32.mrb[64].mxu1 }
 0x8f8   : > { %s10834_s4 = scalar_lea.sflag [#allocation3], %s7869_s2  ;;  %7161 = vrcp.f32 %v5099_v16  ;;  %v5012_v54 = vadd.f32 %v6137_v37, %v10199_v4  ;;  %v5006_v22 = vpop.f32.mrb[65].mxu1  ;;  %s10836_s26 = sld [smem:[#allocation213_spill]] }
 0x8f9   : > { %6343 = dma.vmem_to_hbm [thread:$0]  (%p7482_p5), %s10228_s1, 2048, %s10226_s28, %s10834_s4, %s10394_s30, %s10394_s30, %s10395_s5   ;;  %v5007_v20 = vadd.f32 %v10199_v4, %v5006_v22 }
 0x8fa   : > { %v5476_v7 = vmul.f32 -1.442695, %v5012_v54  ;;  %s5233_s1 = sshll.u32 %s10205_s21, 4  ;;  %s10835_s28 = sshll.u32 %s7465_s3, 11  ;;  %s10281_s1 = int_to_ptr.vmem [resolvable:$true] %s5233_s1 }
 0x8fb   : > { %v5475_v46 = vmul.f32 -1.442695, %v5007_v20  ;;  %s5200_s4 = scalar_lea.sflag [#allocation5], %s7869_s2  ;;  %s7239_s30 = scalar_lea.vmem %s10281_s1, 2048 }
 0x8fc   : > { %7163 = vpow2.f32 %v5476_v7  ;;  %p7240_p1 = scmp.ne.s32.totalorder %s10281_s1, %s7239_s30  ;;  %s7333_s3 = smov [#allocation4]  }
 0x8fd   : > { %7165 = vpow2.f32 %v5475_v46  ;;  %s7243_s5 = sshll.u32 %s7333_s3, 4  ;;  %s7244_s5 = int_to_ptr.vmem [resolvable:$false] %s7243_s5 }
 0x8fe   : > { %s10837_s23 = smov %s10836_s26  ;;  %s10279_s6 = scalar_lea.hbm %s10836_s26, %s10835_s28 }
 0x8ff   : > { %p7241_p2 = pnand %p7240_p1, %p7482_p5  ;;  %s7245_s20 = scalar_lea.vmem %s7244_s5, 4096 }
 0x900   : > { %p7246_p4 = scmp.lt.s32.totalorder %s10281_s1, %s7244_s5  ;;  %p7247_p7 = scmp.lt.s32.totalorder %s7245_s20, %s7239_s30 }
 0x901   : > { %v7160_v0 = vpop.eup %7159  ;;  %p7242_p3 = pneg %p7241_p2 }
 0x902   : > { %v7162_v14 = vpop.eup %7161  ;;  %5180 = vst [vmem:[%s10205_s21 + $0x38] sm:$0xff] %v7160_v0  ;;  %p7248_p8 = por %p7247_p7, %p7246_p4 }
 0x903   : > { %5179 = vst [vmem:[%s10205_s21 + $0x30] sm:$0xff] %v7162_v14 }
 0x904   : > { %p7249_p9 = pnand %p7248_p8, %p7242_p3 }
 0x906   : > { %v7164_v56 = vpop.eup %7163 }
 0x907   : > { %v7166_v36 = vpop.eup %7165  ;;  %v5102_v48 = vadd.f32 1.0, %v7164_v56 }
 0x908   : > { %v5101_v19 = vadd.f32 1.0, %v7166_v36 }
 0x909   : > { %7167 = vrcp.f32 %v5102_v48 }
 0x90a   : > { %7169 = vrcp.f32 %v5101_v19 }
 0x911   : > { %v6140_v40 = vpop.f32.mrb[66].mxu1 }
 0x912   : > { %v5022_v47 = vadd.f32 %v6140_v40, %v10199_v4  ;;  %v5016_v31 = vpop.f32.mrb[67].mxu1 }
 0x913   : > { %v7168_v8 = vpop.eup %7167  ;;  %v5017_v49 = vadd.f32 %v10199_v4, %v5016_v31 }
 0x914   : > { %v7170_v13 = vpop.eup %7169  ;;  %5182 = vst [vmem:[%s10205_s21 + $0x48] sm:$0xff] %v7168_v8  ;;  %v5478_v39 = vmul.f32 -1.442695, %v5022_v47 }
 0x915   : > { %5181 = vst [vmem:[%s10205_s21 + $0x40] sm:$0xff] %v7170_v13  ;;  %v5477_v51 = vmul.f32 -1.442695, %v5017_v49 }
 0x916   : > { %7171 = vpow2.f32 %v5478_v39 }
 0x917   : > { %7173 = vpow2.f32 %v5477_v51 }
 0x920   : > { %v7172_v61 = vpop.eup %7171 }
 0x921   : > { %v7174_v43 = vpop.eup %7173  ;;  %v5104_v34 = vadd.f32 1.0, %v7172_v61 }
 0x922   : > { %v5103_v23 = vadd.f32 1.0, %v7174_v43 }
 0x923   : > { %7175 = vrcp.f32 %v5104_v34 }
 0x924   : > { %7177 = vrcp.f32 %v5103_v23 }
 0x92d   : > { %v7176_v1 = vpop.eup %7175  ;;  %v6143_v15 = vpop.f32.mrb[68].mxu1 }
 0x92e   : > { %v7178_v53 = vpop.eup %7177  ;;  %5184 = vst [vmem:[%s10205_s21 + $0x58] sm:$0xff] %v7176_v1  ;;  %v5032_v10 = vadd.f32 %v6143_v15, %v10199_v4  ;;  %v5026_v26 = vpop.f32.mrb[69].mxu1 }
 0x92f   : > { %5183 = vst [vmem:[%s10205_s21 + $0x50] sm:$0xff] %v7178_v53  ;;  %v5027_v41 = vadd.f32 %v10199_v4, %v5026_v26 }
 0x930   : > { %v5480_v12 = vmul.f32 -1.442695, %v5032_v10 }
 0x931   : > { %v5479_v60 = vmul.f32 -1.442695, %v5027_v41 }
 0x932   : > { %7179 = vpow2.f32 %v5480_v12 }
 0x933   : > { %7181 = vpow2.f32 %v5479_v60 }
 0x93c   : > { %v7180_v45 = vpop.eup %7179 }
 0x93d   : > { %v7182_v30 = vpop.eup %7181  ;;  %v5106_v29 = vadd.f32 1.0, %v7180_v45 }
 0x93e   : > { %v5105_v42 = vadd.f32 1.0, %v7182_v30 }
 0x93f   : > { %7183 = vrcp.f32 %v5106_v29 }
 0x940   : > { %7185 = vrcp.f32 %v5105_v42 }
 0x949   : > { %v7184_v2 = vpop.eup %7183  ;;  %v6146_v33 = vpop.f32.mrb[70].mxu1 }
 0x94a   : > { %v7186_v21 = vpop.eup %7185  ;;  %5186 = vst [vmem:[%s10205_s21 + $0x68] sm:$0xff] %v7184_v2  ;;  %v5042_v3 = vadd.f32 %v6146_v33, %v10199_v4  ;;  %v5036_v25 = vpop.f32.mrb[71].mxu1 }
 0x94b   : > { %5185 = vst [vmem:[%s10205_s21 + $0x60] sm:$0xff] %v7186_v21  ;;  %v5037_v63 = vadd.f32 %v10199_v4, %v5036_v25 }
 0x94c   : > { %v5482_v62 = vmul.f32 -1.442695, %v5042_v3 }
 0x94d   : > { %v5481_v44 = vmul.f32 -1.442695, %v5037_v63 }
 0x94e   : > { %7187 = vpow2.f32 %v5482_v62 }
 0x94f   : > { %7189 = vpow2.f32 %v5481_v44 }
 0x958   : > { %v7188_v5 = vpop.eup %7187 }
 0x959   : > { %v7190_v58 = vpop.eup %7189  ;;  %v5108_v32 = vadd.f32 1.0, %v7188_v5 }
 0x95a   : > { %v5107_v57 = vadd.f32 1.0, %v7190_v58 }
 0x95b   : > { %7191 = vrcp.f32 %v5108_v32 }
 0x95c   : > { %7193 = vrcp.f32 %v5107_v57 }
 0x965   : > { %v7192_v52 = vpop.eup %7191 }
 0x966   : > { %v7194_v4 = vpop.eup %7193  ;;  %5188 = vst [vmem:[%s10205_s21 + $0x78] sm:$0xff] %v7192_v52 }
 0x967   : > { %5187 = vst [vmem:[%s10205_s21 + $0x70] sm:$0xff] %v7194_v4 }
 0x968   : > { %7252 = shalt.err (!%p7249_p9)
}
 0x969   : > { %s7253_s21 = scalar_lea.hbm %s10279_s6, 2048  ;;  %s7257_s26 = scalar_lea.hbm %s10837_s23, 4096 }
 0x96a   : > { %p7254_p10 = scmp.ne.s32.totalorder %s10279_s6, %s7253_s21  ;;  %p7258_p13 = scmp.lt.u32.totalorder %s10279_s6, %s10837_s23 }
 0x96b   : > { %p7259_p0 = scmp.lt.u32.totalorder %s7257_s26, %s7253_s21  ;;  %p7261_p2 = scmp.lt.u32.totalorder %s7253_s21, %s10279_s6 }
 0x96c   : > { %p7255_p11 = pnand %p7254_p10, %p7482_p5 }
 0x96d   : > { %p7260_p1 = por %p7259_p0, %p7258_p13 }
 0x96e   : > { %p7256_p12 = pneg %p7255_p11 }
 0x96f   : > { %p7262_p3 = por %p7261_p2, %p7260_p1 }
 0x971   : > { %p7263_p4 = pnand %p7262_p3, %p7256_p12 }
 0x973   : > { %7266 = shalt.err (!%p7263_p4)
}
 0x974   : > { %s10838_s30 = smov 8   ;;  %s10839_s20 = smov 128  }
 0x975   : > { %6344 = dma.vmem_to_hbm [thread:$0]  (%p7482_p5), %s10281_s1, 2048, %s10279_s6, %s5200_s4, %s10839_s20, %s10839_s20, %s10838_s30  }
 0x976 PF: > { %s10840_s28 = sld [smem:[#allocation10_spill]]  ;;  %s10841_s27 = sld [smem:[#allocation8_spill]] }
 0x97c   : > { %p6354_p7 = scmp.ge.s32.totalorder %s10840_s28, 2  ;;  %s5256_s26 = sand.u32 1, %s10841_s27  }
 0x97d   : > { %s5257_s21 = scalar_lea.sflag [#allocation3], %s5256_s26 }
 0x97e   : > { %p6348_p8 = pnand %p6354_p7, %p7486_p6 }
 0x980   : > { %7284 = dma.done.wait (!%p6348_p8), %s5257_s21, 2048  }
 0x981   : > { %7286 = vsyncadd (!%p6348_p8), %s5257_s21, 4294965248  ;;  %s5266_s0 = scalar_lea.sflag [#allocation5], %s5256_s26 }
 0x982   : > { %7288 = dma.done.wait (!%p6348_p8), %s5266_s0, 2048  }
 0x983   : > { %7290 = vsyncadd (!%p6348_p8), %s5266_s0, 4294965248  ;;  %s10843_s27 = sld [smem:[#allocation11_spill]]  ;;  %s10844_s5 = sld [smem:[#allocation9_spill]] }
 0x984   : > { %s10845_s26 = sld [smem:[#allocation12_spill]]  ;;  %s10846_s2 = smov %s7297_s25 }
 0x989   : > { %p35_p5 = scmp.ge.s32.totalorder %s10843_s27, 4   ;;  %s10847_s25 = smov %s10844_s5 }
 0x98b   :  { %37 = sbr.rel (!%p35_p5) target bundleno = 15 (0xf), region = 160 }
 0x992   :  { %5271 = vsyncpa [#allocation3], 1 }
 0x993   :  { %5273 = vsyncpa [#allocation3 + $0x1], 1 }
 0x994   :  { %5274 = vsyncpa [#allocation5], 1 }
 0x995   :  { %5276 = vsyncpa [#allocation5 + $0x1], 1 }

</bundles_post_ra>
